<compile_context>
chip_gen: v6e
topology: v6e:2x2x1
jax: 0.10.0
libtpu: 0.0.40
codegen_flags: <defaults>
</compile_context>

<pallas_src>
import functools

import jax
import jax.numpy as jnp
from jax.experimental import pallas as pl
from jax.experimental.pallas import tpu as pltpu

# Model hyper-parameters (small, consistent with the module's forward).
DIM = 32          # embedding dim C
HEADS = 4         # attention heads
HEAD_DIM = DIM // HEADS
MLP_DIM = 64      # FeedForward hidden dim
DEPTH = 2         # number of transformer blocks
LN_EPS = 1e-5     # torch.nn.LayerNorm default eps
SCALE = HEAD_DIM ** (-0.5)

SEQ = 8           # N (tokens)
BATCH = 2         # B


def _layer_norm(x, gamma2d, beta2d):
    # x: (M, C); gamma2d/beta2d: (1, C). Biased variance, like torch LayerNorm.
    mean = jnp.mean(x, axis=-1, keepdims=True)
    var = jnp.mean((x - mean) ** 2, axis=-1, keepdims=True)
    return (x - mean) * jax.lax.rsqrt(var + LN_EPS) * gamma2d + beta2d


def _erf_poly(x):
    # Abramowitz & Stegun 7.1.26, |error| <= 1.5e-7. Only exp/mul/add/where ops,
    # so it lowers cleanly in Mosaic (no dependence on an erf primitive).
    a1, a2, a3, a4, a5 = (0.254829592, -0.284496736, 1.421413741,
                          -1.453152027, 1.061405429)
    p = 0.3275911
    ax = jnp.abs(x)
    t = 1.0 / (1.0 + p * ax)
    poly = ((((a5 * t + a4) * t + a3) * t + a2) * t + a1) * t
    y = 1.0 - poly * jnp.exp(-ax * ax)
    return jnp.where(x >= 0, y, -y)


def _gelu_exact(x):
    # torch.nn.GELU() default = exact erf-based GELU.
    return 0.5 * x * (1.0 + _erf_poly(x * 0.7071067811865475))


def transformer_kernel(x_ref, ln1_g_ref, ln1_b_ref, wq_ref, wk_ref, wv_ref,
                       wproj_ref, bproj_ref, ln2_g_ref, ln2_b_ref,
                       w1_ref, b1_ref, w2_ref, b2_ref, o_ref, *, batch, seq):
    """All DEPTH transformer blocks over the whole (B*N, C) slab in one grid step."""
    depth, heads, _, head_dim = wq_ref.shape
    scale = head_dim ** (-0.5)
    bn = batch * seq

    x = x_ref[...].astype(jnp.float32)                               # (B*N, C)

    for d in range(depth):                                           # static unroll
        # ---- Residual(PreNormDrop(SelfAttention)) ----
        xn = _layer_norm(x, ln1_g_ref[d], ln1_b_ref[d])              # (B*N, C)

        attn_out = jnp.zeros_like(x)
        for h in range(heads):                                       # static unroll
            # per-head weights pre-split in the wrapper -> no lane slivers / concat
            qh = jnp.dot(xn, wq_ref[d, h], preferred_element_type=jnp.float32)
            kh = jnp.dot(xn, wk_ref[d, h], preferred_element_type=jnp.float32)
            vh = jnp.dot(xn, wv_ref[d, h], preferred_element_type=jnp.float32)
            q3 = qh.reshape(batch, seq, head_dim)                    # leading-split only
            k3 = kh.reshape(batch, seq, head_dim)
            v3 = vh.reshape(batch, seq, head_dim)

            s = jnp.einsum('bnd,bmd->bnm', q3, k3,
                           preferred_element_type=jnp.float32) * scale
            s = s - jnp.max(s, axis=-1, keepdims=True)
            p = jnp.exp(s)
            p = p * pl.reciprocal(jnp.sum(p, axis=-1, keepdims=True), approx=True)
            oh = jnp.einsum('bnm,bmd->bnd', p, v3,
                            preferred_element_type=jnp.float32)      # (B, N, hd)

            # accumulate this head's projection contribution directly (no concat)
            attn_out = attn_out + jnp.dot(oh.reshape(bn, head_dim), wproj_ref[d, h],
                                          preferred_element_type=jnp.float32)
        x = x + attn_out + bproj_ref[d]                              # residual 1

        # ---- Residual(PreNorm(FeedForward)) ----
        xn2 = _layer_norm(x, ln2_g_ref[d], ln2_b_ref[d])
        h1 = jnp.dot(xn2, w1_ref[d], preferred_element_type=jnp.float32) + b1_ref[d]
        h1 = _gelu_exact(h1)                                         # torch GELU (erf)
        h2 = jnp.dot(h1, w2_ref[d], preferred_element_type=jnp.float32) + b2_ref[d]
        x = x + h2                                                   # residual 2

    o_ref[...] = x.astype(o_ref.dtype)


def _split_heads_cols(w, heads):
    # (C, C_out) with columns blocked by head -> (heads, C, head_dim)
    c_in, c_out = w.shape
    hd = c_out // heads
    return w.reshape(c_in, heads, hd).transpose(1, 0, 2)


def pack_params(params, heads=HEADS):
    depth = len(params)
    dim = params[0]['wqkv'].shape[0]
    hid = params[0]['w1'].shape[1]
    hd = dim // heads

    def stk(key):
        return jnp.stack([p[key] for p in params])

    wq = jnp.stack([_split_heads_cols(p['wqkv'][:, :dim], heads) for p in params])
    wk = jnp.stack([_split_heads_cols(p['wqkv'][:, dim:2 * dim], heads) for p in params])
    wv = jnp.stack([_split_heads_cols(p['wqkv'][:, 2 * dim:], heads) for p in params])
    wproj = jnp.stack([p['wproj'].reshape(heads, hd, dim) for p in params])

    return dict(
        ln1_g=stk('ln1_g').reshape(depth, 1, dim),
        ln1_b=stk('ln1_b').reshape(depth, 1, dim),
        wq=wq, wk=wk, wv=wv, wproj=wproj,
        bproj=stk('bproj').reshape(depth, 1, dim),
        ln2_g=stk('ln2_g').reshape(depth, 1, dim),
        ln2_b=stk('ln2_b').reshape(depth, 1, dim),
        w1=stk('w1'),
        b1=stk('b1').reshape(depth, 1, hid),
        w2=stk('w2'),
        b2=stk('b2').reshape(depth, 1, dim),
    )


def transformer_forward(x, params):
    B, N, C = x.shape
    pk = pack_params(params)
    x2 = x.reshape(B * N, C)

    args = [x2, pk['ln1_g'], pk['ln1_b'], pk['wq'], pk['wk'], pk['wv'],
            pk['wproj'], pk['bproj'], pk['ln2_g'], pk['ln2_b'],
            pk['w1'], pk['b1'], pk['w2'], pk['b2']]

    def full_spec(a):
        nd = a.ndim
        return pl.BlockSpec(a.shape, lambda i, _nd=nd: (0,) * _nd)

    out = pl.pallas_call(
        functools.partial(transformer_kernel, batch=B, seq=N),
        out_shape=jax.ShapeDtypeStruct((B * N, C), x.dtype),
        grid=(1,),                                   # single step: whole problem in VMEM
        in_specs=[full_spec(a) for a in args],
        out_specs=pl.BlockSpec((B * N, C), lambda i: (0, 0)),
        compiler_params=pltpu.CompilerParams(dimension_semantics=("arbitrary",)),
    )(*args)
    return out.reshape(B, N, C)


# ---------------- pure-JAX reference (for a correctness check) ----------------
def _ref_block(x, p):
    def ln(z, g, b):
        m = jnp.mean(z, -1, keepdims=True)
        v = jnp.mean((z - m) ** 2, -1, keepdims=True)
        return (z - m) * jax.lax.rsqrt(v + LN_EPS) * g + b

    B, N, C = x.shape
    xn = ln(x, p['ln1_g'], p['ln1_b'])
    qkv = xn @ p['wqkv']                                   # (B, N, 3C)
    qkv = qkv.reshape(B, N, 3, HEADS, HEAD_DIM).transpose(2, 0, 3, 1, 4)
    q, k, v = qkv[0], qkv[1], qkv[2]                       # (B, H, N, hd)
    attn = jnp.einsum('bhnd,bhmd->bhnm', q, k) * SCALE
    attn = jax.nn.softmax(attn, axis=-1)
    out = jnp.einsum('bhnm,bhmd->bhnd', attn, v)
    out = out.transpose(0, 2, 1, 3).reshape(B, N, C)
    x = x + (out @ p['wproj'] + p['bproj'])
    xn2 = ln(x, p['ln2_g'], p['ln2_b'])
    h = jax.nn.gelu(xn2 @ p['w1'] + p['b1'], approximate=False)
    return x + (h @ p['w2'] + p['b2'])


def _ref_forward(x, params):
    for p in params:
        x = _ref_block(x, p)
    return x


def init_params(key, depth=DEPTH, dim=DIM, mlp_dim=MLP_DIM):
    params = []
    for _ in range(depth):
        key, k0, k1, k2, k3 = jax.random.split(key, 5)
        params.append({
            'ln1_g': jnp.ones((dim,), jnp.float32),
            'ln1_b': jnp.zeros((dim,), jnp.float32),
            'wqkv': 0.02 * jax.random.normal(k0, (dim, 3 * dim), jnp.float32),
            'wproj': 0.02 * jax.random.normal(k1, (dim, dim), jnp.float32),
            'bproj': jnp.zeros((dim,), jnp.float32),
            'ln2_g': jnp.ones((dim,), jnp.float32),
            'ln2_b': jnp.zeros((dim,), jnp.float32),
            'w1': 0.02 * jax.random.normal(k2, (dim, mlp_dim), jnp.float32),
            'b1': jnp.zeros((mlp_dim,), jnp.float32),
            'w2': 0.02 * jax.random.normal(k3, (mlp_dim, dim), jnp.float32),
            'b2': jnp.zeros((dim,), jnp.float32),
        })
    return params


if __name__ == "__main__":
    key = jax.random.PRNGKey(0)
    kx, kp = jax.random.split(key)
    x = jax.random.normal(kx, (BATCH, SEQ, DIM), jnp.float32)
    params = init_params(kp)

    out = jax.block_until_ready(transformer_forward(x, params))
    ref = jax.block_until_ready(_ref_forward(x, params))

    assert out.shape == (BATCH, SEQ, DIM)
    # Tolerance accounts for approx EUP reciprocal in softmax + polynomial erf (<=1.5e-7).
    assert jnp.allclose(out, ref, rtol=2e-3, atol=2e-3), "mismatch vs JAX reference"
    print("KERNEL_OK")
</pallas_src>

<mosaic_0001>
module attributes {stable_mosaic.version = 11 : i64} {
  func.func @transformer_kernel(%arg0: i32, %arg1: memref<16x32xf32, #tpu.memory_space<vmem>>, %arg2: memref<2x1x32xf32, #tpu.memory_space<vmem>>, %arg3: memref<2x1x32xf32, #tpu.memory_space<vmem>>, %arg4: memref<2x4x32x8xf32, #tpu.memory_space<vmem>>, %arg5: memref<2x4x32x8xf32, #tpu.memory_space<vmem>>, %arg6: memref<2x4x32x8xf32, #tpu.memory_space<vmem>>, %arg7: memref<2x4x8x32xf32, #tpu.memory_space<vmem>>, %arg8: memref<2x1x32xf32, #tpu.memory_space<vmem>>, %arg9: memref<2x1x32xf32, #tpu.memory_space<vmem>>, %arg10: memref<2x1x32xf32, #tpu.memory_space<vmem>>, %arg11: memref<2x32x64xf32, #tpu.memory_space<vmem>>, %arg12: memref<2x1x64xf32, #tpu.memory_space<vmem>>, %arg13: memref<2x64x32xf32, #tpu.memory_space<vmem>>, %arg14: memref<2x1x32xf32, #tpu.memory_space<vmem>>, %arg15: memref<16x32xf32, #tpu.memory_space<vmem>>) attributes {dimension_semantics = [#tpu.dimension_semantics<arbitrary>], iteration_bounds = array<i64: 1>, scalar_prefetch = 0 : i64, scratch_operands = 0 : i64, tpu.core_type = #tpu.core_type<tc>, window_params = [{pipeline_mode = #tpu.pipeline_mode<synchronous>, transform_indices = @transform_0, window_bounds = array<i64: 16, 32>}, {pipeline_mode = #tpu.pipeline_mode<synchronous>, transform_indices = @transform_1, window_bounds = array<i64: 2, 1, 32>}, {pipeline_mode = #tpu.pipeline_mode<synchronous>, transform_indices = @transform_2, window_bounds = array<i64: 2, 1, 32>}, {pipeline_mode = #tpu.pipeline_mode<synchronous>, transform_indices = @transform_3, window_bounds = array<i64: 2, 4, 32, 8>}, {pipeline_mode = #tpu.pipeline_mode<synchronous>, transform_indices = @transform_4, window_bounds = array<i64: 2, 4, 32, 8>}, {pipeline_mode = #tpu.pipeline_mode<synchronous>, transform_indices = @transform_5, window_bounds = array<i64: 2, 4, 32, 8>}, {pipeline_mode = #tpu.pipeline_mode<synchronous>, transform_indices = @transform_6, window_bounds = array<i64: 2, 4, 8, 32>}, {pipeline_mode = #tpu.pipeline_mode<synchronous>, transform_indices = @transform_7, window_bounds = array<i64: 2, 1, 32>}, {pipeline_mode = #tpu.pipeline_mode<synchronous>, transform_indices = @transform_8, window_bounds = array<i64: 2, 1, 32>}, {pipeline_mode = #tpu.pipeline_mode<synchronous>, transform_indices = @transform_9, window_bounds = array<i64: 2, 1, 32>}, {pipeline_mode = #tpu.pipeline_mode<synchronous>, transform_indices = @transform_10, window_bounds = array<i64: 2, 32, 64>}, {pipeline_mode = #tpu.pipeline_mode<synchronous>, transform_indices = @transform_11, window_bounds = array<i64: 2, 1, 64>}, {pipeline_mode = #tpu.pipeline_mode<synchronous>, transform_indices = @transform_12, window_bounds = array<i64: 2, 64, 32>}, {pipeline_mode = #tpu.pipeline_mode<synchronous>, transform_indices = @transform_13, window_bounds = array<i64: 2, 1, 32>}, {pipeline_mode = #tpu.pipeline_mode<synchronous>, transform_indices = @transform_14, window_bounds = array<i64: 16, 32>}]} {
    %c0 = arith.constant 0 : index
    %c0_0 = arith.constant 0 : index
    %0 = vector.load %arg1[%c0, %c0_0] : memref<16x32xf32, #tpu.memory_space<vmem>>, vector<16x32xf32>
    %c0_1 = arith.constant 0 : index
    %c0_2 = arith.constant 0 : index
    %c0_3 = arith.constant 0 : index
    %1 = vector.load %arg2[%c0_1, %c0_2, %c0_3] : memref<2x1x32xf32, #tpu.memory_space<vmem>>, vector<1x1x32xf32>
    %2 = vector.shape_cast %1 : vector<1x1x32xf32> to vector<1x32xf32>
    %c0_4 = arith.constant 0 : index
    %c0_5 = arith.constant 0 : index
    %c0_6 = arith.constant 0 : index
    %3 = vector.load %arg3[%c0_4, %c0_5, %c0_6] : memref<2x1x32xf32, #tpu.memory_space<vmem>>, vector<1x1x32xf32>
    %4 = vector.shape_cast %3 : vector<1x1x32xf32> to vector<1x32xf32>
    %cst = arith.constant dense<0.000000e+00> : vector<16xf32>
    %5 = vector.multi_reduction <add>, %0, %cst [1] : vector<16x32xf32> to vector<16xf32>
    %6 = vector.shape_cast %5 : vector<16xf32> to vector<16x1xf32>
    %cst_7 = arith.constant 3.200000e+01 : f32
    %7 = vector.broadcast %cst_7 : f32 to vector<16x1xf32>
    %8 = arith.divf %6, %7 : vector<16x1xf32>
    %9 = vector.broadcast %8 : vector<16x1xf32> to vector<16x32xf32>
    %10 = arith.subf %0, %9 : vector<16x32xf32>
    %11 = arith.mulf %10, %10 : vector<16x32xf32>
    %cst_8 = arith.constant dense<0.000000e+00> : vector<16xf32>
    %12 = vector.multi_reduction <add>, %11, %cst_8 [1] : vector<16x32xf32> to vector<16xf32>
    %13 = vector.shape_cast %12 : vector<16xf32> to vector<16x1xf32>
    %cst_9 = arith.constant 3.200000e+01 : f32
    %14 = vector.broadcast %cst_9 : f32 to vector<16x1xf32>
    %15 = arith.divf %13, %14 : vector<16x1xf32>
    %16 = vector.broadcast %8 : vector<16x1xf32> to vector<16x32xf32>
    %17 = arith.subf %0, %16 : vector<16x32xf32>
    %cst_10 = arith.constant 9.99999974E-6 : f32
    %18 = vector.broadcast %cst_10 : f32 to vector<16x1xf32>
    %19 = arith.addf %15, %18 : vector<16x1xf32>
    %20 = math.rsqrt %19 : vector<16x1xf32>
    %21 = vector.broadcast %20 : vector<16x1xf32> to vector<16x32xf32>
    %22 = arith.mulf %17, %21 : vector<16x32xf32>
    %23 = vector.broadcast %2 : vector<1x32xf32> to vector<16x32xf32>
    %24 = arith.mulf %22, %23 : vector<16x32xf32>
    %25 = vector.broadcast %4 : vector<1x32xf32> to vector<16x32xf32>
    %26 = arith.addf %24, %25 : vector<16x32xf32>
    %cst_11 = arith.constant 0.000000e+00 : f32
    %27 = vector.broadcast %cst_11 : f32 to vector<16x32xf32>
    %c0_12 = arith.constant 0 : index
    %c0_13 = arith.constant 0 : index
    %c0_14 = arith.constant 0 : index
    %c0_15 = arith.constant 0 : index
    %28 = vector.load %arg4[%c0_12, %c0_13, %c0_14, %c0_15] : memref<2x4x32x8xf32, #tpu.memory_space<vmem>>, vector<1x1x32x8xf32>
    %29 = vector.shape_cast %28 : vector<1x1x32x8xf32> to vector<32x8xf32>
    %cst_16 = arith.constant dense<0.000000e+00> : vector<16x8xf32>
    %30 = tpu.matmul %26, %29, %cst_16 {dimension_numbers = #tpu.dot_dimension_numbers<[1], [0], [0], [1], [0, 0, 1, 1], [], []>} : vector<16x32xf32>, vector<32x8xf32>, vector<16x8xf32> -> vector<16x8xf32>
    %c0_17 = arith.constant 0 : index
    %c0_18 = arith.constant 0 : index
    %c0_19 = arith.constant 0 : index
    %c0_20 = arith.constant 0 : index
    %31 = vector.load %arg5[%c0_17, %c0_18, %c0_19, %c0_20] : memref<2x4x32x8xf32, #tpu.memory_space<vmem>>, vector<1x1x32x8xf32>
    %32 = vector.shape_cast %31 : vector<1x1x32x8xf32> to vector<32x8xf32>
    %cst_21 = arith.constant dense<0.000000e+00> : vector<16x8xf32>
    %33 = tpu.matmul %26, %32, %cst_21 {dimension_numbers = #tpu.dot_dimension_numbers<[1], [0], [0], [1], [0, 0, 1, 1], [], []>} : vector<16x32xf32>, vector<32x8xf32>, vector<16x8xf32> -> vector<16x8xf32>
    %c0_22 = arith.constant 0 : index
    %c0_23 = arith.constant 0 : index
    %c0_24 = arith.constant 0 : index
    %c0_25 = arith.constant 0 : index
    %34 = vector.load %arg6[%c0_22, %c0_23, %c0_24, %c0_25] : memref<2x4x32x8xf32, #tpu.memory_space<vmem>>, vector<1x1x32x8xf32>
    %35 = vector.shape_cast %34 : vector<1x1x32x8xf32> to vector<32x8xf32>
    %cst_26 = arith.constant dense<0.000000e+00> : vector<16x8xf32>
    %36 = tpu.matmul %26, %35, %cst_26 {dimension_numbers = #tpu.dot_dimension_numbers<[1], [0], [0], [1], [0, 0, 1, 1], [], []>} : vector<16x32xf32>, vector<32x8xf32>, vector<16x8xf32> -> vector<16x8xf32>
    %37 = vector.shape_cast %30 : vector<16x8xf32> to vector<2x8x8xf32>
    %38 = vector.shape_cast %33 : vector<16x8xf32> to vector<2x8x8xf32>
    %39 = vector.shape_cast %36 : vector<16x8xf32> to vector<2x8x8xf32>
    "tpu.trace_start"() <{level = 10 : i32, message = "bnd,bmd->bnm"}> : () -> ()
    %cst_27 = arith.constant dense<0.000000e+00> : vector<2x8x8xf32>
    %40 = tpu.matmul %37, %38, %cst_27 {dimension_numbers = #tpu.dot_dimension_numbers<[2], [2], [1], [1], [0, 0, 0, 1, 1, 1], [0], [0]>} : vector<2x8x8xf32>, vector<2x8x8xf32>, vector<2x8x8xf32> -> vector<2x8x8xf32>
    "tpu.trace_stop"() : () -> ()
    %cst_28 = arith.constant 0.353553385 : f32
    %41 = vector.broadcast %cst_28 : f32 to vector<2x8x8xf32>
    %42 = arith.mulf %40, %41 : vector<2x8x8xf32>
    %cst_29 = arith.constant dense<0xFF800000> : vector<2x8xf32>
    %43 = vector.multi_reduction <maximumf>, %42, %cst_29 [2] : vector<2x8x8xf32> to vector<2x8xf32>
    %44 = vector.shape_cast %43 : vector<2x8xf32> to vector<2x8x1xf32>
    %45 = vector.broadcast %44 : vector<2x8x1xf32> to vector<2x8x8xf32>
    %46 = arith.subf %42, %45 : vector<2x8x8xf32>
    %47 = math.exp %46 : vector<2x8x8xf32>
    %cst_30 = arith.constant dense<0.000000e+00> : vector<2x8xf32>
    %48 = vector.multi_reduction <add>, %47, %cst_30 [2] : vector<2x8x8xf32> to vector<2x8xf32>
    %49 = vector.shape_cast %48 : vector<2x8xf32> to vector<2x8x1xf32>
    %50 = tpu.reciprocal %49 {approx = true} : vector<2x8x1xf32> -> vector<2x8x1xf32>
    %51 = vector.broadcast %50 : vector<2x8x1xf32> to vector<2x8x8xf32>
    %52 = arith.mulf %47, %51 : vector<2x8x8xf32>
    "tpu.trace_start"() <{level = 10 : i32, message = "bnm,bmd->bnd"}> : () -> ()
    %cst_31 = arith.constant dense<0.000000e+00> : vector<2x8x8xf32>
    %53 = tpu.matmul %52, %39, %cst_31 {dimension_numbers = #tpu.dot_dimension_numbers<[2], [1], [1], [2], [0, 0, 0, 1, 1, 2], [0], [0]>} : vector<2x8x8xf32>, vector<2x8x8xf32>, vector<2x8x8xf32> -> vector<2x8x8xf32>
    "tpu.trace_stop"() : () -> ()
    %54 = vector.shape_cast %53 : vector<2x8x8xf32> to vector<16x8xf32>
    %c0_32 = arith.constant 0 : index
    %c0_33 = arith.constant 0 : index
    %c0_34 = arith.constant 0 : index
    %c0_35 = arith.constant 0 : index
    %55 = vector.load %arg7[%c0_32, %c0_33, %c0_34, %c0_35] : memref<2x4x8x32xf32, #tpu.memory_space<vmem>>, vector<1x1x8x32xf32>
    %56 = vector.shape_cast %55 : vector<1x1x8x32xf32> to vector<8x32xf32>
    %cst_36 = arith.constant dense<0.000000e+00> : vector<16x32xf32>
    %57 = tpu.matmul %54, %56, %cst_36 {dimension_numbers = #tpu.dot_dimension_numbers<[1], [0], [0], [1], [0, 0, 1, 1], [], []>} : vector<16x8xf32>, vector<8x32xf32>, vector<16x32xf32> -> vector<16x32xf32>
    %58 = arith.addf %27, %57 : vector<16x32xf32>
    %c0_37 = arith.constant 0 : index
    %c1 = arith.constant 1 : index
    %c0_38 = arith.constant 0 : index
    %c0_39 = arith.constant 0 : index
    %59 = vector.load %arg4[%c0_37, %c1, %c0_38, %c0_39] : memref<2x4x32x8xf32, #tpu.memory_space<vmem>>, vector<1x1x32x8xf32>
    %60 = vector.shape_cast %59 : vector<1x1x32x8xf32> to vector<32x8xf32>
    %cst_40 = arith.constant dense<0.000000e+00> : vector<16x8xf32>
    %61 = tpu.matmul %26, %60, %cst_40 {dimension_numbers = #tpu.dot_dimension_numbers<[1], [0], [0], [1], [0, 0, 1, 1], [], []>} : vector<16x32xf32>, vector<32x8xf32>, vector<16x8xf32> -> vector<16x8xf32>
    %c0_41 = arith.constant 0 : index
    %c1_42 = arith.constant 1 : index
    %c0_43 = arith.constant 0 : index
    %c0_44 = arith.constant 0 : index
    %62 = vector.load %arg5[%c0_41, %c1_42, %c0_43, %c0_44] : memref<2x4x32x8xf32, #tpu.memory_space<vmem>>, vector<1x1x32x8xf32>
    %63 = vector.shape_cast %62 : vector<1x1x32x8xf32> to vector<32x8xf32>
    %cst_45 = arith.constant dense<0.000000e+00> : vector<16x8xf32>
    %64 = tpu.matmul %26, %63, %cst_45 {dimension_numbers = #tpu.dot_dimension_numbers<[1], [0], [0], [1], [0, 0, 1, 1], [], []>} : vector<16x32xf32>, vector<32x8xf32>, vector<16x8xf32> -> vector<16x8xf32>
    %c0_46 = arith.constant 0 : index
    %c1_47 = arith.constant 1 : index
    %c0_48 = arith.constant 0 : index
    %c0_49 = arith.constant 0 : index
    %65 = vector.load %arg6[%c0_46, %c1_47, %c0_48, %c0_49] : memref<2x4x32x8xf32, #tpu.memory_space<vmem>>, vector<1x1x32x8xf32>
    %66 = vector.shape_cast %65 : vector<1x1x32x8xf32> to vector<32x8xf32>
    %cst_50 = arith.constant dense<0.000000e+00> : vector<16x8xf32>
    %67 = tpu.matmul %26, %66, %cst_50 {dimension_numbers = #tpu.dot_dimension_numbers<[1], [0], [0], [1], [0, 0, 1, 1], [], []>} : vector<16x32xf32>, vector<32x8xf32>, vector<16x8xf32> -> vector<16x8xf32>
    %68 = vector.shape_cast %61 : vector<16x8xf32> to vector<2x8x8xf32>
    %69 = vector.shape_cast %64 : vector<16x8xf32> to vector<2x8x8xf32>
    %70 = vector.shape_cast %67 : vector<16x8xf32> to vector<2x8x8xf32>
    "tpu.trace_start"() <{level = 10 : i32, message = "bnd,bmd->bnm"}> : () -> ()
    %cst_51 = arith.constant dense<0.000000e+00> : vector<2x8x8xf32>
    %71 = tpu.matmul %68, %69, %cst_51 {dimension_numbers = #tpu.dot_dimension_numbers<[2], [2], [1], [1], [0, 0, 0, 1, 1, 1], [0], [0]>} : vector<2x8x8xf32>, vector<2x8x8xf32>, vector<2x8x8xf32> -> vector<2x8x8xf32>
    "tpu.trace_stop"() : () -> ()
    %cst_52 = arith.constant 0.353553385 : f32
    %72 = vector.broadcast %cst_52 : f32 to vector<2x8x8xf32>
    %73 = arith.mulf %71, %72 : vector<2x8x8xf32>
    %cst_53 = arith.constant dense<0xFF800000> : vector<2x8xf32>
    %74 = vector.multi_reduction <maximumf>, %73, %cst_53 [2] : vector<2x8x8xf32> to vector<2x8xf32>
    %75 = vector.shape_cast %74 : vector<2x8xf32> to vector<2x8x1xf32>
    %76 = vector.broadcast %75 : vector<2x8x1xf32> to vector<2x8x8xf32>
    %77 = arith.subf %73, %76 : vector<2x8x8xf32>
    %78 = math.exp %77 : vector<2x8x8xf32>
    %cst_54 = arith.constant dense<0.000000e+00> : vector<2x8xf32>
    %79 = vector.multi_reduction <add>, %78, %cst_54 [2] : vector<2x8x8xf32> to vector<2x8xf32>
    %80 = vector.shape_cast %79 : vector<2x8xf32> to vector<2x8x1xf32>
    %81 = tpu.reciprocal %80 {approx = true} : vector<2x8x1xf32> -> vector<2x8x1xf32>
    %82 = vector.broadcast %81 : vector<2x8x1xf32> to vector<2x8x8xf32>
    %83 = arith.mulf %78, %82 : vector<2x8x8xf32>
    "tpu.trace_start"() <{level = 10 : i32, message = "bnm,bmd->bnd"}> : () -> ()
    %cst_55 = arith.constant dense<0.000000e+00> : vector<2x8x8xf32>
    %84 = tpu.matmul %83, %70, %cst_55 {dimension_numbers = #tpu.dot_dimension_numbers<[2], [1], [1], [2], [0, 0, 0, 1, 1, 2], [0], [0]>} : vector<2x8x8xf32>, vector<2x8x8xf32>, vector<2x8x8xf32> -> vector<2x8x8xf32>
    "tpu.trace_stop"() : () -> ()
    %85 = vector.shape_cast %84 : vector<2x8x8xf32> to vector<16x8xf32>
    %c0_56 = arith.constant 0 : index
    %c1_57 = arith.constant 1 : index
    %c0_58 = arith.constant 0 : index
    %c0_59 = arith.constant 0 : index
    %86 = vector.load %arg7[%c0_56, %c1_57, %c0_58, %c0_59] : memref<2x4x8x32xf32, #tpu.memory_space<vmem>>, vector<1x1x8x32xf32>
    %87 = vector.shape_cast %86 : vector<1x1x8x32xf32> to vector<8x32xf32>
    %cst_60 = arith.constant dense<0.000000e+00> : vector<16x32xf32>
    %88 = tpu.matmul %85, %87, %cst_60 {dimension_numbers = #tpu.dot_dimension_numbers<[1], [0], [0], [1], [0, 0, 1, 1], [], []>} : vector<16x8xf32>, vector<8x32xf32>, vector<16x32xf32> -> vector<16x32xf32>
    %89 = arith.addf %58, %88 : vector<16x32xf32>
    %c0_61 = arith.constant 0 : index
    %c2 = arith.constant 2 : index
    %c0_62 = arith.constant 0 : index
    %c0_63 = arith.constant 0 : index
    %90 = vector.load %arg4[%c0_61, %c2, %c0_62, %c0_63] : memref<2x4x32x8xf32, #tpu.memory_space<vmem>>, vector<1x1x32x8xf32>
    %91 = vector.shape_cast %90 : vector<1x1x32x8xf32> to vector<32x8xf32>
    %cst_64 = arith.constant dense<0.000000e+00> : vector<16x8xf32>
    %92 = tpu.matmul %26, %91, %cst_64 {dimension_numbers = #tpu.dot_dimension_numbers<[1], [0], [0], [1], [0, 0, 1, 1], [], []>} : vector<16x32xf32>, vector<32x8xf32>, vector<16x8xf32> -> vector<16x8xf32>
    %c0_65 = arith.constant 0 : index
    %c2_66 = arith.constant 2 : index
    %c0_67 = arith.constant 0 : index
    %c0_68 = arith.constant 0 : index
    %93 = vector.load %arg5[%c0_65, %c2_66, %c0_67, %c0_68] : memref<2x4x32x8xf32, #tpu.memory_space<vmem>>, vector<1x1x32x8xf32>
    %94 = vector.shape_cast %93 : vector<1x1x32x8xf32> to vector<32x8xf32>
    %cst_69 = arith.constant dense<0.000000e+00> : vector<16x8xf32>
    %95 = tpu.matmul %26, %94, %cst_69 {dimension_numbers = #tpu.dot_dimension_numbers<[1], [0], [0], [1], [0, 0, 1, 1], [], []>} : vector<16x32xf32>, vector<32x8xf32>, vector<16x8xf32> -> vector<16x8xf32>
    %c0_70 = arith.constant 0 : index
    %c2_71 = arith.constant 2 : index
    %c0_72 = arith.constant 0 : index
    %c0_73 = arith.constant 0 : index
    %96 = vector.load %arg6[%c0_70, %c2_71, %c0_72, %c0_73] : memref<2x4x32x8xf32, #tpu.memory_space<vmem>>, vector<1x1x32x8xf32>
    %97 = vector.shape_cast %96 : vector<1x1x32x8xf32> to vector<32x8xf32>
    %cst_74 = arith.constant dense<0.000000e+00> : vector<16x8xf32>
    %98 = tpu.matmul %26, %97, %cst_74 {dimension_numbers = #tpu.dot_dimension_numbers<[1], [0], [0], [1], [0, 0, 1, 1], [], []>} : vector<16x32xf32>, vector<32x8xf32>, vector<16x8xf32> -> vector<16x8xf32>
    %99 = vector.shape_cast %92 : vector<16x8xf32> to vector<2x8x8xf32>
    %100 = vector.shape_cast %95 : vector<16x8xf32> to vector<2x8x8xf32>
    %101 = vector.shape_cast %98 : vector<16x8xf32> to vector<2x8x8xf32>
    "tpu.trace_start"() <{level = 10 : i32, message = "bnd,bmd->bnm"}> : () -> ()
    %cst_75 = arith.constant dense<0.000000e+00> : vector<2x8x8xf32>
    %102 = tpu.matmul %99, %100, %cst_75 {dimension_numbers = #tpu.dot_dimension_numbers<[2], [2], [1], [1], [0, 0, 0, 1, 1, 1], [0], [0]>} : vector<2x8x8xf32>, vector<2x8x8xf32>, vector<2x8x8xf32> -> vector<2x8x8xf32>
    "tpu.trace_stop"() : () -> ()
    %cst_76 = arith.constant 0.353553385 : f32
    %103 = vector.broadcast %cst_76 : f32 to vector<2x8x8xf32>
    %104 = arith.mulf %102, %103 : vector<2x8x8xf32>
    %cst_77 = arith.constant dense<0xFF800000> : vector<2x8xf32>
    %105 = vector.multi_reduction <maximumf>, %104, %cst_77 [2] : vector<2x8x8xf32> to vector<2x8xf32>
    %106 = vector.shape_cast %105 : vector<2x8xf32> to vector<2x8x1xf32>
    %107 = vector.broadcast %106 : vector<2x8x1xf32> to vector<2x8x8xf32>
    %108 = arith.subf %104, %107 : vector<2x8x8xf32>
    %109 = math.exp %108 : vector<2x8x8xf32>
    %cst_78 = arith.constant dense<0.000000e+00> : vector<2x8xf32>
    %110 = vector.multi_reduction <add>, %109, %cst_78 [2] : vector<2x8x8xf32> to vector<2x8xf32>
    %111 = vector.shape_cast %110 : vector<2x8xf32> to vector<2x8x1xf32>
    %112 = tpu.reciprocal %111 {approx = true} : vector<2x8x1xf32> -> vector<2x8x1xf32>
    %113 = vector.broadcast %112 : vector<2x8x1xf32> to vector<2x8x8xf32>
    %114 = arith.mulf %109, %113 : vector<2x8x8xf32>
    "tpu.trace_start"() <{level = 10 : i32, message = "bnm,bmd->bnd"}> : () -> ()
    %cst_79 = arith.constant dense<0.000000e+00> : vector<2x8x8xf32>
    %115 = tpu.matmul %114, %101, %cst_79 {dimension_numbers = #tpu.dot_dimension_numbers<[2], [1], [1], [2], [0, 0, 0, 1, 1, 2], [0], [0]>} : vector<2x8x8xf32>, vector<2x8x8xf32>, vector<2x8x8xf32> -> vector<2x8x8xf32>
    "tpu.trace_stop"() : () -> ()
    %116 = vector.shape_cast %115 : vector<2x8x8xf32> to vector<16x8xf32>
    %c0_80 = arith.constant 0 : index
    %c2_81 = arith.constant 2 : index
    %c0_82 = arith.constant 0 : index
    %c0_83 = arith.constant 0 : index
    %117 = vector.load %arg7[%c0_80, %c2_81, %c0_82, %c0_83] : memref<2x4x8x32xf32, #tpu.memory_space<vmem>>, vector<1x1x8x32xf32>
    %118 = vector.shape_cast %117 : vector<1x1x8x32xf32> to vector<8x32xf32>
    %cst_84 = arith.constant dense<0.000000e+00> : vector<16x32xf32>
    %119 = tpu.matmul %116, %118, %cst_84 {dimension_numbers = #tpu.dot_dimension_numbers<[1], [0], [0], [1], [0, 0, 1, 1], [], []>} : vector<16x8xf32>, vector<8x32xf32>, vector<16x32xf32> -> vector<16x32xf32>
    %120 = arith.addf %89, %119 : vector<16x32xf32>
    %c0_85 = arith.constant 0 : index
    %c3 = arith.constant 3 : index
    %c0_86 = arith.constant 0 : index
    %c0_87 = arith.constant 0 : index
    %121 = vector.load %arg4[%c0_85, %c3, %c0_86, %c0_87] : memref<2x4x32x8xf32, #tpu.memory_space<vmem>>, vector<1x1x32x8xf32>
    %122 = vector.shape_cast %121 : vector<1x1x32x8xf32> to vector<32x8xf32>
    %cst_88 = arith.constant dense<0.000000e+00> : vector<16x8xf32>
    %123 = tpu.matmul %26, %122, %cst_88 {dimension_numbers = #tpu.dot_dimension_numbers<[1], [0], [0], [1], [0, 0, 1, 1], [], []>} : vector<16x32xf32>, vector<32x8xf32>, vector<16x8xf32> -> vector<16x8xf32>
    %c0_89 = arith.constant 0 : index
    %c3_90 = arith.constant 3 : index
    %c0_91 = arith.constant 0 : index
    %c0_92 = arith.constant 0 : index
    %124 = vector.load %arg5[%c0_89, %c3_90, %c0_91, %c0_92] : memref<2x4x32x8xf32, #tpu.memory_space<vmem>>, vector<1x1x32x8xf32>
    %125 = vector.shape_cast %124 : vector<1x1x32x8xf32> to vector<32x8xf32>
    %cst_93 = arith.constant dense<0.000000e+00> : vector<16x8xf32>
    %126 = tpu.matmul %26, %125, %cst_93 {dimension_numbers = #tpu.dot_dimension_numbers<[1], [0], [0], [1], [0, 0, 1, 1], [], []>} : vector<16x32xf32>, vector<32x8xf32>, vector<16x8xf32> -> vector<16x8xf32>
    %c0_94 = arith.constant 0 : index
    %c3_95 = arith.constant 3 : index
    %c0_96 = arith.constant 0 : index
    %c0_97 = arith.constant 0 : index
    %127 = vector.load %arg6[%c0_94, %c3_95, %c0_96, %c0_97] : memref<2x4x32x8xf32, #tpu.memory_space<vmem>>, vector<1x1x32x8xf32>
    %128 = vector.shape_cast %127 : vector<1x1x32x8xf32> to vector<32x8xf32>
    %cst_98 = arith.constant dense<0.000000e+00> : vector<16x8xf32>
    %129 = tpu.matmul %26, %128, %cst_98 {dimension_numbers = #tpu.dot_dimension_numbers<[1], [0], [0], [1], [0, 0, 1, 1], [], []>} : vector<16x32xf32>, vector<32x8xf32>, vector<16x8xf32> -> vector<16x8xf32>
    %130 = vector.shape_cast %123 : vector<16x8xf32> to vector<2x8x8xf32>
    %131 = vector.shape_cast %126 : vector<16x8xf32> to vector<2x8x8xf32>
    %132 = vector.shape_cast %129 : vector<16x8xf32> to vector<2x8x8xf32>
    "tpu.trace_start"() <{level = 10 : i32, message = "bnd,bmd->bnm"}> : () -> ()
    %cst_99 = arith.constant dense<0.000000e+00> : vector<2x8x8xf32>
    %133 = tpu.matmul %130, %131, %cst_99 {dimension_numbers = #tpu.dot_dimension_numbers<[2], [2], [1], [1], [0, 0, 0, 1, 1, 1], [0], [0]>} : vector<2x8x8xf32>, vector<2x8x8xf32>, vector<2x8x8xf32> -> vector<2x8x8xf32>
    "tpu.trace_stop"() : () -> ()
    %cst_100 = arith.constant 0.353553385 : f32
    %134 = vector.broadcast %cst_100 : f32 to vector<2x8x8xf32>
    %135 = arith.mulf %133, %134 : vector<2x8x8xf32>
    %cst_101 = arith.constant dense<0xFF800000> : vector<2x8xf32>
    %136 = vector.multi_reduction <maximumf>, %135, %cst_101 [2] : vector<2x8x8xf32> to vector<2x8xf32>
    %137 = vector.shape_cast %136 : vector<2x8xf32> to vector<2x8x1xf32>
    %138 = vector.broadcast %137 : vector<2x8x1xf32> to vector<2x8x8xf32>
    %139 = arith.subf %135, %138 : vector<2x8x8xf32>
    %140 = math.exp %139 : vector<2x8x8xf32>
    %cst_102 = arith.constant dense<0.000000e+00> : vector<2x8xf32>
    %141 = vector.multi_reduction <add>, %140, %cst_102 [2] : vector<2x8x8xf32> to vector<2x8xf32>
    %142 = vector.shape_cast %141 : vector<2x8xf32> to vector<2x8x1xf32>
    %143 = tpu.reciprocal %142 {approx = true} : vector<2x8x1xf32> -> vector<2x8x1xf32>
    %144 = vector.broadcast %143 : vector<2x8x1xf32> to vector<2x8x8xf32>
    %145 = arith.mulf %140, %144 : vector<2x8x8xf32>
    "tpu.trace_start"() <{level = 10 : i32, message = "bnm,bmd->bnd"}> : () -> ()
    %cst_103 = arith.constant dense<0.000000e+00> : vector<2x8x8xf32>
    %146 = tpu.matmul %145, %132, %cst_103 {dimension_numbers = #tpu.dot_dimension_numbers<[2], [1], [1], [2], [0, 0, 0, 1, 1, 2], [0], [0]>} : vector<2x8x8xf32>, vector<2x8x8xf32>, vector<2x8x8xf32> -> vector<2x8x8xf32>
    "tpu.trace_stop"() : () -> ()
    %147 = vector.shape_cast %146 : vector<2x8x8xf32> to vector<16x8xf32>
    %c0_104 = arith.constant 0 : index
    %c3_105 = arith.constant 3 : index
    %c0_106 = arith.constant 0 : index
    %c0_107 = arith.constant 0 : index
    %148 = vector.load %arg7[%c0_104, %c3_105, %c0_106, %c0_107] : memref<2x4x8x32xf32, #tpu.memory_space<vmem>>, vector<1x1x8x32xf32>
    %149 = vector.shape_cast %148 : vector<1x1x8x32xf32> to vector<8x32xf32>
    %cst_108 = arith.constant dense<0.000000e+00> : vector<16x32xf32>
    %150 = tpu.matmul %147, %149, %cst_108 {dimension_numbers = #tpu.dot_dimension_numbers<[1], [0], [0], [1], [0, 0, 1, 1], [], []>} : vector<16x8xf32>, vector<8x32xf32>, vector<16x32xf32> -> vector<16x32xf32>
    %151 = arith.addf %120, %150 : vector<16x32xf32>
    %152 = arith.addf %0, %151 : vector<16x32xf32>
    %c0_109 = arith.constant 0 : index
    %c0_110 = arith.constant 0 : index
    %c0_111 = arith.constant 0 : index
    %153 = vector.load %arg8[%c0_109, %c0_110, %c0_111] : memref<2x1x32xf32, #tpu.memory_space<vmem>>, vector<1x1x32xf32>
    %154 = vector.shape_cast %153 : vector<1x1x32xf32> to vector<1x32xf32>
    %155 = vector.broadcast %154 : vector<1x32xf32> to vector<16x32xf32>
    %156 = arith.addf %152, %155 : vector<16x32xf32>
    %c0_112 = arith.constant 0 : index
    %c0_113 = arith.constant 0 : index
    %c0_114 = arith.constant 0 : index
    %157 = vector.load %arg9[%c0_112, %c0_113, %c0_114] : memref<2x1x32xf32, #tpu.memory_space<vmem>>, vector<1x1x32xf32>
    %158 = vector.shape_cast %157 : vector<1x1x32xf32> to vector<1x32xf32>
    %c0_115 = arith.constant 0 : index
    %c0_116 = arith.constant 0 : index
    %c0_117 = arith.constant 0 : index
    %159 = vector.load %arg10[%c0_115, %c0_116, %c0_117] : memref<2x1x32xf32, #tpu.memory_space<vmem>>, vector<1x1x32xf32>
    %160 = vector.shape_cast %159 : vector<1x1x32xf32> to vector<1x32xf32>
    %cst_118 = arith.constant dense<0.000000e+00> : vector<16xf32>
    %161 = vector.multi_reduction <add>, %156, %cst_118 [1] : vector<16x32xf32> to vector<16xf32>
    %162 = vector.shape_cast %161 : vector<16xf32> to vector<16x1xf32>
    %cst_119 = arith.constant 3.200000e+01 : f32
    %163 = vector.broadcast %cst_119 : f32 to vector<16x1xf32>
    %164 = arith.divf %162, %163 : vector<16x1xf32>
    %165 = vector.broadcast %164 : vector<16x1xf32> to vector<16x32xf32>
    %166 = arith.subf %156, %165 : vector<16x32xf32>
    %167 = arith.mulf %166, %166 : vector<16x32xf32>
    %cst_120 = arith.constant dense<0.000000e+00> : vector<16xf32>
    %168 = vector.multi_reduction <add>, %167, %cst_120 [1] : vector<16x32xf32> to vector<16xf32>
    %169 = vector.shape_cast %168 : vector<16xf32> to vector<16x1xf32>
    %cst_121 = arith.constant 3.200000e+01 : f32
    %170 = vector.broadcast %cst_121 : f32 to vector<16x1xf32>
    %171 = arith.divf %169, %170 : vector<16x1xf32>
    %172 = vector.broadcast %164 : vector<16x1xf32> to vector<16x32xf32>
    %173 = arith.subf %156, %172 : vector<16x32xf32>
    %cst_122 = arith.constant 9.99999974E-6 : f32
    %174 = vector.broadcast %cst_122 : f32 to vector<16x1xf32>
    %175 = arith.addf %171, %174 : vector<16x1xf32>
    %176 = math.rsqrt %175 : vector<16x1xf32>
    %177 = vector.broadcast %176 : vector<16x1xf32> to vector<16x32xf32>
    %178 = arith.mulf %173, %177 : vector<16x32xf32>
    %179 = vector.broadcast %158 : vector<1x32xf32> to vector<16x32xf32>
    %180 = arith.mulf %178, %179 : vector<16x32xf32>
    %181 = vector.broadcast %160 : vector<1x32xf32> to vector<16x32xf32>
    %182 = arith.addf %180, %181 : vector<16x32xf32>
    %c0_123 = arith.constant 0 : index
    %c0_124 = arith.constant 0 : index
    %c0_125 = arith.constant 0 : index
    %183 = vector.load %arg11[%c0_123, %c0_124, %c0_125] : memref<2x32x64xf32, #tpu.memory_space<vmem>>, vector<1x32x64xf32>
    %184 = vector.shape_cast %183 : vector<1x32x64xf32> to vector<32x64xf32>
    %cst_126 = arith.constant dense<0.000000e+00> : vector<16x64xf32>
    %185 = tpu.matmul %182, %184, %cst_126 {dimension_numbers = #tpu.dot_dimension_numbers<[1], [0], [0], [1], [0, 0, 1, 1], [], []>} : vector<16x32xf32>, vector<32x64xf32>, vector<16x64xf32> -> vector<16x64xf32>
    %c0_127 = arith.constant 0 : index
    %c0_128 = arith.constant 0 : index
    %c0_129 = arith.constant 0 : index
    %186 = vector.load %arg12[%c0_127, %c0_128, %c0_129] : memref<2x1x64xf32, #tpu.memory_space<vmem>>, vector<1x1x64xf32>
    %187 = vector.shape_cast %186 : vector<1x1x64xf32> to vector<1x64xf32>
    %188 = vector.broadcast %187 : vector<1x64xf32> to vector<16x64xf32>
    %189 = arith.addf %185, %188 : vector<16x64xf32>
    %cst_130 = arith.constant 5.000000e-01 : f32
    %190 = vector.broadcast %cst_130 : f32 to vector<16x64xf32>
    %191 = arith.mulf %190, %189 : vector<16x64xf32>
    %cst_131 = arith.constant 0.707106769 : f32
    %192 = vector.broadcast %cst_131 : f32 to vector<16x64xf32>
    %193 = arith.mulf %189, %192 : vector<16x64xf32>
    %194 = math.absf %193 : vector<16x64xf32>
    %cst_132 = arith.constant 0.327591091 : f32
    %195 = vector.broadcast %cst_132 : f32 to vector<16x64xf32>
    %196 = arith.mulf %195, %194 : vector<16x64xf32>
    %cst_133 = arith.constant 1.000000e+00 : f32
    %197 = vector.broadcast %cst_133 : f32 to vector<16x64xf32>
    %198 = arith.addf %197, %196 : vector<16x64xf32>
    %cst_134 = arith.constant 1.000000e+00 : f32
    %199 = vector.broadcast %cst_134 : f32 to vector<16x64xf32>
    %200 = arith.divf %199, %198 : vector<16x64xf32>
    %cst_135 = arith.constant 1.06140542 : f32
    %201 = vector.broadcast %cst_135 : f32 to vector<16x64xf32>
    %202 = arith.mulf %201, %200 : vector<16x64xf32>
    %cst_136 = arith.constant -1.45315206 : f32
    %203 = vector.broadcast %cst_136 : f32 to vector<16x64xf32>
    %204 = arith.addf %202, %203 : vector<16x64xf32>
    %205 = arith.mulf %204, %200 : vector<16x64xf32>
    %cst_137 = arith.constant 1.42141378 : f32
    %206 = vector.broadcast %cst_137 : f32 to vector<16x64xf32>
    %207 = arith.addf %205, %206 : vector<16x64xf32>
    %208 = arith.mulf %207, %200 : vector<16x64xf32>
    %cst_138 = arith.constant -0.284496725 : f32
    %209 = vector.broadcast %cst_138 : f32 to vector<16x64xf32>
    %210 = arith.addf %208, %209 : vector<16x64xf32>
    %211 = arith.mulf %210, %200 : vector<16x64xf32>
    %cst_139 = arith.constant 0.254829586 : f32
    %212 = vector.broadcast %cst_139 : f32 to vector<16x64xf32>
    %213 = arith.addf %211, %212 : vector<16x64xf32>
    %214 = arith.mulf %213, %200 : vector<16x64xf32>
    %cst_140 = arith.constant 0.000000e+00 : f32
    %215 = vector.broadcast %cst_140 : f32 to vector<16x64xf32>
    %216 = arith.subf %215, %194 : vector<16x64xf32>
    %217 = arith.mulf %216, %194 : vector<16x64xf32>
    %218 = math.exp %217 : vector<16x64xf32>
    %219 = arith.mulf %214, %218 : vector<16x64xf32>
    %cst_141 = arith.constant 1.000000e+00 : f32
    %220 = vector.broadcast %cst_141 : f32 to vector<16x64xf32>
    %221 = arith.subf %220, %219 : vector<16x64xf32>
    %cst_142 = arith.constant 0.000000e+00 : f32
    %222 = vector.broadcast %cst_142 : f32 to vector<16x64xf32>
    %223 = arith.cmpf oge, %193, %222 : vector<16x64xf32>
    %cst_143 = arith.constant 0.000000e+00 : f32
    %224 = vector.broadcast %cst_143 : f32 to vector<16x64xf32>
    %225 = arith.subf %224, %221 : vector<16x64xf32>
    %226 = arith.select %223, %221, %225 : vector<16x64xi1>, vector<16x64xf32>
    %cst_144 = arith.constant 1.000000e+00 : f32
    %227 = vector.broadcast %cst_144 : f32 to vector<16x64xf32>
    %228 = arith.addf %227, %226 : vector<16x64xf32>
    %229 = arith.mulf %191, %228 : vector<16x64xf32>
    %c0_145 = arith.constant 0 : index
    %c0_146 = arith.constant 0 : index
    %c0_147 = arith.constant 0 : index
    %230 = vector.load %arg13[%c0_145, %c0_146, %c0_147] : memref<2x64x32xf32, #tpu.memory_space<vmem>>, vector<1x64x32xf32>
    %231 = vector.shape_cast %230 : vector<1x64x32xf32> to vector<64x32xf32>
    %cst_148 = arith.constant dense<0.000000e+00> : vector<16x32xf32>
    %232 = tpu.matmul %229, %231, %cst_148 {dimension_numbers = #tpu.dot_dimension_numbers<[1], [0], [0], [1], [0, 0, 1, 1], [], []>} : vector<16x64xf32>, vector<64x32xf32>, vector<16x32xf32> -> vector<16x32xf32>
    %c0_149 = arith.constant 0 : index
    %c0_150 = arith.constant 0 : index
    %c0_151 = arith.constant 0 : index
    %233 = vector.load %arg14[%c0_149, %c0_150, %c0_151] : memref<2x1x32xf32, #tpu.memory_space<vmem>>, vector<1x1x32xf32>
    %234 = vector.shape_cast %233 : vector<1x1x32xf32> to vector<1x32xf32>
    %235 = vector.broadcast %234 : vector<1x32xf32> to vector<16x32xf32>
    %236 = arith.addf %232, %235 : vector<16x32xf32>
    %237 = arith.addf %156, %236 : vector<16x32xf32>
    %c1_152 = arith.constant 1 : index
    %c0_153 = arith.constant 0 : index
    %c0_154 = arith.constant 0 : index
    %238 = vector.load %arg2[%c1_152, %c0_153, %c0_154] : memref<2x1x32xf32, #tpu.memory_space<vmem>>, vector<1x1x32xf32>
    %239 = vector.shape_cast %238 : vector<1x1x32xf32> to vector<1x32xf32>
    %c1_155 = arith.constant 1 : index
    %c0_156 = arith.constant 0 : index
    %c0_157 = arith.constant 0 : index
    %240 = vector.load %arg3[%c1_155, %c0_156, %c0_157] : memref<2x1x32xf32, #tpu.memory_space<vmem>>, vector<1x1x32xf32>
    %241 = vector.shape_cast %240 : vector<1x1x32xf32> to vector<1x32xf32>
    %cst_158 = arith.constant dense<0.000000e+00> : vector<16xf32>
    %242 = vector.multi_reduction <add>, %237, %cst_158 [1] : vector<16x32xf32> to vector<16xf32>
    %243 = vector.shape_cast %242 : vector<16xf32> to vector<16x1xf32>
    %cst_159 = arith.constant 3.200000e+01 : f32
    %244 = vector.broadcast %cst_159 : f32 to vector<16x1xf32>
    %245 = arith.divf %243, %244 : vector<16x1xf32>
    %246 = vector.broadcast %245 : vector<16x1xf32> to vector<16x32xf32>
    %247 = arith.subf %237, %246 : vector<16x32xf32>
    %248 = arith.mulf %247, %247 : vector<16x32xf32>
    %cst_160 = arith.constant dense<0.000000e+00> : vector<16xf32>
    %249 = vector.multi_reduction <add>, %248, %cst_160 [1] : vector<16x32xf32> to vector<16xf32>
    %250 = vector.shape_cast %249 : vector<16xf32> to vector<16x1xf32>
    %cst_161 = arith.constant 3.200000e+01 : f32
    %251 = vector.broadcast %cst_161 : f32 to vector<16x1xf32>
    %252 = arith.divf %250, %251 : vector<16x1xf32>
    %253 = vector.broadcast %245 : vector<16x1xf32> to vector<16x32xf32>
    %254 = arith.subf %237, %253 : vector<16x32xf32>
    %cst_162 = arith.constant 9.99999974E-6 : f32
    %255 = vector.broadcast %cst_162 : f32 to vector<16x1xf32>
    %256 = arith.addf %252, %255 : vector<16x1xf32>
    %257 = math.rsqrt %256 : vector<16x1xf32>
    %258 = vector.broadcast %257 : vector<16x1xf32> to vector<16x32xf32>
    %259 = arith.mulf %254, %258 : vector<16x32xf32>
    %260 = vector.broadcast %239 : vector<1x32xf32> to vector<16x32xf32>
    %261 = arith.mulf %259, %260 : vector<16x32xf32>
    %262 = vector.broadcast %241 : vector<1x32xf32> to vector<16x32xf32>
    %263 = arith.addf %261, %262 : vector<16x32xf32>
    %cst_163 = arith.constant 0.000000e+00 : f32
    %264 = vector.broadcast %cst_163 : f32 to vector<16x32xf32>
    %c1_164 = arith.constant 1 : index
    %c0_165 = arith.constant 0 : index
    %c0_166 = arith.constant 0 : index
    %c0_167 = arith.constant 0 : index
    %265 = vector.load %arg4[%c1_164, %c0_165, %c0_166, %c0_167] : memref<2x4x32x8xf32, #tpu.memory_space<vmem>>, vector<1x1x32x8xf32>
    %266 = vector.shape_cast %265 : vector<1x1x32x8xf32> to vector<32x8xf32>
    %cst_168 = arith.constant dense<0.000000e+00> : vector<16x8xf32>
    %267 = tpu.matmul %263, %266, %cst_168 {dimension_numbers = #tpu.dot_dimension_numbers<[1], [0], [0], [1], [0, 0, 1, 1], [], []>} : vector<16x32xf32>, vector<32x8xf32>, vector<16x8xf32> -> vector<16x8xf32>
    %c1_169 = arith.constant 1 : index
    %c0_170 = arith.constant 0 : index
    %c0_171 = arith.constant 0 : index
    %c0_172 = arith.constant 0 : index
    %268 = vector.load %arg5[%c1_169, %c0_170, %c0_171, %c0_172] : memref<2x4x32x8xf32, #tpu.memory_space<vmem>>, vector<1x1x32x8xf32>
    %269 = vector.shape_cast %268 : vector<1x1x32x8xf32> to vector<32x8xf32>
    %cst_173 = arith.constant dense<0.000000e+00> : vector<16x8xf32>
    %270 = tpu.matmul %263, %269, %cst_173 {dimension_numbers = #tpu.dot_dimension_numbers<[1], [0], [0], [1], [0, 0, 1, 1], [], []>} : vector<16x32xf32>, vector<32x8xf32>, vector<16x8xf32> -> vector<16x8xf32>
    %c1_174 = arith.constant 1 : index
    %c0_175 = arith.constant 0 : index
    %c0_176 = arith.constant 0 : index
    %c0_177 = arith.constant 0 : index
    %271 = vector.load %arg6[%c1_174, %c0_175, %c0_176, %c0_177] : memref<2x4x32x8xf32, #tpu.memory_space<vmem>>, vector<1x1x32x8xf32>
    %272 = vector.shape_cast %271 : vector<1x1x32x8xf32> to vector<32x8xf32>
    %cst_178 = arith.constant dense<0.000000e+00> : vector<16x8xf32>
    %273 = tpu.matmul %263, %272, %cst_178 {dimension_numbers = #tpu.dot_dimension_numbers<[1], [0], [0], [1], [0, 0, 1, 1], [], []>} : vector<16x32xf32>, vector<32x8xf32>, vector<16x8xf32> -> vector<16x8xf32>
    %274 = vector.shape_cast %267 : vector<16x8xf32> to vector<2x8x8xf32>
    %275 = vector.shape_cast %270 : vector<16x8xf32> to vector<2x8x8xf32>
    %276 = vector.shape_cast %273 : vector<16x8xf32> to vector<2x8x8xf32>
    "tpu.trace_start"() <{level = 10 : i32, message = "bnd,bmd->bnm"}> : () -> ()
    %cst_179 = arith.constant dense<0.000000e+00> : vector<2x8x8xf32>
    %277 = tpu.matmul %274, %275, %cst_179 {dimension_numbers = #tpu.dot_dimension_numbers<[2], [2], [1], [1], [0, 0, 0, 1, 1, 1], [0], [0]>} : vector<2x8x8xf32>, vector<2x8x8xf32>, vector<2x8x8xf32> -> vector<2x8x8xf32>
    "tpu.trace_stop"() : () -> ()
    %cst_180 = arith.constant 0.353553385 : f32
    %278 = vector.broadcast %cst_180 : f32 to vector<2x8x8xf32>
    %279 = arith.mulf %277, %278 : vector<2x8x8xf32>
    %cst_181 = arith.constant dense<0xFF800000> : vector<2x8xf32>
    %280 = vector.multi_reduction <maximumf>, %279, %cst_181 [2] : vector<2x8x8xf32> to vector<2x8xf32>
    %281 = vector.shape_cast %280 : vector<2x8xf32> to vector<2x8x1xf32>
    %282 = vector.broadcast %281 : vector<2x8x1xf32> to vector<2x8x8xf32>
    %283 = arith.subf %279, %282 : vector<2x8x8xf32>
    %284 = math.exp %283 : vector<2x8x8xf32>
    %cst_182 = arith.constant dense<0.000000e+00> : vector<2x8xf32>
    %285 = vector.multi_reduction <add>, %284, %cst_182 [2] : vector<2x8x8xf32> to vector<2x8xf32>
    %286 = vector.shape_cast %285 : vector<2x8xf32> to vector<2x8x1xf32>
    %287 = tpu.reciprocal %286 {approx = true} : vector<2x8x1xf32> -> vector<2x8x1xf32>
    %288 = vector.broadcast %287 : vector<2x8x1xf32> to vector<2x8x8xf32>
    %289 = arith.mulf %284, %288 : vector<2x8x8xf32>
    "tpu.trace_start"() <{level = 10 : i32, message = "bnm,bmd->bnd"}> : () -> ()
    %cst_183 = arith.constant dense<0.000000e+00> : vector<2x8x8xf32>
    %290 = tpu.matmul %289, %276, %cst_183 {dimension_numbers = #tpu.dot_dimension_numbers<[2], [1], [1], [2], [0, 0, 0, 1, 1, 2], [0], [0]>} : vector<2x8x8xf32>, vector<2x8x8xf32>, vector<2x8x8xf32> -> vector<2x8x8xf32>
    "tpu.trace_stop"() : () -> ()
    %291 = vector.shape_cast %290 : vector<2x8x8xf32> to vector<16x8xf32>
    %c1_184 = arith.constant 1 : index
    %c0_185 = arith.constant 0 : index
    %c0_186 = arith.constant 0 : index
    %c0_187 = arith.constant 0 : index
    %292 = vector.load %arg7[%c1_184, %c0_185, %c0_186, %c0_187] : memref<2x4x8x32xf32, #tpu.memory_space<vmem>>, vector<1x1x8x32xf32>
    %293 = vector.shape_cast %292 : vector<1x1x8x32xf32> to vector<8x32xf32>
    %cst_188 = arith.constant dense<0.000000e+00> : vector<16x32xf32>
    %294 = tpu.matmul %291, %293, %cst_188 {dimension_numbers = #tpu.dot_dimension_numbers<[1], [0], [0], [1], [0, 0, 1, 1], [], []>} : vector<16x8xf32>, vector<8x32xf32>, vector<16x32xf32> -> vector<16x32xf32>
    %295 = arith.addf %264, %294 : vector<16x32xf32>
    %c1_189 = arith.constant 1 : index
    %c1_190 = arith.constant 1 : index
    %c0_191 = arith.constant 0 : index
    %c0_192 = arith.constant 0 : index
    %296 = vector.load %arg4[%c1_189, %c1_190, %c0_191, %c0_192] : memref<2x4x32x8xf32, #tpu.memory_space<vmem>>, vector<1x1x32x8xf32>
    %297 = vector.shape_cast %296 : vector<1x1x32x8xf32> to vector<32x8xf32>
    %cst_193 = arith.constant dense<0.000000e+00> : vector<16x8xf32>
    %298 = tpu.matmul %263, %297, %cst_193 {dimension_numbers = #tpu.dot_dimension_numbers<[1], [0], [0], [1], [0, 0, 1, 1], [], []>} : vector<16x32xf32>, vector<32x8xf32>, vector<16x8xf32> -> vector<16x8xf32>
    %c1_194 = arith.constant 1 : index
    %c1_195 = arith.constant 1 : index
    %c0_196 = arith.constant 0 : index
    %c0_197 = arith.constant 0 : index
    %299 = vector.load %arg5[%c1_194, %c1_195, %c0_196, %c0_197] : memref<2x4x32x8xf32, #tpu.memory_space<vmem>>, vector<1x1x32x8xf32>
    %300 = vector.shape_cast %299 : vector<1x1x32x8xf32> to vector<32x8xf32>
    %cst_198 = arith.constant dense<0.000000e+00> : vector<16x8xf32>
    %301 = tpu.matmul %263, %300, %cst_198 {dimension_numbers = #tpu.dot_dimension_numbers<[1], [0], [0], [1], [0, 0, 1, 1], [], []>} : vector<16x32xf32>, vector<32x8xf32>, vector<16x8xf32> -> vector<16x8xf32>
    %c1_199 = arith.constant 1 : index
    %c1_200 = arith.constant 1 : index
    %c0_201 = arith.constant 0 : index
    %c0_202 = arith.constant 0 : index
    %302 = vector.load %arg6[%c1_199, %c1_200, %c0_201, %c0_202] : memref<2x4x32x8xf32, #tpu.memory_space<vmem>>, vector<1x1x32x8xf32>
    %303 = vector.shape_cast %302 : vector<1x1x32x8xf32> to vector<32x8xf32>
    %cst_203 = arith.constant dense<0.000000e+00> : vector<16x8xf32>
    %304 = tpu.matmul %263, %303, %cst_203 {dimension_numbers = #tpu.dot_dimension_numbers<[1], [0], [0], [1], [0, 0, 1, 1], [], []>} : vector<16x32xf32>, vector<32x8xf32>, vector<16x8xf32> -> vector<16x8xf32>
    %305 = vector.shape_cast %298 : vector<16x8xf32> to vector<2x8x8xf32>
    %306 = vector.shape_cast %301 : vector<16x8xf32> to vector<2x8x8xf32>
    %307 = vector.shape_cast %304 : vector<16x8xf32> to vector<2x8x8xf32>
    "tpu.trace_start"() <{level = 10 : i32, message = "bnd,bmd->bnm"}> : () -> ()
    %cst_204 = arith.constant dense<0.000000e+00> : vector<2x8x8xf32>
    %308 = tpu.matmul %305, %306, %cst_204 {dimension_numbers = #tpu.dot_dimension_numbers<[2], [2], [1], [1], [0, 0, 0, 1, 1, 1], [0], [0]>} : vector<2x8x8xf32>, vector<2x8x8xf32>, vector<2x8x8xf32> -> vector<2x8x8xf32>
    "tpu.trace_stop"() : () -> ()
    %cst_205 = arith.constant 0.353553385 : f32
    %309 = vector.broadcast %cst_205 : f32 to vector<2x8x8xf32>
    %310 = arith.mulf %308, %309 : vector<2x8x8xf32>
    %cst_206 = arith.constant dense<0xFF800000> : vector<2x8xf32>
    %311 = vector.multi_reduction <maximumf>, %310, %cst_206 [2] : vector<2x8x8xf32> to vector<2x8xf32>
    %312 = vector.shape_cast %311 : vector<2x8xf32> to vector<2x8x1xf32>
    %313 = vector.broadcast %312 : vector<2x8x1xf32> to vector<2x8x8xf32>
    %314 = arith.subf %310, %313 : vector<2x8x8xf32>
    %315 = math.exp %314 : vector<2x8x8xf32>
    %cst_207 = arith.constant dense<0.000000e+00> : vector<2x8xf32>
    %316 = vector.multi_reduction <add>, %315, %cst_207 [2] : vector<2x8x8xf32> to vector<2x8xf32>
    %317 = vector.shape_cast %316 : vector<2x8xf32> to vector<2x8x1xf32>
    %318 = tpu.reciprocal %317 {approx = true} : vector<2x8x1xf32> -> vector<2x8x1xf32>
    %319 = vector.broadcast %318 : vector<2x8x1xf32> to vector<2x8x8xf32>
    %320 = arith.mulf %315, %319 : vector<2x8x8xf32>
    "tpu.trace_start"() <{level = 10 : i32, message = "bnm,bmd->bnd"}> : () -> ()
    %cst_208 = arith.constant dense<0.000000e+00> : vector<2x8x8xf32>
    %321 = tpu.matmul %320, %307, %cst_208 {dimension_numbers = #tpu.dot_dimension_numbers<[2], [1], [1], [2], [0, 0, 0, 1, 1, 2], [0], [0]>} : vector<2x8x8xf32>, vector<2x8x8xf32>, vector<2x8x8xf32> -> vector<2x8x8xf32>
    "tpu.trace_stop"() : () -> ()
    %322 = vector.shape_cast %321 : vector<2x8x8xf32> to vector<16x8xf32>
    %c1_209 = arith.constant 1 : index
    %c1_210 = arith.constant 1 : index
    %c0_211 = arith.constant 0 : index
    %c0_212 = arith.constant 0 : index
    %323 = vector.load %arg7[%c1_209, %c1_210, %c0_211, %c0_212] : memref<2x4x8x32xf32, #tpu.memory_space<vmem>>, vector<1x1x8x32xf32>
    %324 = vector.shape_cast %323 : vector<1x1x8x32xf32> to vector<8x32xf32>
    %cst_213 = arith.constant dense<0.000000e+00> : vector<16x32xf32>
    %325 = tpu.matmul %322, %324, %cst_213 {dimension_numbers = #tpu.dot_dimension_numbers<[1], [0], [0], [1], [0, 0, 1, 1], [], []>} : vector<16x8xf32>, vector<8x32xf32>, vector<16x32xf32> -> vector<16x32xf32>
    %326 = arith.addf %295, %325 : vector<16x32xf32>
    %c1_214 = arith.constant 1 : index
    %c2_215 = arith.constant 2 : index
    %c0_216 = arith.constant 0 : index
    %c0_217 = arith.constant 0 : index
    %327 = vector.load %arg4[%c1_214, %c2_215, %c0_216, %c0_217] : memref<2x4x32x8xf32, #tpu.memory_space<vmem>>, vector<1x1x32x8xf32>
    %328 = vector.shape_cast %327 : vector<1x1x32x8xf32> to vector<32x8xf32>
    %cst_218 = arith.constant dense<0.000000e+00> : vector<16x8xf32>
    %329 = tpu.matmul %263, %328, %cst_218 {dimension_numbers = #tpu.dot_dimension_numbers<[1], [0], [0], [1], [0, 0, 1, 1], [], []>} : vector<16x32xf32>, vector<32x8xf32>, vector<16x8xf32> -> vector<16x8xf32>
    %c1_219 = arith.constant 1 : index
    %c2_220 = arith.constant 2 : index
    %c0_221 = arith.constant 0 : index
    %c0_222 = arith.constant 0 : index
    %330 = vector.load %arg5[%c1_219, %c2_220, %c0_221, %c0_222] : memref<2x4x32x8xf32, #tpu.memory_space<vmem>>, vector<1x1x32x8xf32>
    %331 = vector.shape_cast %330 : vector<1x1x32x8xf32> to vector<32x8xf32>
    %cst_223 = arith.constant dense<0.000000e+00> : vector<16x8xf32>
    %332 = tpu.matmul %263, %331, %cst_223 {dimension_numbers = #tpu.dot_dimension_numbers<[1], [0], [0], [1], [0, 0, 1, 1], [], []>} : vector<16x32xf32>, vector<32x8xf32>, vector<16x8xf32> -> vector<16x8xf32>
    %c1_224 = arith.constant 1 : index
    %c2_225 = arith.constant 2 : index
    %c0_226 = arith.constant 0 : index
    %c0_227 = arith.constant 0 : index
    %333 = vector.load %arg6[%c1_224, %c2_225, %c0_226, %c0_227] : memref<2x4x32x8xf32, #tpu.memory_space<vmem>>, vector<1x1x32x8xf32>
    %334 = vector.shape_cast %333 : vector<1x1x32x8xf32> to vector<32x8xf32>
    %cst_228 = arith.constant dense<0.000000e+00> : vector<16x8xf32>
    %335 = tpu.matmul %263, %334, %cst_228 {dimension_numbers = #tpu.dot_dimension_numbers<[1], [0], [0], [1], [0, 0, 1, 1], [], []>} : vector<16x32xf32>, vector<32x8xf32>, vector<16x8xf32> -> vector<16x8xf32>
    %336 = vector.shape_cast %329 : vector<16x8xf32> to vector<2x8x8xf32>
    %337 = vector.shape_cast %332 : vector<16x8xf32> to vector<2x8x8xf32>
    %338 = vector.shape_cast %335 : vector<16x8xf32> to vector<2x8x8xf32>
    "tpu.trace_start"() <{level = 10 : i32, message = "bnd,bmd->bnm"}> : () -> ()
    %cst_229 = arith.constant dense<0.000000e+00> : vector<2x8x8xf32>
    %339 = tpu.matmul %336, %337, %cst_229 {dimension_numbers = #tpu.dot_dimension_numbers<[2], [2], [1], [1], [0, 0, 0, 1, 1, 1], [0], [0]>} : vector<2x8x8xf32>, vector<2x8x8xf32>, vector<2x8x8xf32> -> vector<2x8x8xf32>
    "tpu.trace_stop"() : () -> ()
    %cst_230 = arith.constant 0.353553385 : f32
    %340 = vector.broadcast %cst_230 : f32 to vector<2x8x8xf32>
    %341 = arith.mulf %339, %340 : vector<2x8x8xf32>
    %cst_231 = arith.constant dense<0xFF800000> : vector<2x8xf32>
    %342 = vector.multi_reduction <maximumf>, %341, %cst_231 [2] : vector<2x8x8xf32> to vector<2x8xf32>
    %343 = vector.shape_cast %342 : vector<2x8xf32> to vector<2x8x1xf32>
    %344 = vector.broadcast %343 : vector<2x8x1xf32> to vector<2x8x8xf32>
    %345 = arith.subf %341, %344 : vector<2x8x8xf32>
    %346 = math.exp %345 : vector<2x8x8xf32>
    %cst_232 = arith.constant dense<0.000000e+00> : vector<2x8xf32>
    %347 = vector.multi_reduction <add>, %346, %cst_232 [2] : vector<2x8x8xf32> to vector<2x8xf32>
    %348 = vector.shape_cast %347 : vector<2x8xf32> to vector<2x8x1xf32>
    %349 = tpu.reciprocal %348 {approx = true} : vector<2x8x1xf32> -> vector<2x8x1xf32>
    %350 = vector.broadcast %349 : vector<2x8x1xf32> to vector<2x8x8xf32>
    %351 = arith.mulf %346, %350 : vector<2x8x8xf32>
    "tpu.trace_start"() <{level = 10 : i32, message = "bnm,bmd->bnd"}> : () -> ()
    %cst_233 = arith.constant dense<0.000000e+00> : vector<2x8x8xf32>
    %352 = tpu.matmul %351, %338, %cst_233 {dimension_numbers = #tpu.dot_dimension_numbers<[2], [1], [1], [2], [0, 0, 0, 1, 1, 2], [0], [0]>} : vector<2x8x8xf32>, vector<2x8x8xf32>, vector<2x8x8xf32> -> vector<2x8x8xf32>
    "tpu.trace_stop"() : () -> ()
    %353 = vector.shape_cast %352 : vector<2x8x8xf32> to vector<16x8xf32>
    %c1_234 = arith.constant 1 : index
    %c2_235 = arith.constant 2 : index
    %c0_236 = arith.constant 0 : index
    %c0_237 = arith.constant 0 : index
    %354 = vector.load %arg7[%c1_234, %c2_235, %c0_236, %c0_237] : memref<2x4x8x32xf32, #tpu.memory_space<vmem>>, vector<1x1x8x32xf32>
    %355 = vector.shape_cast %354 : vector<1x1x8x32xf32> to vector<8x32xf32>
    %cst_238 = arith.constant dense<0.000000e+00> : vector<16x32xf32>
    %356 = tpu.matmul %353, %355, %cst_238 {dimension_numbers = #tpu.dot_dimension_numbers<[1], [0], [0], [1], [0, 0, 1, 1], [], []>} : vector<16x8xf32>, vector<8x32xf32>, vector<16x32xf32> -> vector<16x32xf32>
    %357 = arith.addf %326, %356 : vector<16x32xf32>
    %c1_239 = arith.constant 1 : index
    %c3_240 = arith.constant 3 : index
    %c0_241 = arith.constant 0 : index
    %c0_242 = arith.constant 0 : index
    %358 = vector.load %arg4[%c1_239, %c3_240, %c0_241, %c0_242] : memref<2x4x32x8xf32, #tpu.memory_space<vmem>>, vector<1x1x32x8xf32>
    %359 = vector.shape_cast %358 : vector<1x1x32x8xf32> to vector<32x8xf32>
    %cst_243 = arith.constant dense<0.000000e+00> : vector<16x8xf32>
    %360 = tpu.matmul %263, %359, %cst_243 {dimension_numbers = #tpu.dot_dimension_numbers<[1], [0], [0], [1], [0, 0, 1, 1], [], []>} : vector<16x32xf32>, vector<32x8xf32>, vector<16x8xf32> -> vector<16x8xf32>
    %c1_244 = arith.constant 1 : index
    %c3_245 = arith.constant 3 : index
    %c0_246 = arith.constant 0 : index
    %c0_247 = arith.constant 0 : index
    %361 = vector.load %arg5[%c1_244, %c3_245, %c0_246, %c0_247] : memref<2x4x32x8xf32, #tpu.memory_space<vmem>>, vector<1x1x32x8xf32>
    %362 = vector.shape_cast %361 : vector<1x1x32x8xf32> to vector<32x8xf32>
    %cst_248 = arith.constant dense<0.000000e+00> : vector<16x8xf32>
    %363 = tpu.matmul %263, %362, %cst_248 {dimension_numbers = #tpu.dot_dimension_numbers<[1], [0], [0], [1], [0, 0, 1, 1], [], []>} : vector<16x32xf32>, vector<32x8xf32>, vector<16x8xf32> -> vector<16x8xf32>
    %c1_249 = arith.constant 1 : index
    %c3_250 = arith.constant 3 : index
    %c0_251 = arith.constant 0 : index
    %c0_252 = arith.constant 0 : index
    %364 = vector.load %arg6[%c1_249, %c3_250, %c0_251, %c0_252] : memref<2x4x32x8xf32, #tpu.memory_space<vmem>>, vector<1x1x32x8xf32>
    %365 = vector.shape_cast %364 : vector<1x1x32x8xf32> to vector<32x8xf32>
    %cst_253 = arith.constant dense<0.000000e+00> : vector<16x8xf32>
    %366 = tpu.matmul %263, %365, %cst_253 {dimension_numbers = #tpu.dot_dimension_numbers<[1], [0], [0], [1], [0, 0, 1, 1], [], []>} : vector<16x32xf32>, vector<32x8xf32>, vector<16x8xf32> -> vector<16x8xf32>
    %367 = vector.shape_cast %360 : vector<16x8xf32> to vector<2x8x8xf32>
    %368 = vector.shape_cast %363 : vector<16x8xf32> to vector<2x8x8xf32>
    %369 = vector.shape_cast %366 : vector<16x8xf32> to vector<2x8x8xf32>
    "tpu.trace_start"() <{level = 10 : i32, message = "bnd,bmd->bnm"}> : () -> ()
    %cst_254 = arith.constant dense<0.000000e+00> : vector<2x8x8xf32>
    %370 = tpu.matmul %367, %368, %cst_254 {dimension_numbers = #tpu.dot_dimension_numbers<[2], [2], [1], [1], [0, 0, 0, 1, 1, 1], [0], [0]>} : vector<2x8x8xf32>, vector<2x8x8xf32>, vector<2x8x8xf32> -> vector<2x8x8xf32>
    "tpu.trace_stop"() : () -> ()
    %cst_255 = arith.constant 0.353553385 : f32
    %371 = vector.broadcast %cst_255 : f32 to vector<2x8x8xf32>
    %372 = arith.mulf %370, %371 : vector<2x8x8xf32>
    %cst_256 = arith.constant dense<0xFF800000> : vector<2x8xf32>
    %373 = vector.multi_reduction <maximumf>, %372, %cst_256 [2] : vector<2x8x8xf32> to vector<2x8xf32>
    %374 = vector.shape_cast %373 : vector<2x8xf32> to vector<2x8x1xf32>
    %375 = vector.broadcast %374 : vector<2x8x1xf32> to vector<2x8x8xf32>
    %376 = arith.subf %372, %375 : vector<2x8x8xf32>
    %377 = math.exp %376 : vector<2x8x8xf32>
    %cst_257 = arith.constant dense<0.000000e+00> : vector<2x8xf32>
    %378 = vector.multi_reduction <add>, %377, %cst_257 [2] : vector<2x8x8xf32> to vector<2x8xf32>
    %379 = vector.shape_cast %378 : vector<2x8xf32> to vector<2x8x1xf32>
    %380 = tpu.reciprocal %379 {approx = true} : vector<2x8x1xf32> -> vector<2x8x1xf32>
    %381 = vector.broadcast %380 : vector<2x8x1xf32> to vector<2x8x8xf32>
    %382 = arith.mulf %377, %381 : vector<2x8x8xf32>
    "tpu.trace_start"() <{level = 10 : i32, message = "bnm,bmd->bnd"}> : () -> ()
    %cst_258 = arith.constant dense<0.000000e+00> : vector<2x8x8xf32>
    %383 = tpu.matmul %382, %369, %cst_258 {dimension_numbers = #tpu.dot_dimension_numbers<[2], [1], [1], [2], [0, 0, 0, 1, 1, 2], [0], [0]>} : vector<2x8x8xf32>, vector<2x8x8xf32>, vector<2x8x8xf32> -> vector<2x8x8xf32>
    "tpu.trace_stop"() : () -> ()
    %384 = vector.shape_cast %383 : vector<2x8x8xf32> to vector<16x8xf32>
    %c1_259 = arith.constant 1 : index
    %c3_260 = arith.constant 3 : index
    %c0_261 = arith.constant 0 : index
    %c0_262 = arith.constant 0 : index
    %385 = vector.load %arg7[%c1_259, %c3_260, %c0_261, %c0_262] : memref<2x4x8x32xf32, #tpu.memory_space<vmem>>, vector<1x1x8x32xf32>
    %386 = vector.shape_cast %385 : vector<1x1x8x32xf32> to vector<8x32xf32>
    %cst_263 = arith.constant dense<0.000000e+00> : vector<16x32xf32>
    %387 = tpu.matmul %384, %386, %cst_263 {dimension_numbers = #tpu.dot_dimension_numbers<[1], [0], [0], [1], [0, 0, 1, 1], [], []>} : vector<16x8xf32>, vector<8x32xf32>, vector<16x32xf32> -> vector<16x32xf32>
    %388 = arith.addf %357, %387 : vector<16x32xf32>
    %389 = arith.addf %237, %388 : vector<16x32xf32>
    %c1_264 = arith.constant 1 : index
    %c0_265 = arith.constant 0 : index
    %c0_266 = arith.constant 0 : index
    %390 = vector.load %arg8[%c1_264, %c0_265, %c0_266] : memref<2x1x32xf32, #tpu.memory_space<vmem>>, vector<1x1x32xf32>
    %391 = vector.shape_cast %390 : vector<1x1x32xf32> to vector<1x32xf32>
    %392 = vector.broadcast %391 : vector<1x32xf32> to vector<16x32xf32>
    %393 = arith.addf %389, %392 : vector<16x32xf32>
    %c1_267 = arith.constant 1 : index
    %c0_268 = arith.constant 0 : index
    %c0_269 = arith.constant 0 : index
    %394 = vector.load %arg9[%c1_267, %c0_268, %c0_269] : memref<2x1x32xf32, #tpu.memory_space<vmem>>, vector<1x1x32xf32>
    %395 = vector.shape_cast %394 : vector<1x1x32xf32> to vector<1x32xf32>
    %c1_270 = arith.constant 1 : index
    %c0_271 = arith.constant 0 : index
    %c0_272 = arith.constant 0 : index
    %396 = vector.load %arg10[%c1_270, %c0_271, %c0_272] : memref<2x1x32xf32, #tpu.memory_space<vmem>>, vector<1x1x32xf32>
    %397 = vector.shape_cast %396 : vector<1x1x32xf32> to vector<1x32xf32>
    %cst_273 = arith.constant dense<0.000000e+00> : vector<16xf32>
    %398 = vector.multi_reduction <add>, %393, %cst_273 [1] : vector<16x32xf32> to vector<16xf32>
    %399 = vector.shape_cast %398 : vector<16xf32> to vector<16x1xf32>
    %cst_274 = arith.constant 3.200000e+01 : f32
    %400 = vector.broadcast %cst_274 : f32 to vector<16x1xf32>
    %401 = arith.divf %399, %400 : vector<16x1xf32>
    %402 = vector.broadcast %401 : vector<16x1xf32> to vector<16x32xf32>
    %403 = arith.subf %393, %402 : vector<16x32xf32>
    %404 = arith.mulf %403, %403 : vector<16x32xf32>
    %cst_275 = arith.constant dense<0.000000e+00> : vector<16xf32>
    %405 = vector.multi_reduction <add>, %404, %cst_275 [1] : vector<16x32xf32> to vector<16xf32>
    %406 = vector.shape_cast %405 : vector<16xf32> to vector<16x1xf32>
    %cst_276 = arith.constant 3.200000e+01 : f32
    %407 = vector.broadcast %cst_276 : f32 to vector<16x1xf32>
    %408 = arith.divf %406, %407 : vector<16x1xf32>
    %409 = vector.broadcast %401 : vector<16x1xf32> to vector<16x32xf32>
    %410 = arith.subf %393, %409 : vector<16x32xf32>
    %cst_277 = arith.constant 9.99999974E-6 : f32
    %411 = vector.broadcast %cst_277 : f32 to vector<16x1xf32>
    %412 = arith.addf %408, %411 : vector<16x1xf32>
    %413 = math.rsqrt %412 : vector<16x1xf32>
    %414 = vector.broadcast %413 : vector<16x1xf32> to vector<16x32xf32>
    %415 = arith.mulf %410, %414 : vector<16x32xf32>
    %416 = vector.broadcast %395 : vector<1x32xf32> to vector<16x32xf32>
    %417 = arith.mulf %415, %416 : vector<16x32xf32>
    %418 = vector.broadcast %397 : vector<1x32xf32> to vector<16x32xf32>
    %419 = arith.addf %417, %418 : vector<16x32xf32>
    %c1_278 = arith.constant 1 : index
    %c0_279 = arith.constant 0 : index
    %c0_280 = arith.constant 0 : index
    %420 = vector.load %arg11[%c1_278, %c0_279, %c0_280] : memref<2x32x64xf32, #tpu.memory_space<vmem>>, vector<1x32x64xf32>
    %421 = vector.shape_cast %420 : vector<1x32x64xf32> to vector<32x64xf32>
    %cst_281 = arith.constant dense<0.000000e+00> : vector<16x64xf32>
    %422 = tpu.matmul %419, %421, %cst_281 {dimension_numbers = #tpu.dot_dimension_numbers<[1], [0], [0], [1], [0, 0, 1, 1], [], []>} : vector<16x32xf32>, vector<32x64xf32>, vector<16x64xf32> -> vector<16x64xf32>
    %c1_282 = arith.constant 1 : index
    %c0_283 = arith.constant 0 : index
    %c0_284 = arith.constant 0 : index
    %423 = vector.load %arg12[%c1_282, %c0_283, %c0_284] : memref<2x1x64xf32, #tpu.memory_space<vmem>>, vector<1x1x64xf32>
    %424 = vector.shape_cast %423 : vector<1x1x64xf32> to vector<1x64xf32>
    %425 = vector.broadcast %424 : vector<1x64xf32> to vector<16x64xf32>
    %426 = arith.addf %422, %425 : vector<16x64xf32>
    %cst_285 = arith.constant 5.000000e-01 : f32
    %427 = vector.broadcast %cst_285 : f32 to vector<16x64xf32>
    %428 = arith.mulf %427, %426 : vector<16x64xf32>
    %cst_286 = arith.constant 0.707106769 : f32
    %429 = vector.broadcast %cst_286 : f32 to vector<16x64xf32>
    %430 = arith.mulf %426, %429 : vector<16x64xf32>
    %431 = math.absf %430 : vector<16x64xf32>
    %cst_287 = arith.constant 0.327591091 : f32
    %432 = vector.broadcast %cst_287 : f32 to vector<16x64xf32>
    %433 = arith.mulf %432, %431 : vector<16x64xf32>
    %cst_288 = arith.constant 1.000000e+00 : f32
    %434 = vector.broadcast %cst_288 : f32 to vector<16x64xf32>
    %435 = arith.addf %434, %433 : vector<16x64xf32>
    %cst_289 = arith.constant 1.000000e+00 : f32
    %436 = vector.broadcast %cst_289 : f32 to vector<16x64xf32>
    %437 = arith.divf %436, %435 : vector<16x64xf32>
    %cst_290 = arith.constant 1.06140542 : f32
    %438 = vector.broadcast %cst_290 : f32 to vector<16x64xf32>
    %439 = arith.mulf %438, %437 : vector<16x64xf32>
    %cst_291 = arith.constant -1.45315206 : f32
    %440 = vector.broadcast %cst_291 : f32 to vector<16x64xf32>
    %441 = arith.addf %439, %440 : vector<16x64xf32>
    %442 = arith.mulf %441, %437 : vector<16x64xf32>
    %cst_292 = arith.constant 1.42141378 : f32
    %443 = vector.broadcast %cst_292 : f32 to vector<16x64xf32>
    %444 = arith.addf %442, %443 : vector<16x64xf32>
    %445 = arith.mulf %444, %437 : vector<16x64xf32>
    %cst_293 = arith.constant -0.284496725 : f32
    %446 = vector.broadcast %cst_293 : f32 to vector<16x64xf32>
    %447 = arith.addf %445, %446 : vector<16x64xf32>
    %448 = arith.mulf %447, %437 : vector<16x64xf32>
    %cst_294 = arith.constant 0.254829586 : f32
    %449 = vector.broadcast %cst_294 : f32 to vector<16x64xf32>
    %450 = arith.addf %448, %449 : vector<16x64xf32>
    %451 = arith.mulf %450, %437 : vector<16x64xf32>
    %cst_295 = arith.constant 0.000000e+00 : f32
    %452 = vector.broadcast %cst_295 : f32 to vector<16x64xf32>
    %453 = arith.subf %452, %431 : vector<16x64xf32>
    %454 = arith.mulf %453, %431 : vector<16x64xf32>
    %455 = math.exp %454 : vector<16x64xf32>
    %456 = arith.mulf %451, %455 : vector<16x64xf32>
    %cst_296 = arith.constant 1.000000e+00 : f32
    %457 = vector.broadcast %cst_296 : f32 to vector<16x64xf32>
    %458 = arith.subf %457, %456 : vector<16x64xf32>
    %cst_297 = arith.constant 0.000000e+00 : f32
    %459 = vector.broadcast %cst_297 : f32 to vector<16x64xf32>
    %460 = arith.cmpf oge, %430, %459 : vector<16x64xf32>
    %cst_298 = arith.constant 0.000000e+00 : f32
    %461 = vector.broadcast %cst_298 : f32 to vector<16x64xf32>
    %462 = arith.subf %461, %458 : vector<16x64xf32>
    %463 = arith.select %460, %458, %462 : vector<16x64xi1>, vector<16x64xf32>
    %cst_299 = arith.constant 1.000000e+00 : f32
    %464 = vector.broadcast %cst_299 : f32 to vector<16x64xf32>
    %465 = arith.addf %464, %463 : vector<16x64xf32>
    %466 = arith.mulf %428, %465 : vector<16x64xf32>
    %c1_300 = arith.constant 1 : index
    %c0_301 = arith.constant 0 : index
    %c0_302 = arith.constant 0 : index
    %467 = vector.load %arg13[%c1_300, %c0_301, %c0_302] : memref<2x64x32xf32, #tpu.memory_space<vmem>>, vector<1x64x32xf32>
    %468 = vector.shape_cast %467 : vector<1x64x32xf32> to vector<64x32xf32>
    %cst_303 = arith.constant dense<0.000000e+00> : vector<16x32xf32>
    %469 = tpu.matmul %466, %468, %cst_303 {dimension_numbers = #tpu.dot_dimension_numbers<[1], [0], [0], [1], [0, 0, 1, 1], [], []>} : vector<16x64xf32>, vector<64x32xf32>, vector<16x32xf32> -> vector<16x32xf32>
    %c1_304 = arith.constant 1 : index
    %c0_305 = arith.constant 0 : index
    %c0_306 = arith.constant 0 : index
    %470 = vector.load %arg14[%c1_304, %c0_305, %c0_306] : memref<2x1x32xf32, #tpu.memory_space<vmem>>, vector<1x1x32xf32>
    %471 = vector.shape_cast %470 : vector<1x1x32xf32> to vector<1x32xf32>
    %472 = vector.broadcast %471 : vector<1x32xf32> to vector<16x32xf32>
    %473 = arith.addf %469, %472 : vector<16x32xf32>
    %474 = arith.addf %393, %473 : vector<16x32xf32>
    %c0_307 = arith.constant 0 : index
    %c0_308 = arith.constant 0 : index
    %475 = vector.load %arg15[%c0_307, %c0_308] : memref<16x32xf32, #tpu.memory_space<vmem>>, vector<16x32xf32>
    tpu.vector_store %arg15[%c0_307, %c0_308], %474 {strides = array<i32>} : memref<16x32xf32, #tpu.memory_space<vmem>>, vector<16x32xf32>,
    return
  }
  func.func @transform_0(%arg0: i32) -> (i32, i32) {
    %c0_i32 = arith.constant 0 : i32
    %c0_i32_0 = arith.constant 0 : i32
    %c0_i32_1 = arith.constant 0 : i32
    return %c0_i32, %c0_i32_0 : i32, i32
  }
  func.func @transform_1(%arg0: i32) -> (i32, i32, i32) {
    %c0_i32 = arith.constant 0 : i32
    %c0_i32_0 = arith.constant 0 : i32
    %c0_i32_1 = arith.constant 0 : i32
    %c0_i32_2 = arith.constant 0 : i32
    return %c0_i32, %c0_i32_0, %c0_i32_1 : i32, i32, i32
  }
  func.func @transform_2(%arg0: i32) -> (i32, i32, i32) {
    %c0_i32 = arith.constant 0 : i32
    %c0_i32_0 = arith.constant 0 : i32
    %c0_i32_1 = arith.constant 0 : i32
    %c0_i32_2 = arith.constant 0 : i32
    return %c0_i32, %c0_i32_0, %c0_i32_1 : i32, i32, i32
  }
  func.func @transform_3(%arg0: i32) -> (i32, i32, i32, i32) {
    %c0_i32 = arith.constant 0 : i32
    %c0_i32_0 = arith.constant 0 : i32
    %c0_i32_1 = arith.constant 0 : i32
    %c0_i32_2 = arith.constant 0 : i32
    %c0_i32_3 = arith.constant 0 : i32
    return %c0_i32, %c0_i32_0, %c0_i32_1, %c0_i32_2 : i32, i32, i32, i32
  }
  func.func @transform_4(%arg0: i32) -> (i32, i32, i32, i32) {
    %c0_i32 = arith.constant 0 : i32
    %c0_i32_0 = arith.constant 0 : i32
    %c0_i32_1 = arith.constant 0 : i32
    %c0_i32_2 = arith.constant 0 : i32
    %c0_i32_3 = arith.constant 0 : i32
    return %c0_i32, %c0_i32_0, %c0_i32_1, %c0_i32_2 : i32, i32, i32, i32
  }
  func.func @transform_5(%arg0: i32) -> (i32, i32, i32, i32) {
    %c0_i32 = arith.constant 0 : i32
    %c0_i32_0 = arith.constant 0 : i32
    %c0_i32_1 = arith.constant 0 : i32
    %c0_i32_2 = arith.constant 0 : i32
    %c0_i32_3 = arith.constant 0 : i32
    return %c0_i32, %c0_i32_0, %c0_i32_1, %c0_i32_2 : i32, i32, i32, i32
  }
  func.func @transform_6(%arg0: i32) -> (i32, i32, i32, i32) {
    %c0_i32 = arith.constant 0 : i32
    %c0_i32_0 = arith.constant 0 : i32
    %c0_i32_1 = arith.constant 0 : i32
    %c0_i32_2 = arith.constant 0 : i32
    %c0_i32_3 = arith.constant 0 : i32
    return %c0_i32, %c0_i32_0, %c0_i32_1, %c0_i32_2 : i32, i32, i32, i32
  }
  func.func @transform_7(%arg0: i32) -> (i32, i32, i32) {
    %c0_i32 = arith.constant 0 : i32
    %c0_i32_0 = arith.constant 0 : i32
    %c0_i32_1 = arith.constant 0 : i32
    %c0_i32_2 = arith.constant 0 : i32
    return %c0_i32, %c0_i32_0, %c0_i32_1 : i32, i32, i32
  }
  func.func @transform_8(%arg0: i32) -> (i32, i32, i32) {
    %c0_i32 = arith.constant 0 : i32
    %c0_i32_0 = arith.constant 0 : i32
    %c0_i32_1 = arith.constant 0 : i32
    %c0_i32_2 = arith.constant 0 : i32
    return %c0_i32, %c0_i32_0, %c0_i32_1 : i32, i32, i32
  }
  func.func @transform_9(%arg0: i32) -> (i32, i32, i32) {
    %c0_i32 = arith.constant 0 : i32
    %c0_i32_0 = arith.constant 0 : i32
    %c0_i32_1 = arith.constant 0 : i32
    %c0_i32_2 = arith.constant 0 : i32
    return %c0_i32, %c0_i32_0, %c0_i32_1 : i32, i32, i32
  }
  func.func @transform_10(%arg0: i32) -> (i32, i32, i32) {
    %c0_i32 = arith.constant 0 : i32
    %c0_i32_0 = arith.constant 0 : i32
    %c0_i32_1 = arith.constant 0 : i32
    %c0_i32_2 = arith.constant 0 : i32
    return %c0_i32, %c0_i32_0, %c0_i32_1 : i32, i32, i32
  }
  func.func @transform_11(%arg0: i32) -> (i32, i32, i32) {
    %c0_i32 = arith.constant 0 : i32
    %c0_i32_0 = arith.constant 0 : i32
    %c0_i32_1 = arith.constant 0 : i32
    %c0_i32_2 = arith.constant 0 : i32
    return %c0_i32, %c0_i32_0, %c0_i32_1 : i32, i32, i32
  }
  func.func @transform_12(%arg0: i32) -> (i32, i32, i32) {
    %c0_i32 = arith.constant 0 : i32
    %c0_i32_0 = arith.constant 0 : i32
    %c0_i32_1 = arith.constant 0 : i32
    %c0_i32_2 = arith.constant 0 : i32
    return %c0_i32, %c0_i32_0, %c0_i32_1 : i32, i32, i32
  }
  func.func @transform_13(%arg0: i32) -> (i32, i32, i32) {
    %c0_i32 = arith.constant 0 : i32
    %c0_i32_0 = arith.constant 0 : i32
    %c0_i32_1 = arith.constant 0 : i32
    %c0_i32_2 = arith.constant 0 : i32
    return %c0_i32, %c0_i32_0, %c0_i32_1 : i32, i32, i32
  }
  func.func @transform_14(%arg0: i32) -> (i32, i32) {
    %c0_i32 = arith.constant 0 : i32
    %c0_i32_0 = arith.constant 0 : i32
    %c0_i32_1 = arith.constant 0 : i32
    return %c0_i32, %c0_i32_0 : i32, i32
  }
}

</mosaic_0001>

<bundles_post_ra>
// kernel: tpu_custom_call.1
= control target key start
LH: loop header
LB: loop body
LE: loop exit
PB: predicated region body
PF: predicated region fallthrough
CT: control target
= control target key end

     0   :  { %vm52_vm0 = vcmask 261120   ;;  %s7999_s0 = inlined_call_operand.vmem [shape: f32[16,32], index: 0, kind: input, shape index: {}]   ;;  %s8000_s1 = inlined_call_operand.vmem [shape: f32[2,1,32], index: 1, kind: input, shape index: {}]   ;;  %s8001_s2 = inlined_call_operand.vmem [shape: f32[2,1,32], index: 2, kind: input, shape index: {}]   ;;  %s8002_s3 = inlined_call_operand.vmem [shape: f32[2,4,32,8], index: 3, kind: input, shape index: {}]   ;;  %s8003_s4 = inlined_call_operand.vmem [shape: f32[2,4,32,8], index: 4, kind: input, shape index: {}]   ;;  %s8004_s5 = inlined_call_operand.vmem [shape: f32[2,4,32,8], index: 5, kind: input, shape index: {}]   ;;  %s8005_s6 = inlined_call_operand.vmem [shape: f32[2,4,8,32], index: 6, kind: input, shape index: {}]   ;;  %s8006_s7 = inlined_call_operand.vmem [shape: f32[2,1,32], index: 7, kind: input, shape index: {}]   ;;  %s8007_s8 = inlined_call_operand.vmem [shape: f32[2,1,32], index: 8, kind: input, shape index: {}]   ;;  %s8008_s9 = inlined_call_operand.vmem [shape: f32[2,1,32], index: 9, kind: input, shape index: {}]   ;;  %s8009_s10 = inlined_call_operand.vmem [shape: f32[2,32,64], index: 10, kind: input, shape index: {}]   ;;  %s8010_s11 = inlined_call_operand.vmem [shape: f32[2,1,64], index: 11, kind: input, shape index: {}]   ;;  %s8011_s12 = inlined_call_operand.vmem [shape: f32[2,64,32], index: 12, kind: input, shape index: {}]   ;;  %s8012_s13 = inlined_call_operand.vmem [shape: f32[2,1,32], index: 13, kind: input, shape index: {}]   ;;  %s8013_s14 = inlined_call_operand.hbm [shape: f32[16,32], index: 14, kind: output, shape index: {}]  }
   0x1   :  { %v7181_v0 = vld [vmem:[%s7999_s0] sm:$0xff]  ;;  %v7186_v1 = vld [vmem:[%s7999_s0 + $0x8] sm:$0xff] }
   0x2   :  { %19 = vsyncpa [#allocation3], 0  ;;  %v53_v2 = vsel %vm52_vm0, %v7181_v0, 0.0  ;;  %v56_v3 = vsel %vm52_vm0, %v7186_v1, 0.0  ;;  %v99_v14 = vld [vmem:[%s8002_s3 + $0x18] sm:$0xff]  ;;  %v98_v16 = vld [vmem:[%s8002_s3 + $0x10] sm:$0xff] }
   0x3   :  { %54 = vadd.xlane.f32.xlu0 %v53_v2  ;;  %6451 = vmatprep.subr.mxu0 %v99_v14  ;;  %v184_v15 = vld [vmem:[%s8003_s4 + $0x18] sm:$0xff]  ;;  %v183_v17 = vld [vmem:[%s8003_s4 + $0x10] sm:$0xff]  ;;  %v97_v18 = vld [vmem:[%s8002_s3 + $0x8] sm:$0xff]  ;;  %v7098_v42 = vmov 0.0   ;;  %vm7099_vm1 = vmmov 0   ;;  %vm339_vm2 = vcmask 64512  }
   0x4   :  { %6452 = vmatpush3.msra.mxu0 %v99_v14  ;;  %6462 = vmatprep.subr.mxu1 %v184_v15  ;;  %v182_v19 = vld [vmem:[%s8003_s4 + $0x8] sm:$0xff]  ;;  %v96_v20 = vld [vmem:[%s8002_s3] sm:$0xff]  ;;  %v263_v22 = vld [vmem:[%s8004_s5 + $0x18] sm:$0xff]  ;;  %vm2899_vm5 = vcmask 523264   ;;  %s7100_s18 = smov [#allocation2]  }
   0x5   :  { %6453 = vmatprep.subr.mxu0 %v98_v16  ;;  %6463 = vmatpush3.msra.mxu1 %v184_v15  ;;  %v181_v21 = vld [vmem:[%s8003_s4] sm:$0xff]  ;;  %v262_v39 = vld [vmem:[%s8004_s5 + $0x10] sm:$0xff]  ;;  %v261_v40 = vld [vmem:[%s8004_s5 + $0x8] sm:$0xff]  ;;  %s5932_s19 = sshll.u32 %s7100_s18, 4  ;;  %s5933_s19 = int_to_ptr.vmem [resolvable:$true] %s5932_s19 }
   0x6   :  { %6454 = vmatpush3.msra.mxu0 %v98_v16  ;;  %6464 = vmatprep.subr.mxu1 %v183_v17  ;;  %v5943_v30 = vld [vmem:[%s8000_s1] ss:$0 sm:$0xff]  ;;  %v5959_v14 = vld [vmem:[%s8002_s3 + $0x30] sm:$0xff]  ;;  %v5964_v15 = vld [vmem:[%s8003_s4 + $0x28] sm:$0xff]  ;;  %s7076_s20 = scalar_lea.vmem %s5933_s19, 256  ;;  %p7081_p1 = scmp.lt.s32.totalorder %s5933_s19, %s5933_s19 }
   0x7   :  { %57 = vadd.xlane.f32.xlu0 %v56_v3  ;;  %6455 = vmatprep.subr.mxu0 %v97_v18  ;;  %v5944_v32 = vld [vmem:[%s8001_s2] ss:$0 sm:$0xff]  ;;  %v5958_v16 = vld [vmem:[%s8002_s3 + $0x28] sm:$0xff]  ;;  %p7077_p0 = scmp.ne.s32.totalorder %s5933_s19, %s7076_s20  ;;  %p7082_p2 = scmp.lt.s32.totalorder %s7076_s20, %s7076_s20 }
   0x8   :  { %6465 = vmatpush3.msra.mxu1 %v183_v17  ;;  %6456 = vmatpush3.msra.mxu0 %v97_v18  ;;  %v260_v41 = vld [vmem:[%s8004_s5] sm:$0xff] }
   0x9   :  { %6466 = vmatprep.subr.mxu1 %v182_v19  ;;  %6457 = vmatprep.subr.mxu0 %v96_v20  ;;  %v5963_v17 = vld [vmem:[%s8003_s4 + $0x20] sm:$0xff]  ;;  %p7083_p3 = por %p7082_p2, %p7081_p1 }
   0xa   :  { %6467 = vmatpush3.msra.mxu1 %v182_v19  ;;  %6458 = vmatpush3.msra.mxu0 %v96_v20  ;;  %v5957_v18 = vld [vmem:[%s8002_s3 + $0x20] sm:$0xff]  ;;  %v5972_v19 = vld [vmem:[%s8004_s5 + $0x38] sm:$0xff]  ;;  %v5971_v20 = vld [vmem:[%s8004_s5 + $0x30] sm:$0xff] }
   0xb   :  { %6468 = vmatprep.subr.mxu1 %v181_v21  ;;  %6473 = vmatprep.subr.mxu0 %v263_v22  ;;  %p7084_p4 = pnand %p7083_p3, %p7077_p0 }
   0xc   :  { %6469 = vmatpush3.msra.mxu1 %v181_v21  ;;  %v5970_v21 = vld [vmem:[%s8004_s5 + $0x28] sm:$0xff] }
   0xd   :  { %6489 = vmatprep.subr.mxu1 %v7098_v42 }
  0x8c   :  { %v55_v4 = vpop.xlane.xlu0 %54 }
  0x8d   :  { %v60_v5 = vmul.f32 0.03125, %v55_v4 }
  0x8f   :  { %v62_v6 = vsub.f32 %v7181_v0, %v60_v5  ;;  %v5966_v5 = vld [vmem:[%s8003_s4 + $0x38] sm:$0xff] }
  0x90   :  { %v58_v7 = vpop.xlane.xlu0 %57 }
  0x91   :  { %v61_v8 = vmul.f32 0.03125, %v58_v7  ;;  %v64_v9 = vmul.f32 %v62_v6, %v62_v6 }
  0x93   :  { %v63_v10 = vsub.f32 %v7186_v1, %v61_v8  ;;  %v66_v11 = vsel %vm52_vm0, %v64_v9, 0.0 }
  0x94   :  { %67 = vadd.xlane.f32.xlu1 %v66_v11 }
  0x95   :  { %v65_v12 = vmul.f32 %v63_v10, %v63_v10 }
  0x97   :  { %v69_v13 = vsel %vm52_vm0, %v65_v12, 0.0  ;;  %v5965_v12 = vld [vmem:[%s8003_s4 + $0x30] sm:$0xff] }
  0x98   :  { %70 = vadd.xlane.f32.xlu1 %v69_v13 }
 0x11d   :  { %v68_v23 = vpop.xlane.xlu1 %67 }
 0x11e   :  { %v72_v24 = vmul.f32 0.03125, %v68_v23 }
 0x120   :  { %v74_v25 = vadd.f32 1e-05, %v72_v24 }
 0x121   :  { %v71_v26 = vpop.xlane.xlu1 %70 }
 0x122   :  { %6980 = vrsqrt.f32 %v74_v25  ;;  %v73_v27 = vmul.f32 0.03125, %v71_v26 }
 0x124   :  { %v75_v28 = vadd.f32 1e-05, %v73_v27 }
 0x126   :  { %6982 = vrsqrt.f32 %v75_v28 }
 0x12f   :  { %v6981_v29 = vpop.eup %6980 }
 0x130   :  { %v78_v31 = vmul.f32 %v6981_v29, %v62_v6  ;;  %v5960_v6 = vld [vmem:[%s8002_s3 + $0x38] sm:$0xff] }
 0x132   :  { %v86_v33 = vmul.f32 %v5943_v30, %v78_v31 }
 0x133   :  { %v6983_v34 = vpop.eup %6982 }
 0x134   :  { %v7229_v35 = vadd.f32 %v5944_v32, %v86_v33  ;;  %v79_v36 = vmul.f32 %v6983_v34, %v63_v10 }
 0x136   :  { %v87_v37 = vmul.f32 %v5943_v30, %v79_v36  ;;  %6459 = vmatprep.mubr.msk.f32.mxu0 %vm52_vm0, %v7229_v35  ;;  %6470 = vmatprep.mubr.msk.f32.mxu1 %vm52_vm0, %v7229_v35 }
 0x138   :  { %v7235_v38 = vadd.f32 %v5944_v32, %v87_v37 }
 0x13a   :  { %6460 = vmatmul.mubr.msk.f32.vlgmr.msra.gmra.mxu0 %vm52_vm0, %v7235_v38  ;;  %6471 = vmatmul.mubr.msk.f32.vlgmr.msra.gmra.mxu1 %vm52_vm0, %v7235_v38 }
 0x13b   :  { %6474 = vmatpush3.msra.mxu0 %v263_v22  ;;  %6481 = vmatprep.mubr.msk.f32.mxu0 %vm52_vm0, %v7229_v35  ;;  %v5969_v22 = vld [vmem:[%s8004_s5 + $0x20] sm:$0xff] }
 0x13c   :  { %6475 = vmatprep.subr.mxu0 %v262_v39  ;;  %6491 = vmatprep.mubr.msk.f32.mxu1 %vm7099_vm1, %v7098_v42 }
 0x13d   :  { %6476 = vmatpush3.msra.mxu0 %v262_v39 }
 0x13e   :  { %6477 = vmatprep.subr.mxu0 %v261_v40 }
 0x13f   :  { %6478 = vmatpush3.msra.mxu0 %v261_v40 }
 0x140   :  { %6479 = vmatprep.subr.mxu0 %v260_v41 }
 0x141   :  { %6480 = vmatpush3.msra.mxu0 %v260_v41 }
 0x142   :  { %6482 = vmatmul.mubr.msk.f32.vlgmr.msra.gmra.mxu0 %vm52_vm0, %v7235_v38  ;;  %6484 = vmatprep.subr.mxu0 %v7098_v42 }
 0x143   :  { %6486 = vmatprep.mubr.msk.f32.mxu0 %vm7099_vm1, %v7098_v42 }
 0x1fa   :  { %v6472_v43 = vpop.f32.mrf.mxu1  ;;  %v6461_v44 = vpop.f32.mrf.mxu0 }
 0x1fb   :  { %6490 = vmatpush3.xpose.msk.msra.mxu1 %vm339_vm2, %v6472_v43 }
 0x1fc   :  { %v251_v45 = vpop.f32.mrf.mxu1  ;;  %6499 = vmatprep.subr.mxu1 %v7098_v42  ;;  %v172_v46 = vpop.f32.mrf.mxu0 }
 0x1fd   :  { %6485 = vmatpush3.xpose.msk.msra.mxu0 %vm339_vm2, %v251_v45 }
 0x1fe   :  { %6492 = vmatmul.mubr.msk.f32.vlgmr.msra.gmra.mxu1 %vm339_vm2, %v6461_v44  ;;  %6494 = vmatprep.subr.mxu0 %v7098_v42 }
 0x1ff   :  { %6501 = vmatprep.mubr.msk.f32.mxu1 %vm7099_vm1, %v7098_v42 }
 0x200   :  { %6487 = vmatmul.mubr.msk.f32.vlgmr.msra.gmra.mxu0 %vm339_vm2, %v172_v46 }
 0x201   :  { %6496 = vmatprep.mubr.msk.f32.mxu0 %vm7099_vm1, %v7098_v42 }
 0x202   :  { %v6483_v47 = vpop.f32.mrf.mxu0 }
 0x203   :  { %6500 = vmatpush3.msra.mxu1 %v6483_v47 }
 0x204   :  { %v330_v48 = vpop.f32.mrf.mxu0  ;;  %6515 = vmatprep.subr.mxu1 %v5966_v5 }
 0x205   :  { %6495 = vmatpush3.msra.mxu0 %v330_v48 }
 0x206   :  { %6504 = vmatprep.subr.mxu0 %v5960_v6 }
 0x2be   :  { %v488_v49 = vpop.f32.mrf.mxu1 }
 0x2bf   :  { %v493_v50 = vmul.f32 0.35355338, %v488_v49 }
 0x2c0   :  { %v412_v51 = vpop.f32.mrf.mxu0  ;;  %v6493_v52 = vpop.f32.mrf.mxu1 }
 0x2c1   :  { %v492_v53 = vmul.f32 0.35355338, %v412_v51  ;;  %v497_v54 = vsel %vm339_vm2, %v493_v50, -inf }
 0x2c2   :  { %498 = vmax.xlane.f32.xlu0 %v497_v54  ;;  %v6488_v55 = vpop.f32.mrf.mxu0  ;;  %v662_v54 = vld [vmem:[%s8005_s6] sm:$0xff] }
 0x2c3   :  { %v494_v56 = vsel %vm339_vm2, %v492_v53, -inf }
 0x2c4   :  { %495 = vmax.xlane.f32.xlu1 %v494_v56 }
 0x34b   :  { %v499_v57 = vpop.xlane.xlu0 %498 }
 0x34c   :  { %v501_v58 = vsub.f32 %v493_v50, %v499_v57 }
 0x34d   :  { %v496_v59 = vpop.xlane.xlu1 %495 }
 0x34e   :  { %v504_v60 = vmul.f32 1.442695, %v501_v58  ;;  %v500_v61 = vsub.f32 %v492_v53, %v496_v59 }
 0x350   :  { %6984 = vpow2.f32 %v504_v60  ;;  %v502_v62 = vmul.f32 1.442695, %v500_v61  ;;  %v5995_v61 = vld [vmem:[%s8003_s4 + $0x58] sm:$0xff] }
 0x352   :  { %6986 = vpow2.f32 %v502_v62  ;;  %v5994_v62 = vld [vmem:[%s8003_s4 + $0x50] sm:$0xff] }
 0x35d   :  { %v6985_v63 = vpop.eup %6984 }
 0x35e   :  { %v509_v2 = vsel %vm339_vm2, %v6985_v63, 0.0 }
 0x35f   :  { %v6987_v3 = vpop.eup %6986  ;;  %510 = vadd.xlane.f32.xlu0 %v509_v2  ;;  %v5992_v2 = vld [vmem:[%s8003_s4 + $0x40] sm:$0xff] }
 0x360   :  { %v506_v4 = vsel %vm339_vm2, %v6987_v3, 0.0 }
 0x361   :  { %507 = vadd.xlane.f32.xlu1 %v506_v4  ;;  %v5989_v4 = vld [vmem:[%s8002_s3 + $0x58] sm:$0xff] }
 0x3e8   :  { %v511_v7 = vpop.xlane.xlu0 %510 }
 0x3e9   :  { %6988 = vrcp.f32 %v511_v7 }
 0x3ea   :  { %v508_v8 = vpop.xlane.xlu1 %507 }
 0x3eb   :  { %6990 = vrcp.f32 %v508_v8  ;;  %v5988_v8 = vld [vmem:[%s8002_s3 + $0x50] sm:$0xff] }
 0x3f6   :  { %v6989_v9 = vpop.eup %6988 }
 0x3f7   :  { %v515_v10 = vmul.f32 %v6989_v9, %v6985_v63  ;;  %v5993_v63 = vld [vmem:[%s8003_s4 + $0x48] sm:$0xff] }
 0x3f8   :  { %v6991_v11 = vpop.eup %6990 }
 0x3f9   :  { %6502 = vmatmul.mubr.msk.f32.vlgmr.msra.gmra.mxu1 %vm339_vm2, %v515_v10  ;;  %v514_v13 = vmul.f32 %v6991_v11, %v6987_v3  ;;  %v5981_v3 = vld [vmem:[%s8005_s6 + $0x8] sm:$0xff]  ;;  %v5986_v11 = vld [vmem:[%s8002_s3 + $0x40] sm:$0xff] }
 0x3fa   :  { %6516 = vmatpush3.msra.mxu1 %v5966_v5  ;;  %6523 = vmatprep.mubr.msk.f32.mxu1 %vm52_vm0, %v7229_v35  ;;  %v5987_v10 = vld [vmem:[%s8002_s3 + $0x48] sm:$0xff] }
 0x3fb   :  { %6517 = vmatprep.subr.mxu1 %v5965_v12  ;;  %6497 = vmatmul.mubr.msk.f32.vlgmr.msra.gmra.mxu0 %vm339_vm2, %v514_v13  ;;  %v6001_v13 = vld [vmem:[%s8004_s5 + $0x58] sm:$0xff] }
 0x3fc   :  { %6505 = vmatpush3.msra.mxu0 %v5960_v6  ;;  %6518 = vmatpush3.msra.mxu1 %v5965_v12 }
 0x3fd   :  { %6506 = vmatprep.subr.mxu0 %v5959_v14  ;;  %6512 = vmatprep.mubr.msk.f32.mxu0 %vm52_vm0, %v7229_v35 }
 0x3fe   :  { %6519 = vmatprep.subr.mxu1 %v5964_v15  ;;  %6507 = vmatpush3.msra.mxu0 %v5959_v14  ;;  %v6000_v14 = vld [vmem:[%s8004_s5 + $0x50] sm:$0xff] }
 0x3ff   :  { %6520 = vmatpush3.msra.mxu1 %v5964_v15  ;;  %6508 = vmatprep.subr.mxu0 %v5958_v16 }
 0x400   :  { %6521 = vmatprep.subr.mxu1 %v5963_v17  ;;  %6509 = vmatpush3.msra.mxu0 %v5958_v16  ;;  %v5999_v16 = vld [vmem:[%s8004_s5 + $0x48] sm:$0xff] }
 0x401   :  { %6522 = vmatpush3.msra.mxu1 %v5963_v17  ;;  %6510 = vmatprep.subr.mxu0 %v5957_v18 }
 0x402   :  { %6524 = vmatmul.mubr.msk.f32.vlgmr.msra.gmra.mxu1 %vm52_vm0, %v7235_v38  ;;  %6511 = vmatpush3.msra.mxu0 %v5957_v18  ;;  %v5998_v18 = vld [vmem:[%s8004_s5 + $0x40] sm:$0xff] }
 0x403   :  { %6513 = vmatmul.mubr.msk.f32.vlgmr.msra.gmra.mxu0 %vm52_vm0, %v7235_v38  ;;  %6526 = vmatprep.subr.mxu0 %v5972_v19 }
 0x404   :  { %6527 = vmatpush3.msra.mxu0 %v5972_v19  ;;  %6534 = vmatprep.mubr.msk.f32.mxu0 %vm52_vm0, %v7229_v35 }
 0x405   :  { %6528 = vmatprep.subr.mxu0 %v5971_v20  ;;  %6537 = vmatprep.subr.mxu1 %v7098_v42 }
 0x406   :  { %6529 = vmatpush3.msra.mxu0 %v5971_v20  ;;  %6539 = vmatprep.mubr.msk.f32.mxu1 %vm7099_vm1, %v7098_v42 }
 0x407   :  { %6530 = vmatprep.subr.mxu0 %v5970_v21 }
 0x408   :  { %6531 = vmatpush3.msra.mxu0 %v5970_v21 }
 0x409   :  { %6532 = vmatprep.subr.mxu0 %v5969_v22 }
 0x40a   :  { %6533 = vmatpush3.msra.mxu0 %v5969_v22 }
 0x40b   :  { %6535 = vmatmul.mubr.msk.f32.vlgmr.msra.gmra.mxu0 %vm52_vm0, %v7235_v38  ;;  %6547 = vmatprep.subr.mxu0 %v7098_v42 }
 0x40c   :  { %6549 = vmatprep.mubr.msk.f32.mxu0 %vm7099_vm1, %v7098_v42 }
 0x4b9   :  { %v658_v23 = vpop.f32.mrf.mxu1 }
 0x4bb   :  { %v585_v24 = vpop.f32.mrf.mxu0  ;;  %v6503_v25 = vpop.f32.mrf.mxu1 }
 0x4bd   :  { %v6498_v26 = vpop.f32.mrf.mxu0 }
 0x4c2   :  { %v6525_v27 = vpop.f32.mrf.mxu1 }
 0x4c3   :  { %v6514_v28 = vpop.f32.mrf.mxu0 }
 0x4c4   :  { %v814_v29 = vpop.f32.mrf.mxu1 }
 0x4c5   :  { %6538 = vmatpush3.xpose.msk.msra.mxu1 %vm339_vm2, %v814_v29  ;;  %v734_v30 = vpop.f32.mrf.mxu0 }
 0x4c6   :  { %6542 = vmatprep.subr.mxu1 %v7098_v42 }
 0x4c8   :  { %6540 = vmatmul.mubr.msk.f32.vlgmr.msra.gmra.mxu1 %vm339_vm2, %v734_v30 }
 0x4c9   :  { %6543 = vmatpush3.xpose.msk.msra.mxu1 %vm339_vm2, %v6525_v27  ;;  %6544 = vmatprep.mubr.msk.f32.mxu1 %vm7099_vm1, %v7098_v42 }
 0x4ca   :  { %6552 = vmatprep.subr.mxu1 %v7098_v42 }
 0x4cb   :  { %v6536_v31 = vpop.f32.mrf.mxu0 }
 0x4cc   :  { %6545 = vmatmul.mubr.msk.f32.vlgmr.msra.gmra.mxu1 %vm339_vm2, %v6514_v28 }
 0x4cd   :  { %6553 = vmatpush3.msra.mxu1 %v6536_v31  ;;  %v894_v32 = vpop.f32.mrf.mxu0  ;;  %6554 = vmatprep.mubr.msk.f32.mxu1 %vm7099_vm1, %v7098_v42 }
 0x4ce   :  { %6548 = vmatpush3.msra.mxu0 %v894_v32  ;;  %6562 = vmatprep.subr.mxu1 %v662_v54 }
 0x4cf   :  { %6557 = vmatprep.subr.mxu0 %v5981_v3 }
 0x588   :  { %v975_v33 = vpop.f32.mrf.mxu1 }
 0x589   :  { %v1055_v34 = vmul.f32 0.35355338, %v975_v33 }
 0x58a   :  { %v6541_v36 = vpop.f32.mrf.mxu1 }
 0x58b   :  { %v1057_v37 = vsel %vm339_vm2, %v1055_v34, -inf }
 0x58c   :  { %1058 = vmax.xlane.f32.xlu0 %v1057_v37  ;;  %v1051_v39 = vpop.f32.mrf.mxu1 }
 0x58d   :  { %v1056_v40 = vmul.f32 0.35355338, %v1051_v39 }
 0x58e   :  { %v6546_v41 = vpop.f32.mrf.mxu1 }
 0x58f   :  { %v1060_v43 = vsel %vm339_vm2, %v1056_v40, -inf }
 0x590   :  { %1061 = vmax.xlane.f32.xlu1 %v1060_v43 }
 0x615   :  { %v1059_v44 = vpop.xlane.xlu0 %1058 }
 0x616   :  { %v1063_v45 = vsub.f32 %v1055_v34, %v1059_v44 }
 0x618   :  { %v1065_v46 = vmul.f32 1.442695, %v1063_v45 }
 0x619   :  { %v1062_v47 = vpop.xlane.xlu1 %1061 }
 0x61a   :  { %6992 = vpow2.f32 %v1065_v46  ;;  %v1064_v48 = vsub.f32 %v1056_v40, %v1062_v47  ;;  %v6016_v47 = vld [vmem:[%s8002_s3 + $0x78] sm:$0xff] }
 0x61c   :  { %v1067_v49 = vmul.f32 1.442695, %v1064_v48 }
 0x61e   :  { %6994 = vpow2.f32 %v1067_v49 }
 0x627   :  { %v6993_v50 = vpop.eup %6992 }
 0x628   :  { %v1069_v51 = vsel %vm339_vm2, %v6993_v50, 0.0 }
 0x629   :  { %1070 = vadd.xlane.f32.xlu0 %v1069_v51 }
 0x62b   :  { %v6995_v52 = vpop.eup %6994 }
 0x62c   :  { %v1072_v53 = vsel %vm339_vm2, %v6995_v52, 0.0 }
 0x62d   :  { %1073 = vadd.xlane.f32.xlu1 %v1072_v53 }
 0x6b2   :  { %v1071_v55 = vpop.xlane.xlu0 %1070 }
 0x6b3   :  { %6996 = vrcp.f32 %v1071_v55  ;;  %v6014_v55 = vld [vmem:[%s8002_s3 + $0x68] sm:$0xff] }
 0x6b6   :  { %v1074_v56 = vpop.xlane.xlu1 %1073 }
 0x6b7   :  { %6998 = vrcp.f32 %v1074_v56  ;;  %v6013_v56 = vld [vmem:[%s8002_s3 + $0x60] sm:$0xff] }
 0x6c0   :  { %v6997_v57 = vpop.eup %6996 }
 0x6c1   :  { %v1077_v58 = vmul.f32 %v6997_v57, %v6993_v50  ;;  %v6028_v57 = vld [vmem:[%s8004_s5 + $0x78] sm:$0xff] }
 0x6c3   :  { %6550 = vmatmul.mubr.msk.f32.vlgmr.msra.gmra.mxu0 %vm339_vm2, %v1077_v58  ;;  %v6027_v58 = vld [vmem:[%s8004_s5 + $0x70] sm:$0xff] }
 0x6c4   :  { %v6999_v59 = vpop.eup %6998  ;;  %6558 = vmatpush3.msra.mxu0 %v5981_v3 }
 0x6c5   :  { %v1078_v60 = vmul.f32 %v6999_v59, %v6995_v52  ;;  %6567 = vmatprep.subr.mxu0 %v5989_v4  ;;  %v6026_v59 = vld [vmem:[%s8004_s5 + $0x68] sm:$0xff] }
 0x6c7   :  { %6555 = vmatmul.mubr.msk.f32.vlgmr.msra.gmra.mxu1 %vm339_vm2, %v1078_v60  ;;  %v6025_v60 = vld [vmem:[%s8004_s5 + $0x60] sm:$0xff] }
 0x6c8   :  { %6564 = vmatprep.mubr.msk.f32.mxu1 %vm339_vm2, %v585_v24  ;;  %6563 = vmatpush3.msra.mxu1 %v662_v54  ;;  %v6015_v54 = vld [vmem:[%s8002_s3 + $0x70] sm:$0xff] }
 0x6c9   :  { %6578 = vmatprep.subr.mxu1 %v5995_v61 }
 0x6cb   :  { %6565 = vmatmul.mubr.msk.f32.vlgmr.msra.gmra.mxu1 %vm339_vm2, %v658_v23 }
 0x6cc   :  { %6579 = vmatpush3.msra.mxu1 %v5995_v61  ;;  %6586 = vmatprep.mubr.msk.f32.mxu1 %vm52_vm0, %v7229_v35  ;;  %v6010_v61 = vld [vmem:[%s8005_s6 + $0x10] sm:$0xff] }
 0x6cd   :  { %6580 = vmatprep.subr.mxu1 %v5994_v62 }
 0x6ce   :  { %6581 = vmatpush3.msra.mxu1 %v5994_v62  ;;  %v6022_v62 = vld [vmem:[%s8003_s4 + $0x78] sm:$0xff] }
 0x6cf   :  { %6582 = vmatprep.subr.mxu1 %v5993_v63 }
 0x6d0   :  { %6583 = vmatpush3.msra.mxu1 %v5993_v63 }
 0x6d1   :  { %6584 = vmatprep.subr.mxu1 %v5992_v2 }
 0x6d2   :  { %6585 = vmatpush3.msra.mxu1 %v5992_v2 }
 0x6d3   :  { %6587 = vmatmul.mubr.msk.f32.vlgmr.msra.gmra.mxu1 %vm52_vm0, %v7235_v38  ;;  %6600 = vmatprep.subr.mxu1 %v7098_v42 }
 0x6d4   :  { %6602 = vmatprep.mubr.msk.f32.mxu1 %vm7099_vm1, %v7098_v42 }
 0x783   :  { %v1148_v5 = vpop.f32.mrf.mxu0 }
 0x784   :  { %6559 = vmatprep.mubr.msk.f32.mxu0 %vm339_vm2, %v1148_v5 }
 0x785   :  { %v6551_v6 = vpop.f32.mrf.mxu0 }
 0x786   :  { %v6020_v6 = vld [vmem:[%s8003_s4 + $0x68] sm:$0xff] }
 0x787   :  { %v1221_v7 = vpop.f32.mrf.mxu1 }
 0x788   :  { %6560 = vmatmul.mubr.msk.f32.vlgmr.msra.gmra.mxu0 %vm339_vm2, %v1221_v7  ;;  %v6019_v7 = vld [vmem:[%s8003_s4 + $0x60] sm:$0xff] }
 0x789   :  { %6568 = vmatpush3.msra.mxu0 %v5989_v4  ;;  %v6556_v9 = vpop.f32.mrf.mxu1  ;;  %6575 = vmatprep.mubr.msk.f32.mxu0 %vm52_vm0, %v7229_v35  ;;  %v6021_v4 = vld [vmem:[%s8003_s4 + $0x70] sm:$0xff] }
 0x78a   :  { %6569 = vmatprep.subr.mxu0 %v5988_v8 }
 0x78b   :  { %6570 = vmatpush3.msra.mxu0 %v5988_v8  ;;  %v7389_v12 = vpop.f32.mrf.mxu1 }
 0x78c   :  { %6571 = vmatprep.subr.mxu0 %v5987_v10 }
 0x78d   :  { %6572 = vmatpush3.msra.mxu0 %v5987_v10  ;;  %v7399_v15 = vpop.f32.mrf.mxu1 }
 0x78e   :  { %6573 = vmatprep.subr.mxu0 %v5986_v11 }
 0x78f   :  { %6574 = vmatpush3.msra.mxu0 %v5986_v11 }
 0x790   :  { %6576 = vmatmul.mubr.msk.f32.vlgmr.msra.gmra.mxu0 %vm52_vm0, %v7235_v38  ;;  %6589 = vmatprep.subr.mxu0 %v6001_v13 }
 0x791   :  { %6590 = vmatpush3.msra.mxu0 %v6001_v13  ;;  %6597 = vmatprep.mubr.msk.f32.mxu0 %vm52_vm0, %v7229_v35 }
 0x792   :  { %6591 = vmatprep.subr.mxu0 %v6000_v14 }
 0x793   :  { %v6588_v17 = vpop.f32.mrf.mxu1  ;;  %6592 = vmatpush3.msra.mxu0 %v6000_v14 }
 0x794   :  { %6593 = vmatprep.subr.mxu0 %v5999_v16 }
 0x795   :  { %v1540_v19 = vpop.f32.mrf.mxu1  ;;  %6594 = vmatpush3.msra.mxu0 %v5999_v16 }
 0x796   :  { %6595 = vmatprep.subr.mxu0 %v5998_v18  ;;  %6601 = vmatpush3.xpose.msk.msra.mxu1 %vm339_vm2, %v1540_v19 }
 0x797   :  { %6596 = vmatpush3.msra.mxu0 %v5998_v18  ;;  %6605 = vmatprep.subr.mxu1 %v7098_v42 }
 0x798   :  { %6598 = vmatmul.mubr.msk.f32.vlgmr.msra.gmra.mxu0 %vm52_vm0, %v7235_v38  ;;  %6610 = vmatprep.subr.mxu0 %v7098_v42 }
 0x799   :  { %6612 = vmatprep.mubr.msk.f32.mxu0 %vm7099_vm1, %v7098_v42 }
 0x848   :  { %v7416_v20 = vpop.f32.mrf.mxu0 }
 0x849   :  { %v1386_v11 = vadd.f32 %v7389_v12, %v7416_v20 }
 0x84a   :  { %v7418_v21 = vpop.f32.mrf.mxu0 }
 0x84b   :  { %v1381_v14 = vadd.f32 %v7399_v15, %v7418_v21 }
 0x850   :  { %v6577_v22 = vpop.f32.mrf.mxu0 }
 0x852   :  { %v1460_v23 = vpop.f32.mrf.mxu0 }
 0x853   :  { %6603 = vmatmul.mubr.msk.f32.vlgmr.msra.gmra.mxu1 %vm339_vm2, %v1460_v23 }
 0x854   :  { %6606 = vmatpush3.xpose.msk.msra.mxu1 %vm339_vm2, %v6588_v17  ;;  %6607 = vmatprep.mubr.msk.f32.mxu1 %vm7099_vm1, %v7098_v42 }
 0x855   :  { %6615 = vmatprep.subr.mxu1 %v7098_v42 }
 0x857   :  { %6608 = vmatmul.mubr.msk.f32.vlgmr.msra.gmra.mxu1 %vm339_vm2, %v6577_v22 }
 0x858   :  { %v6599_v24 = vpop.f32.mrf.mxu0  ;;  %6617 = vmatprep.mubr.msk.f32.mxu1 %vm7099_vm1, %v7098_v42 }
 0x859   :  { %6616 = vmatpush3.msra.mxu1 %v6599_v24 }
 0x85a   :  { %v1620_v25 = vpop.f32.mrf.mxu0  ;;  %6625 = vmatprep.subr.mxu1 %v6016_v47 }
 0x85b   :  { %6611 = vmatpush3.msra.mxu0 %v1620_v25 }
 0x85c   :  { %6620 = vmatprep.subr.mxu0 %v6010_v61 }
 0x913   :  { %v1701_v26 = vpop.f32.mrf.mxu1 }
 0x914   :  { %v1781_v27 = vmul.f32 0.35355338, %v1701_v26 }
 0x915   :  { %v6604_v28 = vpop.f32.mrf.mxu1 }
 0x916   :  { %v1783_v29 = vsel %vm339_vm2, %v1781_v27, -inf }
 0x917   :  { %1784 = vmax.xlane.f32.xlu0 %v1783_v29  ;;  %v1777_v30 = vpop.f32.mrf.mxu1 }
 0x918   :  { %v1782_v31 = vmul.f32 0.35355338, %v1777_v30 }
 0x919   :  { %v6609_v32 = vpop.f32.mrf.mxu1 }
 0x91a   :  { %v1786_v33 = vsel %vm339_vm2, %v1782_v31, -inf }
 0x91b   :  { %1787 = vmax.xlane.f32.xlu1 %v1786_v33 }
 0x9a0   :  { %v1785_v34 = vpop.xlane.xlu0 %1784 }
 0x9a1   :  { %v1789_v36 = vsub.f32 %v1781_v27, %v1785_v34 }
 0x9a3   :  { %v1791_v37 = vmul.f32 1.442695, %v1789_v36 }
 0x9a4   :  { %v1788_v39 = vpop.xlane.xlu1 %1787 }
 0x9a5   :  { %7000 = vpow2.f32 %v1791_v37  ;;  %v1790_v40 = vsub.f32 %v1782_v31, %v1788_v39 }
 0x9a7   :  { %v1793_v41 = vmul.f32 1.442695, %v1790_v40 }
 0x9a9   :  { %7002 = vpow2.f32 %v1793_v41 }
 0x9b2   :  { %v7001_v43 = vpop.eup %7000 }
 0x9b3   :  { %v1795_v44 = vsel %vm339_vm2, %v7001_v43, 0.0 }
 0x9b4   :  { %1796 = vadd.xlane.f32.xlu0 %v1795_v44 }
 0x9b6   :  { %v7003_v45 = vpop.eup %7002 }
 0x9b7   :  { %v1798_v46 = vsel %vm339_vm2, %v7003_v45, 0.0 }
 0x9b8   :  { %1799 = vadd.xlane.f32.xlu1 %v1798_v46 }
 0xa3d   :  { %v1797_v48 = vpop.xlane.xlu0 %1796 }
 0xa3e   :  { %7004 = vrcp.f32 %v1797_v48 }
 0xa41   :  { %v1800_v49 = vpop.xlane.xlu1 %1799 }
 0xa42   :  { %7006 = vrcp.f32 %v1800_v49 }
 0xa4b   :  { %v7005_v50 = vpop.eup %7004 }
 0xa4c   :  { %v1803_v51 = vmul.f32 %v7005_v50, %v7001_v43 }
 0xa4e   :  { %6613 = vmatmul.mubr.msk.f32.vlgmr.msra.gmra.mxu0 %vm339_vm2, %v1803_v51 }
 0xa4f   :  { %v7007_v52 = vpop.eup %7006  ;;  %6621 = vmatpush3.msra.mxu0 %v6010_v61 }
 0xa50   :  { %v1804_v53 = vmul.f32 %v7007_v52, %v7003_v45  ;;  %6636 = vmatprep.subr.mxu0 %v6022_v62  ;;  %v6037_v45 = vld [vmem:[%s8005_s6 + $0x18] sm:$0xff]  ;;  %v6040_v52 = vld [vmem:[%s8006_s7] ss:$0 sm:$0xff] }
 0xa52   :  { %6618 = vmatmul.mubr.msk.f32.vlgmr.msra.gmra.mxu1 %vm339_vm2, %v1804_v53 }
 0xa53   :  { %6626 = vmatpush3.msra.mxu1 %v6016_v47  ;;  %6633 = vmatprep.mubr.msk.f32.mxu1 %vm52_vm0, %v7229_v35 }
 0xa54   :  { %6627 = vmatprep.subr.mxu1 %v6015_v54 }
 0xa55   :  { %6628 = vmatpush3.msra.mxu1 %v6015_v54 }
 0xa56   :  { %6629 = vmatprep.subr.mxu1 %v6014_v55 }
 0xa57   :  { %6630 = vmatpush3.msra.mxu1 %v6014_v55 }
 0xa58   :  { %6631 = vmatprep.subr.mxu1 %v6013_v56 }
 0xa59   :  { %6632 = vmatpush3.msra.mxu1 %v6013_v56 }
 0xa5a   :  { %6634 = vmatmul.mubr.msk.f32.vlgmr.msra.gmra.mxu1 %vm52_vm0, %v7235_v38  ;;  %6647 = vmatprep.subr.mxu1 %v6028_v57 }
 0xa5b   :  { %6648 = vmatpush3.msra.mxu1 %v6028_v57  ;;  %6655 = vmatprep.mubr.msk.f32.mxu1 %vm52_vm0, %v7229_v35 }
 0xa5c   :  { %6649 = vmatprep.subr.mxu1 %v6027_v58 }
 0xa5d   :  { %6650 = vmatpush3.msra.mxu1 %v6027_v58 }
 0xa5e   :  { %6651 = vmatprep.subr.mxu1 %v6026_v59 }
 0xa5f   :  { %6652 = vmatpush3.msra.mxu1 %v6026_v59 }
 0xa60   :  { %6653 = vmatprep.subr.mxu1 %v6025_v60 }
 0xa61   :  { %6654 = vmatpush3.msra.mxu1 %v6025_v60 }
 0xa62   :  { %6656 = vmatmul.mubr.msk.f32.vlgmr.msra.gmra.mxu1 %vm52_vm0, %v7235_v38  ;;  %6668 = vmatprep.subr.mxu1 %v7098_v42 }
 0xa63   :  { %6670 = vmatprep.mubr.msk.f32.mxu1 %vm7099_vm1, %v7098_v42 }
 0xb0e   :  { %v1874_v63 = vpop.f32.mrf.mxu0 }
 0xb0f   :  { %6622 = vmatprep.mubr.msk.f32.mxu0 %vm339_vm2, %v1874_v63 }
 0xb10   :  { %v6614_v2 = vpop.f32.mrf.mxu0 }
 0xb12   :  { %v1947_v3 = vpop.f32.mrf.mxu1 }
 0xb13   :  { %6623 = vmatmul.mubr.msk.f32.vlgmr.msra.gmra.mxu0 %vm339_vm2, %v1947_v3 }
 0xb14   :  { %6637 = vmatpush3.msra.mxu0 %v6022_v62  ;;  %v6619_v5 = vpop.f32.mrf.mxu1  ;;  %6644 = vmatprep.mubr.msk.f32.mxu0 %vm52_vm0, %v7229_v35 }
 0xb15   :  { %6638 = vmatprep.subr.mxu0 %v6021_v4 }
 0xb16   :  { %6639 = vmatpush3.msra.mxu0 %v6021_v4 }
 0xb17   :  { %6640 = vmatprep.subr.mxu0 %v6020_v6 }
 0xb18   :  { %6641 = vmatpush3.msra.mxu0 %v6020_v6 }
 0xb19   :  { %6642 = vmatprep.subr.mxu0 %v6019_v7 }
 0xb1a   :  { %6643 = vmatpush3.msra.mxu0 %v6019_v7  ;;  %v6635_v35 = vpop.f32.mrf.mxu1  ;;  %v2741_v7 = vld [vmem:[%s8009_s10 + $0x18] sm:$0xff] }
 0xb1b   :  { %6645 = vmatmul.mubr.msk.f32.vlgmr.msra.gmra.mxu0 %vm52_vm0, %v7235_v38  ;;  %6658 = vmatprep.subr.mxu0 %v7098_v42 }
 0xb1c   :  { %6660 = vmatprep.mubr.msk.f32.mxu0 %vm7099_vm1, %v7098_v42  ;;  %v2107_v8 = vpop.f32.mrf.mxu1 }
 0xb22   :  { %v6657_v9 = vpop.f32.mrf.mxu1 }
 0xb24   :  { %v2267_v10 = vpop.f32.mrf.mxu1 }
 0xb25   :  { %6669 = vmatpush3.msra.mxu1 %v2267_v10 }
 0xb26   :  { %6678 = vmatprep.subr.mxu1 %v6037_v45 }
 0xbd3   :  { %v6624_v13 = vpop.f32.mrf.mxu0 }
 0xbd4   :  { %v2035_v16 = vadd.f32 %v6624_v13, %v1386_v11 }
 0xbd5   :  { %v2025_v17 = vpop.f32.mrf.mxu0 }
 0xbd6   :  { %v2034_v38 = vadd.f32 %v2025_v17, %v1381_v14 }
 0xbdb   :  { %v6646_v18 = vpop.f32.mrf.mxu0 }
 0xbdd   :  { %v2187_v19 = vpop.f32.mrf.mxu0 }
 0xbde   :  { %6659 = vmatpush3.xpose.msk.msra.mxu0 %vm339_vm2, %v2187_v19 }
 0xbdf   :  { %6663 = vmatprep.subr.mxu0 %v7098_v42 }
 0xbe1   :  { %6661 = vmatmul.mubr.msk.f32.vlgmr.msra.gmra.mxu0 %vm339_vm2, %v2107_v8  ;;  %v2739_v8 = vld [vmem:[%s8009_s10 + $0x8] sm:$0xff] }
 0xbe2   :  { %6664 = vmatpush3.xpose.msk.msra.mxu0 %vm339_vm2, %v6646_v18  ;;  %6665 = vmatprep.mubr.msk.f32.mxu0 %vm7099_vm1, %v7098_v42  ;;  %v6041_v18 = vld [vmem:[%s8007_s8] ss:$0 sm:$0xff] }
 0xbe3   :  { %6673 = vmatprep.subr.mxu0 %v7098_v42 }
 0xbe5   :  { %6666 = vmatmul.mubr.msk.f32.vlgmr.msra.gmra.mxu0 %vm339_vm2, %v6635_v35  ;;  %v2740_v35 = vld [vmem:[%s8009_s10 + $0x10] sm:$0xff] }
 0xbe6   :  { %6674 = vmatpush3.msra.mxu0 %v6657_v9  ;;  %6675 = vmatprep.mubr.msk.f32.mxu0 %vm7099_vm1, %v7098_v42  ;;  %v2738_v9 = vld [vmem:[%s8009_s10] sm:$0xff] }
 0xbe7   :  { %6683 = vmatprep.subr.mxu0 %v2741_v7 }
 0xca1   :  { %v2348_v12 = vpop.f32.mrf.mxu0 }
 0xca2   :  { %v2428_v15 = vmul.f32 0.35355338, %v2348_v12 }
 0xca3   :  { %v6662_v20 = vpop.f32.mrf.mxu0 }
 0xca4   :  { %v2430_v21 = vsel %vm339_vm2, %v2428_v15, -inf }
 0xca5   :  { %2431 = vmax.xlane.f32.xlu0 %v2430_v21  ;;  %v2424_v22 = vpop.f32.mrf.mxu0  ;;  %v6042_v21 = vld [vmem:[%s8008_s9] ss:$0 sm:$0xff] }
 0xca6   :  { %v2429_v23 = vmul.f32 0.35355338, %v2424_v22 }
 0xca7   :  { %v6667_v24 = vpop.f32.mrf.mxu0 }
 0xca8   :  { %v2433_v25 = vsel %vm339_vm2, %v2429_v23, -inf }
 0xca9   :  { %2434 = vmax.xlane.f32.xlu1 %v2433_v25  ;;  %v2891_v25 = vld [vmem:[%s8011_s12 + $0x38] sm:$0xff] }
 0xd2e   :  { %v2432_v26 = vpop.xlane.xlu0 %2431 }
 0xd2f   :  { %v2436_v27 = vsub.f32 %v2428_v15, %v2432_v26  ;;  %v2890_v26 = vld [vmem:[%s8011_s12 + $0x30] sm:$0xff] }
 0xd31   :  { %v2438_v28 = vmul.f32 1.442695, %v2436_v27  ;;  %v2889_v27 = vld [vmem:[%s8011_s12 + $0x28] sm:$0xff] }
 0xd32   :  { %v2435_v29 = vpop.xlane.xlu1 %2434 }
 0xd33   :  { %7008 = vpow2.f32 %v2438_v28  ;;  %v2437_v30 = vsub.f32 %v2429_v23, %v2435_v29  ;;  %v2888_v28 = vld [vmem:[%s8011_s12 + $0x20] sm:$0xff]  ;;  %v2887_v29 = vld [vmem:[%s8011_s12 + $0x18] sm:$0xff] }
 0xd35   :  { %v2440_v31 = vmul.f32 1.442695, %v2437_v30  ;;  %v2886_v30 = vld [vmem:[%s8011_s12 + $0x10] sm:$0xff] }
 0xd37   :  { %7010 = vpow2.f32 %v2440_v31  ;;  %v2885_v31 = vld [vmem:[%s8011_s12 + $0x8] sm:$0xff] }
 0xd40   :  { %v7009_v32 = vpop.eup %7008 }
 0xd41   :  { %v2442_v33 = vsel %vm339_vm2, %v7009_v32, 0.0 }
 0xd42   :  { %2443 = vadd.xlane.f32.xlu0 %v2442_v33  ;;  %v6043_v33 = vld [vmem:[%s8010_s11] ss:$0 sm:$0xff] }
 0xd44   :  { %v7011_v34 = vpop.eup %7010 }
 0xd45   :  { %v2445_v36 = vsel %vm339_vm2, %v7011_v34, 0.0 }
 0xd46   :  { %2446 = vadd.xlane.f32.xlu1 %v2445_v36 }
 0xdcb   :  { %v2444_v37 = vpop.xlane.xlu0 %2443 }
 0xdcc   :  { %7012 = vrcp.f32 %v2444_v37 }
 0xdcf   :  { %v2447_v39 = vpop.xlane.xlu1 %2446 }
 0xdd0   :  { %7014 = vrcp.f32 %v2447_v39 }
 0xdd9   :  { %v7013_v40 = vpop.eup %7012 }
 0xdda   :  { %v2450_v41 = vmul.f32 %v7013_v40, %v7009_v32  ;;  %v2884_v32 = vld [vmem:[%s8011_s12] sm:$0xff] }
 0xddc   :  { %6671 = vmatmul.mubr.msk.f32.vlgmr.msra.gmra.mxu1 %vm339_vm2, %v2450_v41 }
 0xddd   :  { %v7015_v43 = vpop.eup %7014  ;;  %6679 = vmatpush3.msra.mxu1 %v6037_v45 }
 0xdde   :  { %v2451_v44 = vmul.f32 %v7015_v43, %v7011_v34  ;;  %6694 = vmatprep.subr.mxu1 %v2891_v25 }
 0xde0   :  { %6676 = vmatmul.mubr.msk.f32.vlgmr.msra.gmra.mxu0 %vm339_vm2, %v2451_v44 }
 0xde1   :  { %6684 = vmatpush3.msra.mxu0 %v2741_v7 }
 0xde2   :  { %6685 = vmatprep.subr.mxu0 %v2740_v35 }
 0xde3   :  { %6686 = vmatpush3.msra.mxu0 %v2740_v35 }
 0xde4   :  { %6687 = vmatprep.subr.mxu0 %v2739_v8 }
 0xde5   :  { %6688 = vmatpush3.msra.mxu0 %v2739_v8 }
 0xde6   :  { %6689 = vmatprep.subr.mxu0 %v2738_v9 }
 0xde7   :  { %6690 = vmatpush3.msra.mxu0 %v2738_v9 }
 0xe9c   :  { %v2521_v46 = vpop.f32.mrf.mxu1 }
 0xe9d   :  { %6680 = vmatprep.mubr.msk.f32.mxu1 %vm339_vm2, %v2521_v46 }
 0xe9e   :  { %v6672_v47 = vpop.f32.mrf.mxu1 }
 0xea0   :  { %v2594_v48 = vpop.f32.mrf.mxu0 }
 0xea1   :  { %6681 = vmatmul.mubr.msk.f32.vlgmr.msra.gmra.mxu1 %vm339_vm2, %v2594_v48 }
 0xea2   :  { %v6677_v49 = vpop.f32.mrf.mxu0  ;;  %6695 = vmatpush3.msra.mxu1 %v2891_v25 }
 0xea3   :  { %6696 = vmatprep.subr.mxu1 %v2890_v26 }
 0xea4   :  { %6697 = vmatpush3.msra.mxu1 %v2890_v26 }
 0xea5   :  { %6698 = vmatprep.subr.mxu1 %v2889_v27 }
 0xea6   :  { %6699 = vmatpush3.msra.mxu1 %v2889_v27  ;;  %v6046_v27 = vld [vmem:[%s8012_s13] ss:$0 sm:$0xff] }
 0xea7   :  { %6700 = vmatprep.subr.mxu1 %v2888_v28 }
 0xea8   :  { %6701 = vmatpush3.msra.mxu1 %v2888_v28 }
 0xea9   :  { %6702 = vmatprep.subr.mxu1 %v2887_v29 }
 0xeaa   :  { %6703 = vmatpush3.msra.mxu1 %v2887_v29 }
 0xeab   :  { %6704 = vmatprep.subr.mxu1 %v2886_v30 }
 0xeac   :  { %6705 = vmatpush3.msra.mxu1 %v2886_v30 }
 0xead   :  { %6706 = vmatprep.subr.mxu1 %v2885_v31 }
 0xeae   :  { %6707 = vmatpush3.msra.mxu1 %v2885_v31 }
 0xeaf   :  { %6708 = vmatprep.subr.mxu1 %v2884_v32 }
 0xeb0   :  { %6709 = vmatpush3.msra.mxu1 %v2884_v32 }
 0xf61   :  { %v6682_v50 = vpop.f32.mrf.mxu1 }
 0xf62   :  { %v2682_v51 = vadd.f32 %v6682_v50, %v2035_v16 }
 0xf63   :  { %v2672_v53 = vpop.f32.mrf.mxu1 }
 0xf64   :  { %v2684_v54 = vadd.f32 %v2682_v51, %v7186_v1  ;;  %v2681_v55 = vadd.f32 %v2672_v53, %v2034_v38 }
 0xf66   :  { %v7522_v56 = vadd.f32 %v6040_v52, %v2684_v54  ;;  %v2683_v57 = vadd.f32 %v2681_v55, %v7181_v0 }
 0xf68   :  { %v7525_v58 = vadd.f32 %v6040_v52, %v2683_v57  ;;  %v2699_v59 = vsel %vm52_vm0, %v7522_v56, 0.0 }
 0xf69   :  { %2700 = vadd.xlane.f32.xlu1 %v2699_v59 }
 0xf6a   :  { %v2696_v60 = vsel %vm52_vm0, %v7525_v58, 0.0 }
 0xf6b   :  { %2697 = vadd.xlane.f32.xlu0 %v2696_v60 }
 0xff2   :  { %v2701_v61 = vpop.xlane.xlu1 %2700 }
 0xff3   :  { %v2703_v62 = vmul.f32 0.03125, %v2701_v61 }
 0xff4   :  { %v2698_v63 = vpop.xlane.xlu0 %2697 }
 0xff5   :  { %v2705_v1 = vsub.f32 %v7522_v56, %v2703_v62  ;;  %v2702_v2 = vmul.f32 0.03125, %v2698_v63 }
 0xff7   :  { %v2704_v3 = vsub.f32 %v7525_v58, %v2702_v2  ;;  %v2707_v4 = vmul.f32 %v2705_v1, %v2705_v1 }
 0xff9   :  { %v2711_v0 = vsel %vm52_vm0, %v2707_v4, 0.0  ;;  %v2706_v5 = vmul.f32 %v2704_v3, %v2704_v3 }
 0xffa   :  { %2712 = vadd.xlane.f32.xlu1 %v2711_v0 }
 0xffb   :  { %v2708_v6 = vsel %vm52_vm0, %v2706_v5, 0.0 }
 0xffc   :  { %2709 = vadd.xlane.f32.xlu0 %v2708_v6 }
0x1083   :  { %v2713_v10 = vpop.xlane.xlu1 %2712 }
0x1084   :  { %v2715_v11 = vmul.f32 0.03125, %v2713_v10 }
0x1085   :  { %v2710_v13 = vpop.xlane.xlu0 %2709 }
0x1086   :  { %v2717_v14 = vadd.f32 1e-05, %v2715_v11  ;;  %v2714_v16 = vmul.f32 0.03125, %v2710_v13 }
0x1088   :  { %7016 = vrsqrt.f32 %v2717_v14  ;;  %v2716_v17 = vadd.f32 1e-05, %v2714_v16 }
0x108a   :  { %7018 = vrsqrt.f32 %v2716_v17 }
0x1095   :  { %v7017_v38 = vpop.eup %7016 }
0x1096   :  { %v2721_v19 = vmul.f32 %v7017_v38, %v2705_v1 }
0x1097   :  { %v7019_v12 = vpop.eup %7018 }
0x1098   :  { %v2720_v15 = vmul.f32 %v7019_v12, %v2704_v3  ;;  %v2729_v20 = vmul.f32 %v6041_v18, %v2721_v19 }
0x109a   :  { %v2728_v22 = vmul.f32 %v6041_v18, %v2720_v15  ;;  %v2737_v24 = vadd.f32 %v6042_v21, %v2729_v20 }
0x109c   :  { %v2736_v23 = vadd.f32 %v6042_v21, %v2728_v22 }
0x109e   :  { %6691 = vmatprep.mubr.msk.f32.mxu0 %vm52_vm0, %v2736_v23 }
0x109f   :  { %6692 = vmatmul.mubr.msk.f32.vlgmr.msra.gmra.mxu0 %vm52_vm0, %v2737_v24 }
0x115f   :  { %v6693_v34 = vpop.f32.mrf.mxu0 }
0x1160   :  { %v2827_v36 = vadd.f32 %v6693_v34, %v6043_v33 }
0x1161   :  { %v2821_v37 = vpop.f32.mrf.mxu0 }
0x1162   :  { %v2833_v39 = vmul.f32 0.70710677, %v2827_v36  ;;  %v2822_v40 = vadd.f32 %v6043_v33, %v2821_v37  ;;  %v2831_v24 = vmul.f32 0.5, %v2827_v36 }
0x1164   :  { %v2835_v41 = vand.u32 2147483647, %v2833_v39  ;;  %v2832_v43 = vmul.f32 0.70710677, %v2822_v40  ;;  %vm2875_vm3 = vcmp.ge.f32.partialorder %v2833_v39, 0.0  ;;  %v2830_v22 = vmul.f32 0.5, %v2822_v40 }
0x1166   :  { %v2837_v44 = vmul.f32 0.3275911, %v2835_v41  ;;  %v2834_v45 = vand.u32 2147483647, %v2832_v43  ;;  %v2863_v49 = vsub.f32 0.0, %v2835_v41  ;;  %vm2874_vm4 = vcmp.ge.f32.partialorder %v2832_v43, 0.0 }
0x1168   :  { %v2839_v46 = vadd.f32 1.0, %v2837_v44  ;;  %v2836_v47 = vmul.f32 0.3275911, %v2834_v45  ;;  %v2862_v50 = vsub.f32 0.0, %v2834_v45  ;;  %v2865_v51 = vmul.f32 %v2863_v49, %v2835_v41  ;;  %v6055_v49 = vld [vmem:[%s8002_s3 + $0x90] sm:$0xff] }
0x116a   :  { %7020 = vrcp.f32 %v2839_v46  ;;  %v2838_v48 = vadd.f32 1.0, %v2836_v47  ;;  %v2864_v53 = vmul.f32 %v2862_v50, %v2834_v45  ;;  %v2868_v55 = vmul.f32 1.442695, %v2865_v51  ;;  %v6056_v47 = vld [vmem:[%s8002_s3 + $0x98] sm:$0xff]  ;;  %v6067_v50 = vld [vmem:[%s8004_s5 + $0x90] sm:$0xff]  ;;  %v6054_v51 = vld [vmem:[%s8002_s3 + $0x88] sm:$0xff] }
0x116b   :  { %6713 = vmatprep.subr.mxu0 %v6056_v47 }
0x116c   :  { %7022 = vrcp.f32 %v2838_v48  ;;  %v2866_v61 = vmul.f32 1.442695, %v2864_v53  ;;  %v6068_v48 = vld [vmem:[%s8004_s5 + $0x98] sm:$0xff]  ;;  %6714 = vmatpush3.msra.mxu0 %v6056_v47  ;;  %v6053_v53 = vld [vmem:[%s8002_s3 + $0x80] sm:$0xff]  ;;  %v6080_v47 = vld [vmem:[%s8002_s3 + $0xb0] sm:$0xff] }
0x116d   :  { %7024 = vpow2.f32 %v2868_v55  ;;  %6735 = vmatprep.subr.mxu1 %v6068_v48  ;;  %6715 = vmatprep.subr.mxu0 %v6055_v49  ;;  %v6062_v55 = vld [vmem:[%s8003_s4 + $0x98] sm:$0xff] }
0x116e   :  { %7026 = vpow2.f32 %v2866_v61  ;;  %6716 = vmatpush3.msra.mxu0 %v6055_v49  ;;  %v6079_v49 = vld [vmem:[%s8002_s3 + $0xa8] sm:$0xff] }
0x116f   :  { %6717 = vmatprep.subr.mxu0 %v6054_v51 }
0x1170   :  { %6718 = vmatpush3.msra.mxu0 %v6054_v51  ;;  %v6078_v51 = vld [vmem:[%s8002_s3 + $0xa0] sm:$0xff] }
0x1171   :  { %6719 = vmatprep.subr.mxu0 %v6053_v53 }
0x1172   :  { %6720 = vmatpush3.msra.mxu0 %v6053_v53  ;;  %v6092_v53 = vld [vmem:[%s8004_s5 + $0xb0] sm:$0xff] }
0x1173   :  { %6724 = vmatprep.subr.mxu0 %v6062_v55 }
0x1177   :  { %v7021_v52 = vpop.eup %7020 }
0x1178   :  { %v2845_v54 = vmul.f32 1.0614054, %v7021_v52 }
0x1179   :  { %v7023_v57 = vpop.eup %7022 }
0x117a   :  { %v2847_v59 = vadd.f32 -1.4531521, %v2845_v54  ;;  %v2844_v60 = vmul.f32 1.0614054, %v7023_v57  ;;  %v7025_v10 = vpop.eup %7024  ;;  %v6065_v54 = vld [vmem:[%s8004_s5 + $0x80] sm:$0xff] }
0x117b   :  { %v7027_v16 = vpop.eup %7026 }
0x117c   :  { %v2849_v62 = vmul.f32 %v7021_v52, %v2847_v59  ;;  %v2846_v63 = vadd.f32 -1.4531521, %v2844_v60 }
0x117e   :  { %v2851_v1 = vadd.f32 1.4214138, %v2849_v62  ;;  %v2848_v2 = vmul.f32 %v7023_v57, %v2846_v63 }
0x1180   :  { %v2853_v3 = vmul.f32 %v7021_v52, %v2851_v1  ;;  %v2850_v4 = vadd.f32 1.4214138, %v2848_v2  ;;  %v6051_v2 = vld [vmem:[%s8000_s1 + $0x1] ss:$0 sm:$0xff] }
0x1182   :  { %v2855_v0 = vadd.f32 -0.28449672, %v2853_v3  ;;  %v2852_v5 = vmul.f32 %v7023_v57, %v2850_v4 }
0x1184   :  { %v2857_v6 = vmul.f32 %v7021_v52, %v2855_v0  ;;  %v2854_v7 = vadd.f32 -0.28449672, %v2852_v5 }
0x1186   :  { %v2859_v35 = vadd.f32 0.2548296, %v2857_v6  ;;  %v2856_v8 = vmul.f32 %v7023_v57, %v2854_v7  ;;  %v6052_v6 = vld [vmem:[%s8001_s2 + $0x1] ss:$0 sm:$0xff] }
0x1188   :  { %v2861_v9 = vmul.f32 %v7021_v52, %v2859_v35  ;;  %v2858_v11 = vadd.f32 0.2548296, %v2856_v8  ;;  %v6066_v52 = vld [vmem:[%s8004_s5 + $0x88] sm:$0xff] }
0x118a   :  { %v2871_v13 = vmul.f32 %v7025_v10, %v2861_v9  ;;  %v2860_v14 = vmul.f32 %v7023_v57, %v2858_v11  ;;  %v6061_v9 = vld [vmem:[%s8003_s4 + $0x90] sm:$0xff]  ;;  %v6060_v10 = vld [vmem:[%s8003_s4 + $0x88] sm:$0xff]  ;;  %v6059_v11 = vld [vmem:[%s8003_s4 + $0x80] sm:$0xff] }
0x118c   :  { %v2873_v17 = vsub.f32 1.0, %v2871_v13  ;;  %v2870_v38 = vmul.f32 %v7027_v16, %v2860_v14 }
0x118e   :  { %v2877_v18 = vsub.f32 0.0, %v2873_v17  ;;  %v2872_v19 = vsub.f32 1.0, %v2870_v38 }
0x1190   :  { %v2879_v12 = vsel %vm2875_vm3, %v2873_v17, %v2877_v18  ;;  %v2876_v15 = vsub.f32 0.0, %v2872_v19 }
0x1191   :  { %v2881_v20 = vadd.f32 1.0, %v2879_v12 }
0x1192   :  { %v2878_v21 = vsel %vm2874_vm4, %v2872_v19, %v2876_v15 }
0x1193   :  { %v2880_v23 = vadd.f32 1.0, %v2878_v21  ;;  %v2883_v26 = vmul.f32 %v2881_v20, %v2831_v24 }
0x1195   :  { %v2882_v25 = vmul.f32 %v2880_v23, %v2830_v22 }
0x1197   :  { %6710 = vmatprep.mubr.msk.f32.mxu1 %vm2899_vm5, %v2882_v25 }
0x1198   :  { %6711 = vmatmul.mubr.msk.f32.vlgmr.msra.gmra.mxu1 %vm2899_vm5, %v2883_v26 }
0x1199   :  { %6736 = vmatpush3.msra.mxu1 %v6068_v48  ;;  %v6085_v48 = vld [vmem:[%s8003_s4 + $0xa8] sm:$0xff] }
0x119a   :  { %6737 = vmatprep.subr.mxu1 %v6067_v50 }
0x119b   :  { %6738 = vmatpush3.msra.mxu1 %v6067_v50  ;;  %v6084_v50 = vld [vmem:[%s8003_s4 + $0xa0] sm:$0xff] }
0x119c   :  { %6739 = vmatprep.subr.mxu1 %v6066_v52 }
0x119d   :  { %6740 = vmatpush3.msra.mxu1 %v6066_v52  ;;  %v6093_v52 = vld [vmem:[%s8004_s5 + $0xb8] sm:$0xff] }
0x119e   :  { %6741 = vmatprep.subr.mxu1 %v6065_v54 }
0x119f   :  { %6742 = vmatpush3.msra.mxu1 %v6065_v54  ;;  %v6091_v54 = vld [vmem:[%s8004_s5 + $0xa8] sm:$0xff] }
0x11a0   :  { %6751 = vmatprep.subr.mxu1 %v7098_v42 }
0x1258   :  { %v6712_v28 = vpop.f32.mrf.mxu1 }
0x1259   :  { %v2978_v29 = vadd.f32 %v6712_v28, %v6046_v27 }
0x125a   :  { %v2972_v30 = vpop.f32.mrf.mxu1 }
0x125b   :  { %v7588_v31 = vadd.f32 %v2978_v29, %v7522_v56  ;;  %v2973_v32 = vadd.f32 %v6046_v27, %v2972_v30 }
0x125d   :  { %v7591_v33 = vadd.f32 %v2973_v32, %v7525_v58  ;;  %v2990_v34 = vsel %vm52_vm0, %v7588_v31, 0.0 }
0x125e   :  { %2991 = vadd.xlane.f32.xlu1 %v2990_v34 }
0x125f   :  { %v2987_v36 = vsel %vm52_vm0, %v7591_v33, 0.0 }
0x1260   :  { %2988 = vadd.xlane.f32.xlu0 %v2987_v36 }
0x12e7   :  { %v2992_v37 = vpop.xlane.xlu1 %2991 }
0x12e8   :  { %v2994_v39 = vmul.f32 0.03125, %v2992_v37 }
0x12e9   :  { %v2989_v40 = vpop.xlane.xlu0 %2988 }
0x12ea   :  { %v2996_v41 = vsub.f32 %v7588_v31, %v2994_v39  ;;  %v2993_v43 = vmul.f32 0.03125, %v2989_v40  ;;  %v6087_v39 = vld [vmem:[%s8003_s4 + $0xb8] sm:$0xff] }
0x12eb   :  { %v6081_v40 = vld [vmem:[%s8002_s3 + $0xb8] sm:$0xff] }
0x12ec   :  { %v2995_v56 = vsub.f32 %v7591_v33, %v2993_v43  ;;  %v2998_v44 = vmul.f32 %v2996_v41, %v2996_v41 }
0x12ee   :  { %v3002_v58 = vsel %vm52_vm0, %v2998_v44, 0.0  ;;  %v2997_v45 = vmul.f32 %v2995_v56, %v2995_v56 }
0x12ef   :  { %3003 = vadd.xlane.f32.xlu1 %v3002_v58 }
0x12f0   :  { %v2999_v46 = vsel %vm52_vm0, %v2997_v45, 0.0  ;;  %v6086_v45 = vld [vmem:[%s8003_s4 + $0xb0] sm:$0xff] }
0x12f1   :  { %3000 = vadd.xlane.f32.xlu0 %v2999_v46 }
0x1378   :  { %v3004_v57 = vpop.xlane.xlu1 %3003 }
0x1379   :  { %v3006_v59 = vmul.f32 0.03125, %v3004_v57 }
0x137a   :  { %v3001_v60 = vpop.xlane.xlu0 %3000 }
0x137b   :  { %v3008_v61 = vadd.f32 1e-05, %v3006_v59  ;;  %v3005_v62 = vmul.f32 0.03125, %v3001_v60 }
0x137d   :  { %7028 = vrsqrt.f32 %v3008_v61  ;;  %v3007_v63 = vadd.f32 1e-05, %v3005_v62 }
0x137f   :  { %7030 = vrsqrt.f32 %v3007_v63 }
0x138a   :  { %v7029_v1 = vpop.eup %7028 }
0x138b   :  { %v3012_v3 = vmul.f32 %v7029_v1, %v2996_v41 }
0x138c   :  { %v7031_v4 = vpop.eup %7030 }
0x138d   :  { %v3011_v0 = vmul.f32 %v7031_v4, %v2995_v56  ;;  %v3020_v5 = vmul.f32 %v6051_v2, %v3012_v3 }
0x138f   :  { %v3019_v7 = vmul.f32 %v6051_v2, %v3011_v0  ;;  %v7637_v8 = vadd.f32 %v6052_v6, %v3020_v5 }
0x1391   :  { %v7635_v35 = vadd.f32 %v6052_v6, %v3019_v7 }
0x1393   :  { %6721 = vmatprep.mubr.msk.f32.mxu0 %vm52_vm0, %v7635_v35  ;;  %6743 = vmatprep.mubr.msk.f32.mxu1 %vm52_vm0, %v7635_v35 }
0x1394   :  { %6722 = vmatmul.mubr.msk.f32.vlgmr.msra.gmra.mxu0 %vm52_vm0, %v7637_v8  ;;  %6744 = vmatmul.mubr.msk.f32.vlgmr.msra.gmra.mxu1 %vm52_vm0, %v7637_v8 }
0x1395   :  { %6725 = vmatpush3.msra.mxu0 %v6062_v55  ;;  %6732 = vmatprep.mubr.msk.f32.mxu0 %vm52_vm0, %v7635_v35  ;;  %v6090_v55 = vld [vmem:[%s8004_s5 + $0xa0] sm:$0xff] }
0x1396   :  { %6726 = vmatprep.subr.mxu0 %v6061_v9  ;;  %6753 = vmatprep.mubr.msk.f32.mxu1 %vm7099_vm1, %v7098_v42 }
0x1397   :  { %6727 = vmatpush3.msra.mxu0 %v6061_v9 }
0x1398   :  { %6728 = vmatprep.subr.mxu0 %v6060_v10 }
0x1399   :  { %6729 = vmatpush3.msra.mxu0 %v6060_v10 }
0x139a   :  { %6730 = vmatprep.subr.mxu0 %v6059_v11 }
0x139b   :  { %6731 = vmatpush3.msra.mxu0 %v6059_v11 }
0x139c   :  { %6733 = vmatmul.mubr.msk.f32.vlgmr.msra.gmra.mxu0 %vm52_vm0, %v7637_v8  ;;  %6746 = vmatprep.subr.mxu0 %v7098_v42 }
0x139d   :  { %6748 = vmatprep.mubr.msk.f32.mxu0 %vm7099_vm1, %v7098_v42 }
0x1454   :  { %v6723_v13 = vpop.f32.mrf.mxu0  ;;  %v6745_v17 = vpop.f32.mrf.mxu1 }
0x1456   :  { %v3106_v14 = vpop.f32.mrf.mxu0  ;;  %v3266_v18 = vpop.f32.mrf.mxu1 }
0x145c   :  { %v6734_v16 = vpop.f32.mrf.mxu0 }
0x145d   :  { %6752 = vmatpush3.xpose.msk.msra.mxu1 %vm339_vm2, %v6734_v16 }
0x145e   :  { %v3186_v38 = vpop.f32.mrf.mxu0  ;;  %6761 = vmatprep.subr.mxu1 %v7098_v42 }
0x145f   :  { %6747 = vmatpush3.xpose.msk.msra.mxu0 %vm339_vm2, %v3186_v38 }
0x1460   :  { %6754 = vmatmul.mubr.msk.f32.vlgmr.msra.gmra.mxu1 %vm339_vm2, %v6723_v13  ;;  %6756 = vmatprep.subr.mxu0 %v7098_v42 }
0x1461   :  { %6762 = vmatpush3.msra.mxu1 %v6745_v17  ;;  %6763 = vmatprep.mubr.msk.f32.mxu1 %vm7099_vm1, %v7098_v42 }
0x1462   :  { %6749 = vmatmul.mubr.msk.f32.vlgmr.msra.gmra.mxu0 %vm339_vm2, %v3106_v14  ;;  %6777 = vmatprep.subr.mxu1 %v6087_v39 }
0x1463   :  { %6757 = vmatpush3.msra.mxu0 %v3266_v18  ;;  %6758 = vmatprep.mubr.msk.f32.mxu0 %vm7099_vm1, %v7098_v42 }
0x1464   :  { %6766 = vmatprep.subr.mxu0 %v6081_v40 }
0x1520   :  { %v3423_v19 = vpop.f32.mrf.mxu1 }
0x1521   :  { %v3428_v12 = vmul.f32 0.35355338, %v3423_v19 }
0x1522   :  { %v3347_v15 = vpop.f32.mrf.mxu0  ;;  %v6755_v20 = vpop.f32.mrf.mxu1 }
0x1523   :  { %v3427_v21 = vmul.f32 0.35355338, %v3347_v15  ;;  %v3432_v22 = vsel %vm339_vm2, %v3428_v12, -inf }
0x1524   :  { %3433 = vmax.xlane.f32.xlu0 %v3432_v22  ;;  %v6750_v23 = vpop.f32.mrf.mxu0  ;;  %v6077_v22 = vld [vmem:[%s8005_s6 + $0x20] sm:$0xff] }
0x1525   :  { %v3429_v24 = vsel %vm339_vm2, %v3427_v21, -inf }
0x1526   :  { %3430 = vmax.xlane.f32.xlu1 %v3429_v24 }
0x15ad   :  { %v3434_v25 = vpop.xlane.xlu0 %3433 }
0x15ae   :  { %v3436_v26 = vsub.f32 %v3428_v12, %v3434_v25 }
0x15af   :  { %v3431_v27 = vpop.xlane.xlu1 %3430 }
0x15b0   :  { %v3439_v28 = vmul.f32 1.442695, %v3436_v26  ;;  %v3435_v29 = vsub.f32 %v3427_v21, %v3431_v27 }
0x15b2   :  { %7032 = vpow2.f32 %v3439_v28  ;;  %v3437_v30 = vmul.f32 1.442695, %v3435_v29  ;;  %v6116_v29 = vld [vmem:[%s8003_s4 + $0xd8] sm:$0xff] }
0x15b4   :  { %7034 = vpow2.f32 %v3437_v30  ;;  %v6115_v30 = vld [vmem:[%s8003_s4 + $0xd0] sm:$0xff] }
0x15bf   :  { %v7033_v32 = vpop.eup %7032 }
0x15c0   :  { %v3444_v34 = vsel %vm339_vm2, %v7033_v32, 0.0 }
0x15c1   :  { %v7035_v36 = vpop.eup %7034  ;;  %3445 = vadd.xlane.f32.xlu0 %v3444_v34  ;;  %v6113_v34 = vld [vmem:[%s8003_s4 + $0xc0] sm:$0xff] }
0x15c2   :  { %v3441_v37 = vsel %vm339_vm2, %v7035_v36, 0.0 }
0x15c3   :  { %3442 = vadd.xlane.f32.xlu1 %v3441_v37  ;;  %v6110_v37 = vld [vmem:[%s8002_s3 + $0xd8] sm:$0xff] }
0x164a   :  { %v3446_v41 = vpop.xlane.xlu0 %3445 }
0x164b   :  { %7036 = vrcp.f32 %v3446_v41 }
0x164c   :  { %v3443_v43 = vpop.xlane.xlu1 %3442 }
0x164d   :  { %7038 = vrcp.f32 %v3443_v43  ;;  %v6109_v43 = vld [vmem:[%s8002_s3 + $0xd0] sm:$0xff] }
0x1658   :  { %v7037_v56 = vpop.eup %7036 }
0x1659   :  { %v3450_v44 = vmul.f32 %v7037_v56, %v7033_v32  ;;  %v6114_v32 = vld [vmem:[%s8003_s4 + $0xc8] sm:$0xff] }
0x165a   :  { %v7039_v58 = vpop.eup %7038 }
0x165b   :  { %6764 = vmatmul.mubr.msk.f32.vlgmr.msra.gmra.mxu1 %vm339_vm2, %v3450_v44  ;;  %v3449_v46 = vmul.f32 %v7039_v58, %v7035_v36  ;;  %v6102_v36 = vld [vmem:[%s8005_s6 + $0x28] sm:$0xff]  ;;  %v6107_v58 = vld [vmem:[%s8002_s3 + $0xc0] sm:$0xff] }
0x165c   :  { %6778 = vmatpush3.msra.mxu1 %v6087_v39  ;;  %6785 = vmatprep.mubr.msk.f32.mxu1 %vm52_vm0, %v7635_v35  ;;  %v6108_v44 = vld [vmem:[%s8002_s3 + $0xc8] sm:$0xff] }
0x165d   :  { %6779 = vmatprep.subr.mxu1 %v6086_v45  ;;  %6759 = vmatmul.mubr.msk.f32.vlgmr.msra.gmra.mxu0 %vm339_vm2, %v3449_v46  ;;  %v6122_v46 = vld [vmem:[%s8004_s5 + $0xd8] sm:$0xff] }
0x165e   :  { %6767 = vmatpush3.msra.mxu0 %v6081_v40  ;;  %6780 = vmatpush3.msra.mxu1 %v6086_v45 }
0x165f   :  { %6768 = vmatprep.subr.mxu0 %v6080_v47  ;;  %6774 = vmatprep.mubr.msk.f32.mxu0 %vm52_vm0, %v7635_v35 }
0x1660   :  { %6781 = vmatprep.subr.mxu1 %v6085_v48  ;;  %6769 = vmatpush3.msra.mxu0 %v6080_v47  ;;  %v6121_v47 = vld [vmem:[%s8004_s5 + $0xd0] sm:$0xff] }
0x1661   :  { %6782 = vmatpush3.msra.mxu1 %v6085_v48  ;;  %6770 = vmatprep.subr.mxu0 %v6079_v49 }
0x1662   :  { %6783 = vmatprep.subr.mxu1 %v6084_v50  ;;  %6771 = vmatpush3.msra.mxu0 %v6079_v49  ;;  %v6120_v49 = vld [vmem:[%s8004_s5 + $0xc8] sm:$0xff] }
0x1663   :  { %6784 = vmatpush3.msra.mxu1 %v6084_v50  ;;  %6772 = vmatprep.subr.mxu0 %v6078_v51 }
0x1664   :  { %6786 = vmatmul.mubr.msk.f32.vlgmr.msra.gmra.mxu1 %vm52_vm0, %v7637_v8  ;;  %6773 = vmatpush3.msra.mxu0 %v6078_v51  ;;  %v6119_v51 = vld [vmem:[%s8004_s5 + $0xc0] sm:$0xff] }
0x1665   :  { %6775 = vmatmul.mubr.msk.f32.vlgmr.msra.gmra.mxu0 %vm52_vm0, %v7637_v8  ;;  %6788 = vmatprep.subr.mxu0 %v6093_v52 }
0x1666   :  { %6789 = vmatpush3.msra.mxu0 %v6093_v52  ;;  %6796 = vmatprep.mubr.msk.f32.mxu0 %vm52_vm0, %v7635_v35 }
0x1667   :  { %6790 = vmatprep.subr.mxu0 %v6092_v53  ;;  %6799 = vmatprep.subr.mxu1 %v7098_v42 }
0x1668   :  { %6791 = vmatpush3.msra.mxu0 %v6092_v53  ;;  %6801 = vmatprep.mubr.msk.f32.mxu1 %vm7099_vm1, %v7098_v42 }
0x1669   :  { %6792 = vmatprep.subr.mxu0 %v6091_v54 }
0x166a   :  { %6793 = vmatpush3.msra.mxu0 %v6091_v54 }
0x166b   :  { %6794 = vmatprep.subr.mxu0 %v6090_v55 }
0x166c   :  { %6795 = vmatpush3.msra.mxu0 %v6090_v55 }
0x166d   :  { %6797 = vmatmul.mubr.msk.f32.vlgmr.msra.gmra.mxu0 %vm52_vm0, %v7637_v8  ;;  %6809 = vmatprep.subr.mxu0 %v7098_v42 }
0x166e   :  { %6811 = vmatprep.mubr.msk.f32.mxu0 %vm7099_vm1, %v7098_v42 }
0x171b   :  { %v3593_v57 = vpop.f32.mrf.mxu1 }
0x171d   :  { %v3520_v59 = vpop.f32.mrf.mxu0  ;;  %v6765_v60 = vpop.f32.mrf.mxu1 }
0x171f   :  { %v6760_v61 = vpop.f32.mrf.mxu0 }
0x1724   :  { %v6787_v62 = vpop.f32.mrf.mxu1 }
0x1725   :  { %v6776_v63 = vpop.f32.mrf.mxu0 }
0x1726   :  { %v3750_v1 = vpop.f32.mrf.mxu1 }
0x1727   :  { %6800 = vmatpush3.xpose.msk.msra.mxu1 %vm339_vm2, %v3750_v1  ;;  %v3670_v2 = vpop.f32.mrf.mxu0 }
0x1728   :  { %6804 = vmatprep.subr.mxu1 %v7098_v42 }
0x172a   :  { %6802 = vmatmul.mubr.msk.f32.vlgmr.msra.gmra.mxu1 %vm339_vm2, %v3670_v2 }
0x172b   :  { %6805 = vmatpush3.xpose.msk.msra.mxu1 %vm339_vm2, %v6787_v62  ;;  %6806 = vmatprep.mubr.msk.f32.mxu1 %vm7099_vm1, %v7098_v42 }
0x172c   :  { %6814 = vmatprep.subr.mxu1 %v7098_v42 }
0x172d   :  { %v6798_v3 = vpop.f32.mrf.mxu0 }
0x172e   :  { %6807 = vmatmul.mubr.msk.f32.vlgmr.msra.gmra.mxu1 %vm339_vm2, %v6776_v63 }
0x172f   :  { %6815 = vmatpush3.msra.mxu1 %v6798_v3  ;;  %v3830_v4 = vpop.f32.mrf.mxu0  ;;  %6816 = vmatprep.mubr.msk.f32.mxu1 %vm7099_vm1, %v7098_v42 }
0x1730   :  { %6810 = vmatpush3.msra.mxu0 %v3830_v4  ;;  %6824 = vmatprep.subr.mxu1 %v6077_v22 }
0x1731   :  { %6819 = vmatprep.subr.mxu0 %v6102_v36 }
0x17ea   :  { %v3911_v0 = vpop.f32.mrf.mxu1 }
0x17eb   :  { %v3991_v5 = vmul.f32 0.35355338, %v3911_v0 }
0x17ec   :  { %v6803_v6 = vpop.f32.mrf.mxu1 }
0x17ed   :  { %v3993_v7 = vsel %vm339_vm2, %v3991_v5, -inf }
0x17ee   :  { %3994 = vmax.xlane.f32.xlu0 %v3993_v7  ;;  %v3987_v9 = vpop.f32.mrf.mxu1 }
0x17ef   :  { %v3992_v10 = vmul.f32 0.35355338, %v3987_v9 }
0x17f0   :  { %v6808_v11 = vpop.f32.mrf.mxu1 }
0x17f1   :  { %v3996_v13 = vsel %vm339_vm2, %v3992_v10, -inf }
0x17f2   :  { %3997 = vmax.xlane.f32.xlu1 %v3996_v13 }
0x1877   :  { %v3995_v14 = vpop.xlane.xlu0 %3994 }
0x1878   :  { %v3999_v16 = vsub.f32 %v3991_v5, %v3995_v14 }
0x187a   :  { %v4001_v17 = vmul.f32 1.442695, %v3999_v16 }
0x187b   :  { %v3998_v38 = vpop.xlane.xlu1 %3997 }
0x187c   :  { %7040 = vpow2.f32 %v4001_v17  ;;  %v4000_v18 = vsub.f32 %v3992_v10, %v3998_v38  ;;  %v6137_v38 = vld [vmem:[%s8002_s3 + $0xf8] sm:$0xff] }
0x187e   :  { %v4003_v19 = vmul.f32 1.442695, %v4000_v18 }
0x1880   :  { %7042 = vpow2.f32 %v4003_v19 }
0x1889   :  { %v7041_v12 = vpop.eup %7040 }
0x188a   :  { %v4005_v15 = vsel %vm339_vm2, %v7041_v12, 0.0 }
0x188b   :  { %4006 = vadd.xlane.f32.xlu0 %v4005_v15 }
0x188d   :  { %v7043_v20 = vpop.eup %7042 }
0x188e   :  { %v4008_v21 = vsel %vm339_vm2, %v7043_v20, 0.0 }
0x188f   :  { %4009 = vadd.xlane.f32.xlu1 %v4008_v21 }
0x1914   :  { %v4007_v23 = vpop.xlane.xlu0 %4006 }
0x1915   :  { %7044 = vrcp.f32 %v4007_v23  ;;  %v6135_v23 = vld [vmem:[%s8002_s3 + $0xe8] sm:$0xff] }
0x1918   :  { %v4010_v24 = vpop.xlane.xlu1 %4009 }
0x1919   :  { %7046 = vrcp.f32 %v4010_v24  ;;  %v6134_v24 = vld [vmem:[%s8002_s3 + $0xe0] sm:$0xff] }
0x1922   :  { %v7045_v25 = vpop.eup %7044 }
0x1923   :  { %v4013_v26 = vmul.f32 %v7045_v25, %v7041_v12  ;;  %v6149_v25 = vld [vmem:[%s8004_s5 + $0xf8] sm:$0xff] }
0x1925   :  { %6812 = vmatmul.mubr.msk.f32.vlgmr.msra.gmra.mxu0 %vm339_vm2, %v4013_v26  ;;  %v6148_v26 = vld [vmem:[%s8004_s5 + $0xf0] sm:$0xff] }
0x1926   :  { %v7047_v27 = vpop.eup %7046  ;;  %6820 = vmatpush3.msra.mxu0 %v6102_v36 }
0x1927   :  { %v4014_v28 = vmul.f32 %v7047_v27, %v7043_v20  ;;  %6829 = vmatprep.subr.mxu0 %v6110_v37  ;;  %v6147_v27 = vld [vmem:[%s8004_s5 + $0xe8] sm:$0xff] }
0x1929   :  { %6817 = vmatmul.mubr.msk.f32.vlgmr.msra.gmra.mxu1 %vm339_vm2, %v4014_v28  ;;  %v6146_v28 = vld [vmem:[%s8004_s5 + $0xe0] sm:$0xff] }
0x192a   :  { %6826 = vmatprep.mubr.msk.f32.mxu1 %vm339_vm2, %v3520_v59  ;;  %6825 = vmatpush3.msra.mxu1 %v6077_v22  ;;  %v6136_v22 = vld [vmem:[%s8002_s3 + $0xf0] sm:$0xff] }
0x192b   :  { %6840 = vmatprep.subr.mxu1 %v6116_v29 }
0x192d   :  { %6827 = vmatmul.mubr.msk.f32.vlgmr.msra.gmra.mxu1 %vm339_vm2, %v3593_v57 }
0x192e   :  { %6841 = vmatpush3.msra.mxu1 %v6116_v29  ;;  %6848 = vmatprep.mubr.msk.f32.mxu1 %vm52_vm0, %v7635_v35  ;;  %v6131_v29 = vld [vmem:[%s8005_s6 + $0x30] sm:$0xff] }
0x192f   :  { %6842 = vmatprep.subr.mxu1 %v6115_v30 }
0x1930   :  { %6843 = vmatpush3.msra.mxu1 %v6115_v30  ;;  %v6143_v30 = vld [vmem:[%s8003_s4 + $0xf8] sm:$0xff] }
0x1931   :  { %6844 = vmatprep.subr.mxu1 %v6114_v32 }
0x1932   :  { %6845 = vmatpush3.msra.mxu1 %v6114_v32 }
0x1933   :  { %6846 = vmatprep.subr.mxu1 %v6113_v34 }
0x1934   :  { %6847 = vmatpush3.msra.mxu1 %v6113_v34 }
0x1935   :  { %6849 = vmatmul.mubr.msk.f32.vlgmr.msra.gmra.mxu1 %vm52_vm0, %v7637_v8  ;;  %6862 = vmatprep.subr.mxu1 %v7098_v42 }
0x1936   :  { %6864 = vmatprep.mubr.msk.f32.mxu1 %vm7099_vm1, %v7098_v42 }
0x19e5   :  { %v4084_v39 = vpop.f32.mrf.mxu0 }
0x19e6   :  { %6821 = vmatprep.mubr.msk.f32.mxu0 %vm339_vm2, %v4084_v39 }
0x19e7   :  { %v6813_v40 = vpop.f32.mrf.mxu0 }
0x19e8   :  { %v6141_v40 = vld [vmem:[%s8003_s4 + $0xe8] sm:$0xff] }
0x19e9   :  { %v4157_v41 = vpop.f32.mrf.mxu1 }
0x19ea   :  { %6822 = vmatmul.mubr.msk.f32.vlgmr.msra.gmra.mxu0 %vm339_vm2, %v4157_v41  ;;  %v6140_v41 = vld [vmem:[%s8003_s4 + $0xe0] sm:$0xff] }
0x19eb   :  { %6830 = vmatpush3.msra.mxu0 %v6110_v37  ;;  %v6818_v56 = vpop.f32.mrf.mxu1  ;;  %6837 = vmatprep.mubr.msk.f32.mxu0 %vm52_vm0, %v7635_v35  ;;  %v6142_v37 = vld [vmem:[%s8003_s4 + $0xf0] sm:$0xff] }
0x19ec   :  { %6831 = vmatprep.subr.mxu0 %v6109_v43 }
0x19ed   :  { %6832 = vmatpush3.msra.mxu0 %v6109_v43  ;;  %v7794_v45 = vpop.f32.mrf.mxu1 }
0x19ee   :  { %6833 = vmatprep.subr.mxu0 %v6108_v44 }
0x19ef   :  { %6834 = vmatpush3.msra.mxu0 %v6108_v44  ;;  %v7804_v48 = vpop.f32.mrf.mxu1 }
0x19f0   :  { %6835 = vmatprep.subr.mxu0 %v6107_v58 }
0x19f1   :  { %6836 = vmatpush3.msra.mxu0 %v6107_v58 }
0x19f2   :  { %6838 = vmatmul.mubr.msk.f32.vlgmr.msra.gmra.mxu0 %vm52_vm0, %v7637_v8  ;;  %6851 = vmatprep.subr.mxu0 %v6122_v46 }
0x19f3   :  { %6852 = vmatpush3.msra.mxu0 %v6122_v46  ;;  %6859 = vmatprep.mubr.msk.f32.mxu0 %vm52_vm0, %v7635_v35 }
0x19f4   :  { %6853 = vmatprep.subr.mxu0 %v6121_v47 }
0x19f5   :  { %v6850_v50 = vpop.f32.mrf.mxu1  ;;  %6854 = vmatpush3.msra.mxu0 %v6121_v47 }
0x19f6   :  { %6855 = vmatprep.subr.mxu0 %v6120_v49 }
0x19f7   :  { %v4476_v52 = vpop.f32.mrf.mxu1  ;;  %6856 = vmatpush3.msra.mxu0 %v6120_v49 }
0x19f8   :  { %6857 = vmatprep.subr.mxu0 %v6119_v51  ;;  %6863 = vmatpush3.xpose.msk.msra.mxu1 %vm339_vm2, %v4476_v52 }
0x19f9   :  { %6858 = vmatpush3.msra.mxu0 %v6119_v51  ;;  %6867 = vmatprep.subr.mxu1 %v7098_v42 }
0x19fa   :  { %6860 = vmatmul.mubr.msk.f32.vlgmr.msra.gmra.mxu0 %vm52_vm0, %v7637_v8  ;;  %6872 = vmatprep.subr.mxu0 %v7098_v42 }
0x19fb   :  { %6874 = vmatprep.mubr.msk.f32.mxu0 %vm7099_vm1, %v7098_v42 }
0x1aaa   :  { %v7821_v53 = vpop.f32.mrf.mxu0 }
0x1aab   :  { %v4322_v58 = vadd.f32 %v7794_v45, %v7821_v53 }
0x1aac   :  { %v7823_v54 = vpop.f32.mrf.mxu0 }
0x1aad   :  { %v4317_v47 = vadd.f32 %v7804_v48, %v7823_v54 }
0x1ab2   :  { %v6839_v55 = vpop.f32.mrf.mxu0 }
0x1ab4   :  { %v4396_v57 = vpop.f32.mrf.mxu0 }
0x1ab5   :  { %6865 = vmatmul.mubr.msk.f32.vlgmr.msra.gmra.mxu1 %vm339_vm2, %v4396_v57 }
0x1ab6   :  { %6868 = vmatpush3.xpose.msk.msra.mxu1 %vm339_vm2, %v6850_v50  ;;  %6869 = vmatprep.mubr.msk.f32.mxu1 %vm7099_vm1, %v7098_v42 }
0x1ab7   :  { %6877 = vmatprep.subr.mxu1 %v7098_v42 }
0x1ab9   :  { %6870 = vmatmul.mubr.msk.f32.vlgmr.msra.gmra.mxu1 %vm339_vm2, %v6839_v55 }
0x1aba   :  { %v6861_v59 = vpop.f32.mrf.mxu0  ;;  %6879 = vmatprep.mubr.msk.f32.mxu1 %vm7099_vm1, %v7098_v42 }
0x1abb   :  { %6878 = vmatpush3.msra.mxu1 %v6861_v59 }
0x1abc   :  { %v4556_v60 = vpop.f32.mrf.mxu0  ;;  %6887 = vmatprep.subr.mxu1 %v6137_v38 }
0x1abd   :  { %6873 = vmatpush3.msra.mxu0 %v4556_v60 }
0x1abe   :  { %6882 = vmatprep.subr.mxu0 %v6131_v29 }
0x1b75   :  { %v4637_v61 = vpop.f32.mrf.mxu1 }
0x1b76   :  { %v4717_v62 = vmul.f32 0.35355338, %v4637_v61 }
0x1b77   :  { %v6866_v63 = vpop.f32.mrf.mxu1 }
0x1b78   :  { %v4719_v1 = vsel %vm339_vm2, %v4717_v62, -inf }
0x1b79   :  { %4720 = vmax.xlane.f32.xlu0 %v4719_v1  ;;  %v4713_v2 = vpop.f32.mrf.mxu1 }
0x1b7a   :  { %v4718_v3 = vmul.f32 0.35355338, %v4713_v2 }
0x1b7b   :  { %v6871_v4 = vpop.f32.mrf.mxu1 }
0x1b7c   :  { %v4722_v0 = vsel %vm339_vm2, %v4718_v3, -inf }
0x1b7d   :  { %4723 = vmax.xlane.f32.xlu1 %v4722_v0 }
0x1c02   :  { %v4721_v5 = vpop.xlane.xlu0 %4720 }
0x1c03   :  { %v4725_v6 = vsub.f32 %v4717_v62, %v4721_v5 }
0x1c05   :  { %v4727_v7 = vmul.f32 1.442695, %v4725_v6 }
0x1c06   :  { %v4724_v9 = vpop.xlane.xlu1 %4723 }
0x1c07   :  { %7048 = vpow2.f32 %v4727_v7  ;;  %v4726_v10 = vsub.f32 %v4718_v3, %v4724_v9 }
0x1c09   :  { %v4729_v11 = vmul.f32 1.442695, %v4726_v10 }
0x1c0b   :  { %7050 = vpow2.f32 %v4729_v11 }
0x1c14   :  { %v7049_v13 = vpop.eup %7048 }
0x1c15   :  { %v4731_v14 = vsel %vm339_vm2, %v7049_v13, 0.0 }
0x1c16   :  { %4732 = vadd.xlane.f32.xlu0 %v4731_v14  ;;  %v6158_v14 = vld [vmem:[%s8005_s6 + $0x38] sm:$0xff] }
0x1c18   :  { %v7051_v16 = vpop.eup %7050 }
0x1c19   :  { %v4734_v17 = vsel %vm339_vm2, %v7051_v16, 0.0 }
0x1c1a   :  { %4735 = vadd.xlane.f32.xlu1 %v4734_v17 }
0x1c9f   :  { %v4733_v18 = vpop.xlane.xlu0 %4732 }
0x1ca0   :  { %7052 = vrcp.f32 %v4733_v18 }
0x1ca3   :  { %v4736_v19 = vpop.xlane.xlu1 %4735 }
0x1ca4   :  { %7054 = vrcp.f32 %v4736_v19 }
0x1cad   :  { %v7053_v12 = vpop.eup %7052 }
0x1cae   :  { %v4739_v15 = vmul.f32 %v7053_v12, %v7049_v13 }
0x1cb0   :  { %6875 = vmatmul.mubr.msk.f32.vlgmr.msra.gmra.mxu0 %vm339_vm2, %v4739_v15  ;;  %v6162_v15 = vld [vmem:[%s8006_s7 + $0x1] ss:$0 sm:$0xff] }
0x1cb1   :  { %v7055_v20 = vpop.eup %7054  ;;  %6883 = vmatpush3.msra.mxu0 %v6131_v29 }
0x1cb2   :  { %v4740_v21 = vmul.f32 %v7055_v20, %v7051_v16  ;;  %6898 = vmatprep.subr.mxu0 %v6143_v30 }
0x1cb4   :  { %6880 = vmatmul.mubr.msk.f32.vlgmr.msra.gmra.mxu1 %vm339_vm2, %v4740_v21 }
0x1cb5   :  { %6888 = vmatpush3.msra.mxu1 %v6137_v38  ;;  %6895 = vmatprep.mubr.msk.f32.mxu1 %vm52_vm0, %v7635_v35 }
0x1cb6   :  { %6889 = vmatprep.subr.mxu1 %v6136_v22 }
0x1cb7   :  { %6890 = vmatpush3.msra.mxu1 %v6136_v22 }
0x1cb8   :  { %6891 = vmatprep.subr.mxu1 %v6135_v23 }
0x1cb9   :  { %6892 = vmatpush3.msra.mxu1 %v6135_v23 }
0x1cba   :  { %6893 = vmatprep.subr.mxu1 %v6134_v24 }
0x1cbb   :  { %6894 = vmatpush3.msra.mxu1 %v6134_v24 }
0x1cbc   :  { %6896 = vmatmul.mubr.msk.f32.vlgmr.msra.gmra.mxu1 %vm52_vm0, %v7637_v8  ;;  %6909 = vmatprep.subr.mxu1 %v6149_v25 }
0x1cbd   :  { %6910 = vmatpush3.msra.mxu1 %v6149_v25  ;;  %6917 = vmatprep.mubr.msk.f32.mxu1 %vm52_vm0, %v7635_v35 }
0x1cbe   :  { %6911 = vmatprep.subr.mxu1 %v6148_v26 }
0x1cbf   :  { %6912 = vmatpush3.msra.mxu1 %v6148_v26 }
0x1cc0   :  { %6913 = vmatprep.subr.mxu1 %v6147_v27 }
0x1cc1   :  { %6914 = vmatpush3.msra.mxu1 %v6147_v27 }
0x1cc2   :  { %6915 = vmatprep.subr.mxu1 %v6146_v28 }
0x1cc3   :  { %6916 = vmatpush3.msra.mxu1 %v6146_v28 }
0x1cc4   :  { %6918 = vmatmul.mubr.msk.f32.vlgmr.msra.gmra.mxu1 %vm52_vm0, %v7637_v8  ;;  %6930 = vmatprep.subr.mxu1 %v7098_v42 }
0x1cc5   :  { %6932 = vmatprep.mubr.msk.f32.mxu1 %vm7099_vm1, %v7098_v42 }
0x1d70   :  { %v4810_v32 = vpop.f32.mrf.mxu0 }
0x1d71   :  { %6884 = vmatprep.mubr.msk.f32.mxu0 %vm339_vm2, %v4810_v32 }
0x1d72   :  { %v6876_v34 = vpop.f32.mrf.mxu0 }
0x1d74   :  { %v4883_v36 = vpop.f32.mrf.mxu1 }
0x1d75   :  { %6885 = vmatmul.mubr.msk.f32.vlgmr.msra.gmra.mxu0 %vm339_vm2, %v4883_v36 }
0x1d76   :  { %6899 = vmatpush3.msra.mxu0 %v6143_v30  ;;  %v6881_v39 = vpop.f32.mrf.mxu1  ;;  %6906 = vmatprep.mubr.msk.f32.mxu0 %vm52_vm0, %v7635_v35 }
0x1d77   :  { %6900 = vmatprep.subr.mxu0 %v6142_v37 }
0x1d78   :  { %6901 = vmatpush3.msra.mxu0 %v6142_v37 }
0x1d79   :  { %6902 = vmatprep.subr.mxu0 %v6141_v40 }
0x1d7a   :  { %6903 = vmatpush3.msra.mxu0 %v6141_v40  ;;  %v6170_v40 = vld [vmem:[%s8009_s10 + $0x38] sm:$0xff] }
0x1d7b   :  { %6904 = vmatprep.subr.mxu0 %v6140_v41 }
0x1d7c   :  { %6905 = vmatpush3.msra.mxu0 %v6140_v41  ;;  %v6897_v35 = vpop.f32.mrf.mxu1  ;;  %v6169_v41 = vld [vmem:[%s8009_s10 + $0x30] sm:$0xff] }
0x1d7d   :  { %6907 = vmatmul.mubr.msk.f32.vlgmr.msra.gmra.mxu0 %vm52_vm0, %v7637_v8  ;;  %6920 = vmatprep.subr.mxu0 %v7098_v42 }
0x1d7e   :  { %6922 = vmatprep.mubr.msk.f32.mxu0 %vm7099_vm1, %v7098_v42  ;;  %v5043_v43 = vpop.f32.mrf.mxu1 }
0x1d84   :  { %v6919_v56 = vpop.f32.mrf.mxu1 }
0x1d86   :  { %v5203_v44 = vpop.f32.mrf.mxu1 }
0x1d87   :  { %6931 = vmatpush3.msra.mxu1 %v5203_v44 }
0x1d88   :  { %6940 = vmatprep.subr.mxu1 %v6158_v14 }
0x1e35   :  { %v6886_v46 = vpop.f32.mrf.mxu0 }
0x1e36   :  { %v4971_v49 = vadd.f32 %v6886_v46, %v4322_v58 }
0x1e37   :  { %v4961_v50 = vpop.f32.mrf.mxu0 }
0x1e38   :  { %v4970_v8 = vadd.f32 %v4961_v50, %v4317_v47 }
0x1e3d   :  { %v6908_v51 = vpop.f32.mrf.mxu0 }
0x1e3f   :  { %v5123_v52 = vpop.f32.mrf.mxu0 }
0x1e40   :  { %6921 = vmatpush3.xpose.msk.msra.mxu0 %vm339_vm2, %v5123_v52 }
0x1e41   :  { %6925 = vmatprep.subr.mxu0 %v7098_v42 }
0x1e43   :  { %6923 = vmatmul.mubr.msk.f32.vlgmr.msra.gmra.mxu0 %vm339_vm2, %v5043_v43  ;;  %v6167_v43 = vld [vmem:[%s8009_s10 + $0x20] sm:$0xff] }
0x1e44   :  { %6926 = vmatpush3.xpose.msk.msra.mxu0 %vm339_vm2, %v6908_v51  ;;  %6927 = vmatprep.mubr.msk.f32.mxu0 %vm7099_vm1, %v7098_v42 }
0x1e45   :  { %6935 = vmatprep.subr.mxu0 %v7098_v42 }
0x1e47   :  { %6928 = vmatmul.mubr.msk.f32.vlgmr.msra.gmra.mxu0 %vm339_vm2, %v6897_v35  ;;  %v6168_v35 = vld [vmem:[%s8009_s10 + $0x28] sm:$0xff] }
0x1e48   :  { %6936 = vmatpush3.msra.mxu0 %v6919_v56  ;;  %6937 = vmatprep.mubr.msk.f32.mxu0 %vm7099_vm1, %v7098_v42 }
0x1e49   :  { %6945 = vmatprep.subr.mxu0 %v6170_v40 }
0x1f03   :  { %v5284_v45 = vpop.f32.mrf.mxu0 }
0x1f04   :  { %v5364_v48 = vmul.f32 0.35355338, %v5284_v45 }
0x1f05   :  { %v6924_v53 = vpop.f32.mrf.mxu0 }
0x1f06   :  { %v5366_v54 = vsel %vm339_vm2, %v5364_v48, -inf  ;;  %v6166_v53 = vld [vmem:[%s8008_s9 + $0x1] ss:$0 sm:$0xff] }
0x1f07   :  { %5367 = vmax.xlane.f32.xlu0 %v5366_v54  ;;  %v5360_v55 = vpop.f32.mrf.mxu0 }
0x1f08   :  { %v5365_v57 = vmul.f32 0.35355338, %v5360_v55 }
0x1f09   :  { %v6929_v59 = vpop.f32.mrf.mxu0 }
0x1f0a   :  { %v5369_v60 = vsel %vm339_vm2, %v5365_v57, -inf  ;;  %v6182_v59 = vld [vmem:[%s8011_s12 + $0x78] sm:$0xff] }
0x1f0b   :  { %5370 = vmax.xlane.f32.xlu1 %v5369_v60  ;;  %v6181_v60 = vld [vmem:[%s8011_s12 + $0x70] sm:$0xff] }
0x1f90   :  { %v5368_v61 = vpop.xlane.xlu0 %5367 }
0x1f91   :  { %v5372_v62 = vsub.f32 %v5364_v48, %v5368_v61  ;;  %v6180_v61 = vld [vmem:[%s8011_s12 + $0x68] sm:$0xff] }
0x1f93   :  { %v5374_v63 = vmul.f32 1.442695, %v5372_v62  ;;  %v6179_v62 = vld [vmem:[%s8011_s12 + $0x60] sm:$0xff] }
0x1f94   :  { %v5371_v1 = vpop.xlane.xlu1 %5370 }
0x1f95   :  { %7056 = vpow2.f32 %v5374_v63  ;;  %v5373_v2 = vsub.f32 %v5365_v57, %v5371_v1  ;;  %v6178_v63 = vld [vmem:[%s8011_s12 + $0x58] sm:$0xff]  ;;  %v6177_v1 = vld [vmem:[%s8011_s12 + $0x50] sm:$0xff] }
0x1f97   :  { %v5376_v3 = vmul.f32 1.442695, %v5373_v2  ;;  %v6176_v2 = vld [vmem:[%s8011_s12 + $0x48] sm:$0xff] }
0x1f99   :  { %7058 = vpow2.f32 %v5376_v3  ;;  %v6175_v3 = vld [vmem:[%s8011_s12 + $0x40] sm:$0xff] }
0x1fa2   :  { %v7057_v42 = vpop.eup %7056 }
0x1fa3   :  { %v5378_v4 = vsel %vm339_vm2, %v7057_v42, 0.0 }
0x1fa4   :  { %5379 = vadd.xlane.f32.xlu0 %v5378_v4 }
0x1fa6   :  { %v7059_v0 = vpop.eup %7058 }
0x1fa7   :  { %v5381_v5 = vsel %vm339_vm2, %v7059_v0, 0.0 }
0x1fa8   :  { %5382 = vadd.xlane.f32.xlu1 %v5381_v5 }
0x202d   :  { %v5380_v6 = vpop.xlane.xlu0 %5379 }
0x202e   :  { %7060 = vrcp.f32 %v5380_v6 }
0x2031   :  { %v5383_v7 = vpop.xlane.xlu1 %5382 }
0x2032   :  { %7062 = vrcp.f32 %v5383_v7 }
0x203b   :  { %v7061_v9 = vpop.eup %7060 }
0x203c   :  { %v5386_v10 = vmul.f32 %v7061_v9, %v7057_v42  ;;  %v6172_v42 = vld [vmem:[%s8010_s11 + $0x1] ss:$0 sm:$0xff] }
0x203e   :  { %6933 = vmatmul.mubr.msk.f32.vlgmr.msra.gmra.mxu1 %vm339_vm2, %v5386_v10 }
0x203f   :  { %v7063_v11 = vpop.eup %7062  ;;  %6941 = vmatpush3.msra.mxu1 %v6158_v14 }
0x2040   :  { %v5387_v13 = vmul.f32 %v7063_v11, %v7059_v0  ;;  %6956 = vmatprep.subr.mxu1 %v6182_v59 }
0x2042   :  { %6938 = vmatmul.mubr.msk.f32.vlgmr.msra.gmra.mxu0 %vm339_vm2, %v5387_v13 }
0x2043   :  { %6946 = vmatpush3.msra.mxu0 %v6170_v40 }
0x2044   :  { %6947 = vmatprep.subr.mxu0 %v6169_v41 }
0x2045   :  { %6948 = vmatpush3.msra.mxu0 %v6169_v41 }
0x2046   :  { %6949 = vmatprep.subr.mxu0 %v6168_v35 }
0x2047   :  { %6950 = vmatpush3.msra.mxu0 %v6168_v35 }
0x2048   :  { %6951 = vmatprep.subr.mxu0 %v6167_v43 }
0x2049   :  { %6952 = vmatpush3.msra.mxu0 %v6167_v43 }
0x20fe   :  { %v5457_v16 = vpop.f32.mrf.mxu1 }
0x20ff   :  { %6942 = vmatprep.mubr.msk.f32.mxu1 %vm339_vm2, %v5457_v16 }
0x2100   :  { %v6934_v17 = vpop.f32.mrf.mxu1 }
0x2102   :  { %v5530_v38 = vpop.f32.mrf.mxu0 }
0x2103   :  { %6943 = vmatmul.mubr.msk.f32.vlgmr.msra.gmra.mxu1 %vm339_vm2, %v5530_v38 }
0x2104   :  { %v6939_v18 = vpop.f32.mrf.mxu0  ;;  %6957 = vmatpush3.msra.mxu1 %v6182_v59 }
0x2105   :  { %6958 = vmatprep.subr.mxu1 %v6181_v60 }
0x2106   :  { %6959 = vmatpush3.msra.mxu1 %v6181_v60  ;;  %v6184_v60 = vld [vmem:[%s8012_s13 + $0x1] ss:$0 sm:$0xff] }
0x2107   :  { %6960 = vmatprep.subr.mxu1 %v6180_v61 }
0x2108   :  { %6961 = vmatpush3.msra.mxu1 %v6180_v61 }
0x2109   :  { %6962 = vmatprep.subr.mxu1 %v6179_v62 }
0x210a   :  { %6963 = vmatpush3.msra.mxu1 %v6179_v62 }
0x210b   :  { %6964 = vmatprep.subr.mxu1 %v6178_v63 }
0x210c   :  { %6965 = vmatpush3.msra.mxu1 %v6178_v63 }
0x210d   :  { %6966 = vmatprep.subr.mxu1 %v6177_v1 }
0x210e   :  { %6967 = vmatpush3.msra.mxu1 %v6177_v1 }
0x210f   :  { %6968 = vmatprep.subr.mxu1 %v6176_v2 }
0x2110   :  { %6969 = vmatpush3.msra.mxu1 %v6176_v2 }
0x2111   :  { %6970 = vmatprep.subr.mxu1 %v6175_v3 }
0x2112   :  { %6971 = vmatpush3.msra.mxu1 %v6175_v3 }
0x21c3   :  { %v6944_v19 = vpop.f32.mrf.mxu1 }
0x21c4   :  { %v5618_v12 = vadd.f32 %v6944_v19, %v4971_v49 }
0x21c5   :  { %v5608_v20 = vpop.f32.mrf.mxu1 }
0x21c6   :  { %v5620_v21 = vadd.f32 %v5618_v12, %v7588_v31  ;;  %v5617_v22 = vadd.f32 %v5608_v20, %v4970_v8  ;;  %v6165_v8 = vld [vmem:[%s8007_s8 + $0x1] ss:$0 sm:$0xff] }
0x21c8   :  { %v7927_v23 = vadd.f32 %v6162_v15, %v5620_v21  ;;  %v5619_v24 = vadd.f32 %v5617_v22, %v7591_v33 }
0x21ca   :  { %v7930_v25 = vadd.f32 %v6162_v15, %v5619_v24  ;;  %v5638_v26 = vsel %vm52_vm0, %v7927_v23, 0.0 }
0x21cb   :  { %5639 = vadd.xlane.f32.xlu1 %v5638_v26 }
0x21cc   :  { %v5635_v27 = vsel %vm52_vm0, %v7930_v25, 0.0 }
0x21cd   :  { %5636 = vadd.xlane.f32.xlu0 %v5635_v27 }
0x2254   :  { %v5640_v28 = vpop.xlane.xlu1 %5639 }
0x2255   :  { %v5642_v29 = vmul.f32 0.03125, %v5640_v28 }
0x2256   :  { %v5637_v30 = vpop.xlane.xlu0 %5636 }
0x2257   :  { %v5644_v31 = vsub.f32 %v7927_v23, %v5642_v29  ;;  %v5641_v32 = vmul.f32 0.03125, %v5637_v30 }
0x2259   :  { %v5643_v34 = vsub.f32 %v7930_v25, %v5641_v32  ;;  %v5646_v36 = vmul.f32 %v5644_v31, %v5644_v31 }
0x225b   :  { %v5650_v33 = vsel %vm52_vm0, %v5646_v36, 0.0  ;;  %v5645_v37 = vmul.f32 %v5643_v34, %v5643_v34 }
0x225c   :  { %5651 = vadd.xlane.f32.xlu1 %v5650_v33 }
0x225d   :  { %v5647_v39 = vsel %vm52_vm0, %v5645_v37, 0.0 }
0x225e   :  { %5648 = vadd.xlane.f32.xlu0 %v5647_v39 }
0x22e5   :  { %v5652_v56 = vpop.xlane.xlu1 %5651 }
0x22e6   :  { %v5654_v44 = vmul.f32 0.03125, %v5652_v56 }
0x22e7   :  { %v5649_v58 = vpop.xlane.xlu0 %5648 }
0x22e8   :  { %v5656_v46 = vadd.f32 1e-05, %v5654_v44  ;;  %v5653_v47 = vmul.f32 0.03125, %v5649_v58 }
0x22ea   :  { %7064 = vrsqrt.f32 %v5656_v46  ;;  %v5655_v49 = vadd.f32 1e-05, %v5653_v47 }
0x22ec   :  { %7066 = vrsqrt.f32 %v5655_v49 }
0x22f7   :  { %v7065_v50 = vpop.eup %7064 }
0x22f8   :  { %v5660_v51 = vmul.f32 %v7065_v50, %v5644_v31 }
0x22f9   :  { %v7067_v52 = vpop.eup %7066 }
0x22fa   :  { %v5659_v45 = vmul.f32 %v7067_v52, %v5643_v34  ;;  %v5668_v48 = vmul.f32 %v6165_v8, %v5660_v51 }
0x22fc   :  { %v5667_v54 = vmul.f32 %v6165_v8, %v5659_v45  ;;  %v5676_v57 = vadd.f32 %v6166_v53, %v5668_v48 }
0x22fe   :  { %v5675_v55 = vadd.f32 %v6166_v53, %v5667_v54 }
0x2300   :  { %6953 = vmatprep.mubr.msk.f32.mxu0 %vm52_vm0, %v5675_v55 }
0x2301   :  { %6954 = vmatmul.mubr.msk.f32.vlgmr.msra.gmra.mxu0 %vm52_vm0, %v5676_v57 }
0x23c1   :  { %v6955_v4 = vpop.f32.mrf.mxu0 }
0x23c2   :  { %v5768_v0 = vadd.f32 %v6955_v4, %v6172_v42 }
0x23c3   :  { %v5762_v5 = vpop.f32.mrf.mxu0 }
0x23c4   :  { %v5774_v6 = vmul.f32 0.70710677, %v5768_v0  ;;  %v5763_v7 = vadd.f32 %v6172_v42, %v5762_v5  ;;  %v5772_v55 = vmul.f32 0.5, %v5768_v0 }
0x23c6   :  { %v5776_v9 = vand.u32 2147483647, %v5774_v6  ;;  %v5773_v10 = vmul.f32 0.70710677, %v5763_v7  ;;  %vm5816_vm6 = vcmp.ge.f32.partialorder %v5774_v6, 0.0  ;;  %v5771_v53 = vmul.f32 0.5, %v5763_v7 }
0x23c8   :  { %v5778_v11 = vmul.f32 0.3275911, %v5776_v9  ;;  %v5775_v13 = vand.u32 2147483647, %v5773_v10  ;;  %v5804_v38 = vsub.f32 0.0, %v5776_v9  ;;  %vm5815_vm7 = vcmp.ge.f32.partialorder %v5773_v10, 0.0 }
0x23ca   :  { %v5780_v14 = vadd.f32 1.0, %v5778_v11  ;;  %v5777_v16 = vmul.f32 0.3275911, %v5775_v13  ;;  %v5803_v18 = vsub.f32 0.0, %v5775_v13  ;;  %v5806_v19 = vmul.f32 %v5804_v38, %v5776_v9 }
0x23cc   :  { %7068 = vrcp.f32 %v5780_v14  ;;  %v5779_v17 = vadd.f32 1.0, %v5777_v16  ;;  %v5805_v15 = vmul.f32 %v5803_v18, %v5775_v13  ;;  %v5809_v21 = vmul.f32 1.442695, %v5806_v19 }
0x23ce   :  { %7070 = vrcp.f32 %v5779_v17  ;;  %v5807_v27 = vmul.f32 1.442695, %v5805_v15 }
0x23cf   :  { %7072 = vpow2.f32 %v5809_v21 }
0x23d0   :  { %7074 = vpow2.f32 %v5807_v27 }
0x23d9   :  { %v7069_v12 = vpop.eup %7068 }
0x23da   :  { %v5786_v20 = vmul.f32 1.0614054, %v7069_v12 }
0x23db   :  { %v7071_v22 = vpop.eup %7070 }
0x23dc   :  { %v5788_v24 = vadd.f32 -1.4531521, %v5786_v20  ;;  %v5785_v26 = vmul.f32 1.0614054, %v7071_v22  ;;  %v7073_v43 = vpop.eup %7072 }
0x23dd   :  { %v7075_v46 = vpop.eup %7074 }
0x23de   :  { %v5790_v28 = vmul.f32 %v7069_v12, %v5788_v24  ;;  %v5787_v29 = vadd.f32 -1.4531521, %v5785_v26 }
0x23e0   :  { %v5792_v30 = vadd.f32 1.4214138, %v5790_v28  ;;  %v5789_v31 = vmul.f32 %v7071_v22, %v5787_v29 }
0x23e2   :  { %v5794_v32 = vmul.f32 %v7069_v12, %v5792_v30  ;;  %v5791_v34 = vadd.f32 1.4214138, %v5789_v31 }
0x23e4   :  { %v5796_v36 = vadd.f32 -0.28449672, %v5794_v32  ;;  %v5793_v33 = vmul.f32 %v7071_v22, %v5791_v34 }
0x23e6   :  { %v5798_v37 = vmul.f32 %v7069_v12, %v5796_v36  ;;  %v5795_v39 = vadd.f32 -0.28449672, %v5793_v33 }
0x23e8   :  { %v5800_v40 = vadd.f32 0.2548296, %v5798_v37  ;;  %v5797_v41 = vmul.f32 %v7071_v22, %v5795_v39 }
0x23ea   :  { %v5802_v35 = vmul.f32 %v7069_v12, %v5800_v40  ;;  %v5799_v56 = vadd.f32 0.2548296, %v5797_v41 }
0x23ec   :  { %v5812_v44 = vmul.f32 %v7073_v43, %v5802_v35  ;;  %v5801_v58 = vmul.f32 %v7071_v22, %v5799_v56 }
0x23ee   :  { %v5814_v47 = vsub.f32 1.0, %v5812_v44  ;;  %v5811_v49 = vmul.f32 %v7075_v46, %v5801_v58 }
0x23f0   :  { %v5818_v50 = vsub.f32 0.0, %v5814_v47  ;;  %v5813_v8 = vsub.f32 1.0, %v5811_v49 }
0x23f2   :  { %v5820_v51 = vsel %vm5816_vm6, %v5814_v47, %v5818_v50  ;;  %v5817_v52 = vsub.f32 0.0, %v5813_v8 }
0x23f3   :  { %v5822_v45 = vadd.f32 1.0, %v5820_v51 }
0x23f4   :  { %v5819_v48 = vsel %vm5815_vm7, %v5813_v8, %v5817_v52 }
0x23f5   :  { %v5821_v54 = vadd.f32 1.0, %v5819_v48  ;;  %v5824_v59 = vmul.f32 %v5822_v45, %v5772_v55 }
0x23f7   :  { %v5823_v57 = vmul.f32 %v5821_v54, %v5771_v53 }
0x23f9   :  { %6972 = vmatprep.mubr.msk.f32.mxu1 %vm2899_vm5, %v5823_v57 }
0x23fa   :  { %6973 = vmatmul.mubr.msk.f32.vlgmr.msra.gmra.mxu1 %vm2899_vm5, %v5824_v59 }
0x24ba   :  { %v6974_v61 = vpop.f32.mrf.mxu1 }
0x24bb   :  { %v5920_v62 = vadd.f32 %v6974_v61, %v6184_v60 }
0x24bc   :  { %v5914_v63 = vpop.f32.mrf.mxu1 }
0x24bd   :  { %v5924_v1 = vadd.f32 %v5920_v62, %v7927_v23  ;;  %v5915_v2 = vadd.f32 %v6184_v60, %v5914_v63 }
0x24bf   :  { %5926 = vst.msk [vmem:[#allocation2 + $0x8] sm:$0xff] %vm52_vm0, %v5924_v1  ;;  %v5923_v3 = vadd.f32 %v5915_v2, %v7930_v25 }
0x24c1   :  { %5925 = vst.msk [vmem:[#allocation2] sm:$0xff] %vm52_vm0, %v5923_v3 }
0x24c2   :  { %7087 = shalt.err (!%p7084_p4)
}
0x24c3   :  { %s7101_s13 = smov 128   ;;  %s7102_s3 = smov 8  }
0x24c4   :  { %5938 = dma.vmem_to_hbm [thread:$0]  %s5933_s19, 256, %s8013_s14, [#allocation3], %s7101_s13, %s7101_s13, %s7102_s3  }
0x24c5   :  { %7096 = dma.done.wait [#allocation3], 256  }
0x24c6   :  { %7097 = vsyncadd [#allocation3], 4294967040 }
0x24c7   :  { %5942 = vsyncpa [#allocation3], 1 }

</bundles_post_ra>
